<compile_context>
chip_gen: v6e
topology: v6e:2x2x1
jax: 0.10.0
libtpu: 0.0.40
codegen_flags: <defaults>
</compile_context>

<pallas_src>
import numpy as np

import jax
import jax.numpy as jnp
from jax.experimental import pallas as pl
from jax.experimental.pallas import tpu as pltpu


# ----------------------------------------------------------------------------
# Fused kernel
# ----------------------------------------------------------------------------
#
# In-kernel layouts (per image):
#   P1 (pooled conv1 output) is kept row-parity split:
#       p1_ref[a][i, j*10 + c] = relu(maxpool(conv1+b1))[c, 2i+a, j]   (6, 128)
#   P2 (pooled conv2 output):
#       p2_ref[i, x*20 + c]    = relu(maxpool(conv2+b2))[c, i, x]      (4, 128)
#   All matmul outputs are 256 lanes wide (two 128-lane pool-column phases),
#   so every lane slice is 128-aligned.

def _mnist_fused_kernel(x4_ref, r1_ref, b1_ref, r2_ref, b2_ref,
                        wfc1_ref, fc1b_ref, fc2w_ref, fc2b_ref,
                        o_ref, p1_ref, p2_ref):
    f32 = jnp.float32
    # Weights are VMEM-resident; hoist per-tap loads out of the image loop.
    R1 = [r1_ref[k] for k in range(5)]      # (28, 256) each
    R2 = [r2_ref[k] for k in range(5)]      # (128, 256) each
    WF = [wfc1_ref[i] for i in range(4)]    # (128, 50) each
    b1 = b1_ref[...]                        # (1, 128)
    b2 = b2_ref[...]                        # (1, 128)
    fb1 = fc1b_ref[...]                     # (1, 50)
    w2t = fc2w_ref[...]                     # (50, 10)
    fb2 = fc2b_ref[...]                     # (1, 10)

    tn = o_ref.shape[0]
    for n in range(tn):                     # images in this batch tile (unrolled)
        # ---- conv1 + bias + 2x2 maxpool + relu ------------------------------
        # xs[o][i, :] = Img[4*i + o, :]  (row-phase-split input, unit-stride)
        xs = [x4_ref[n, o % 4, (o // 4):(o // 4) + 6, :] for o in range(8)]
        for a in range(2):                  # P1 row parity slab
            rmax = None
            for dy in range(2):             # pool row phase
                acc = None
                for ki in range(5):
                    t = jnp.dot(xs[2 * a + dy + ki], R1[ki],
                                preferred_element_type=f32)         # (6, 256)
                    acc = t if acc is None else acc + t
                rmax = acc if rmax is None else jnp.maximum(rmax, acc)
            # pool column phases live in the two 128-lane halves
            v = jnp.maximum(rmax[:, 0:128], rmax[:, 128:256]) + b1
            p1_ref[a] = jnp.maximum(v, 0.0)   # (6,128): [i, j*10+c]

        # ---- conv2 + bias + 2x2 maxpool + relu ------------------------------
        # TODO(synk): nn.Dropout2d after conv2 is identity here (eval mode).
        ps = [p1_ref[s % 2, (s // 2):(s // 2) + 4, :] for s in range(6)]  # (4,128)
        rmax = None
        for dy in range(2):
            acc = None
            for ki in range(5):
                t = jnp.dot(ps[dy + ki], R2[ki],
                            preferred_element_type=f32)              # (4, 256)
                acc = t if acc is None else acc + t
            rmax = acc if rmax is None else jnp.maximum(rmax, acc)
        v = jnp.maximum(rmax[:, 0:128], rmax[:, 128:256]) + b2
        p2_ref[...] = jnp.maximum(v, 0.0)     # (4,128): [i, x*20+c]

        # ---- flatten + fc1 + relu + (dropout=identity) + fc2 + log_softmax --
        h = None
        for i in range(4):
            t = jnp.dot(p2_ref[i:i + 1, :], WF[i],
                        preferred_element_type=f32)                  # (1, 50)
            h = t if h is None else h + t
        h = jnp.maximum(h + fb1, 0.0)
        # TODO(synk): F.dropout after fc1 is identity here (eval mode).
        logits = jnp.dot(h, w2t, preferred_element_type=f32) + fb2   # (1, 10)
        m = jnp.max(logits, axis=-1, keepdims=True)
        z = logits - m
        lse = jnp.log(jnp.sum(jnp.exp(z), axis=-1, keepdims=True))
        o_ref[n:n + 1, :] = z - lse


# ----------------------------------------------------------------------------
# One-time parameter packing (feedback: hoist .T / layout work out of forward)
# ----------------------------------------------------------------------------

def pack_params(p):
    """Repack PyTorch-layout parameters into the fused-kernel operand layout."""
    w1 = np.array(jax.device_get(p["w1"]), np.float32)      # (10, 1, 5, 5)
    b1 = np.array(jax.device_get(p["b1"]), np.float32)      # (10,)
    w2 = np.array(jax.device_get(p["w2"]), np.float32)      # (20, 10, 5, 5)
    b2 = np.array(jax.device_get(p["b2"]), np.float32)      # (20,)
    f1w = np.array(jax.device_get(p["fc1_w"]), np.float32)  # (50, 320)
    f1b = np.array(jax.device_get(p["fc1_b"]), np.float32)  # (50,)
    f2w = np.array(jax.device_get(p["fc2_w"]), np.float32)  # (10, 50)
    f2b = np.array(jax.device_get(p["fc2_b"]), np.float32)  # (10,)

    # conv1: column conv + column half of the pool as banded matrices.
    # R1[ki][2j + dx + kj, dx*128 + j*10 + oc] = w1[oc, 0, ki, kj]
    R1 = np.zeros((5, 28, 256), np.float32)
    for ki in range(5):
        for kj in range(5):
            for dx in range(2):
                for j in range(12):
                    col = dx * 128 + j * 10
                    R1[ki, 2 * j + dx + kj, col:col + 10] = w1[:, 0, ki, kj]
    b1t = np.zeros((1, 128), np.float32)
    for j in range(12):
        b1t[0, j * 10:j * 10 + 10] = b1

    # conv2: contraction over (input column, input channel) lanes.
    # R2[ki][(2x + dx + kj)*10 + c, dx*128 + x*20 + oc] = w2[oc, c, ki, kj]
    R2 = np.zeros((5, 128, 256), np.float32)
    for ki in range(5):
        for kj in range(5):
            for dx in range(2):
                for x in range(4):
                    for c in range(10):
                        row = (2 * x + dx + kj) * 10 + c
                        col = dx * 128 + x * 20
                        R2[ki, row, col:col + 20] = w2[:, c, ki, kj]
    b2t = np.zeros((1, 128), np.float32)
    for x in range(4):
        b2t[0, x * 20:x * 20 + 20] = b2

    # fc1: permuted so it contracts the kernel's P2 layout.
    # P2[row i, lane x*20 + c]  <->  torch flatten index c*16 + i*4 + x.
    Wfc1 = np.zeros((4, 128, 50), np.float32)
    f1w_r = f1w.reshape(50, 20, 4, 4)                       # [h, c, i, x]
    Wfc1[:, :80, :] = np.transpose(f1w_r, (2, 3, 1, 0)).reshape(4, 80, 50)

    return {
        "r1": jnp.asarray(R1), "b1": jnp.asarray(b1t),
        "r2": jnp.asarray(R2), "b2": jnp.asarray(b2t),
        "wfc1": jnp.asarray(Wfc1), "fc1b": jnp.asarray(f1b.reshape(1, 50)),
        "fc2w": jnp.asarray(f2w.T.copy()), "fc2b": jnp.asarray(f2b.reshape(1, 10)),
    }


# ----------------------------------------------------------------------------
# Forward wrapper: single pallas_call, grid parallel over batch tiles
# ----------------------------------------------------------------------------

@jax.jit
def forward(x, packed):
    N = x.shape[0]
    TN = N if N <= 8 else 8
    assert N % TN == 0, "batch must be <= 8 or a multiple of 8"
    # Row-phase-split input (layout plumbing only): x4[n, r, m, :] = x[n, 0, 4m+r, :]
    x4 = (x.astype(jnp.float32).reshape(N, 28, 28)
          .reshape(N, 7, 4, 28).transpose(0, 2, 1, 3))      # (N, 4, 7, 28)

    return pl.pallas_call(
        _mnist_fused_kernel,
        out_shape=jax.ShapeDtypeStruct((N, 10), jnp.float32),
        grid=(N // TN,),
        in_specs=[
            pl.BlockSpec((TN, 4, 7, 28), lambda i: (i, 0, 0, 0)),   # x (phase-split)
            pl.BlockSpec((5, 28, 256), lambda i: (0, 0, 0)),        # conv1 banded W
            pl.BlockSpec((1, 128), lambda i: (0, 0)),               # conv1 bias
            pl.BlockSpec((5, 128, 256), lambda i: (0, 0, 0)),       # conv2 banded W
            pl.BlockSpec((1, 128), lambda i: (0, 0)),               # conv2 bias
            pl.BlockSpec((4, 128, 50), lambda i: (0, 0, 0)),        # fc1 (permuted)
            pl.BlockSpec((1, 50), lambda i: (0, 0)),                # fc1 bias
            pl.BlockSpec((50, 10), lambda i: (0, 0)),               # fc2 (transposed)
            pl.BlockSpec((1, 10), lambda i: (0, 0)),                # fc2 bias
        ],
        out_specs=pl.BlockSpec((TN, 10), lambda i: (i, 0)),
        scratch_shapes=[
            pltpu.VMEM((2, 6, 128), jnp.float32),   # P1 row-parity slabs
            pltpu.VMEM((4, 128), jnp.float32),      # P2 (flattened features)
        ],
        compiler_params=pltpu.CompilerParams(
            dimension_semantics=("parallel",)),
    )(x4, packed["r1"], packed["b1"], packed["r2"], packed["b2"],
      packed["wfc1"], packed["fc1b"], packed["fc2w"], packed["fc2b"])


# ----------------------------------------------------------------------------
# Parameters + pure-jnp reference (sanity check only)
# ----------------------------------------------------------------------------

def init_params(key):
    ks = jax.random.split(key, 8)
    return {
        "w1": jax.random.normal(ks[0], (10, 1, 5, 5), jnp.float32) * 0.1,
        "b1": jax.random.normal(ks[1], (10,), jnp.float32) * 0.1,
        "w2": jax.random.normal(ks[2], (20, 10, 5, 5), jnp.float32) * 0.05,
        "b2": jax.random.normal(ks[3], (20,), jnp.float32) * 0.05,
        "fc1_w": jax.random.normal(ks[4], (50, 320), jnp.float32) * 0.05,
        "fc1_b": jax.random.normal(ks[5], (50,), jnp.float32) * 0.05,
        "fc2_w": jax.random.normal(ks[6], (10, 50), jnp.float32) * 0.1,
        "fc2_b": jax.random.normal(ks[7], (10,), jnp.float32) * 0.1,
    }


def _im2col(x, k):
    """Reference-only helper. x: (N,C,H,W) -> (N*OH*OW, C*k*k), order (c,ki,kj)."""
    N, C, H, W = x.shape
    OH, OW = H - k + 1, W - k + 1
    cols = []
    for ci in range(C):
        for ki in range(k):
            for kj in range(k):
                cols.append(x[:, ci, ki:ki + OH, kj:kj + OW])
    patches = jnp.stack(cols, axis=-1)
    return patches.reshape(N * OH * OW, C * k * k), (N, OH, OW)


def forward_ref(x, p):
    def conv_ref(x, w, b):
        OC, C, K, _ = w.shape
        patches, (N, OH, OW) = _im2col(x, K)
        y = patches @ w.reshape(OC, C * K * K).T + b
        return y.reshape(N, OH, OW, OC).transpose(0, 3, 1, 2)

    def pool_relu_ref(x):
        N, C, H, W = x.shape
        x = x.reshape(N, C, H // 2, 2, W // 2, 2).max(axis=(3, 5))
        return jnp.maximum(x, 0.0)

    N = x.shape[0]
    x = pool_relu_ref(conv_ref(x, p["w1"], p["b1"]))
    x = pool_relu_ref(conv_ref(x, p["w2"], p["b2"]))
    x = x.reshape(N, 320)
    x = jnp.maximum(x @ p["fc1_w"].T + p["fc1_b"], 0.0)
    logits = x @ p["fc2_w"].T + p["fc2_b"]
    return jax.nn.log_softmax(logits, axis=-1)


if __name__ == "__main__":
    key = jax.random.PRNGKey(0)
    kx, kp = jax.random.split(key)
    # MNIST-shaped input: batch=2, 1 channel, 28x28 (required for the 320-dim flatten)
    x = jax.random.normal(kx, (2, 1, 28, 28), jnp.float32)
    params = init_params(kp)
    packed = pack_params(params)           # one-time weight repack

    out = jax.block_until_ready(forward(x, packed))
    assert out.shape == (2, 10)

    ref = jax.block_until_ready(forward_ref(x, params))
    assert jnp.allclose(out, ref, rtol=2e-3, atol=2e-3), "mismatch vs reference"

    print("KERNEL_OK")
</pallas_src>

<mosaic_0001>
module attributes {stable_mosaic.version = 11 : i64} {
  func.func @_mnist_fused_kernel(%arg0: i32, %arg1: memref<2x4x7x28xf32, #tpu.memory_space<vmem>>, %arg2: memref<5x28x256xf32, #tpu.memory_space<vmem>>, %arg3: memref<1x128xf32, #tpu.memory_space<vmem>>, %arg4: memref<5x128x256xf32, #tpu.memory_space<vmem>>, %arg5: memref<1x128xf32, #tpu.memory_space<vmem>>, %arg6: memref<4x128x50xf32, #tpu.memory_space<vmem>>, %arg7: memref<1x50xf32, #tpu.memory_space<vmem>>, %arg8: memref<50x10xf32, #tpu.memory_space<vmem>>, %arg9: memref<1x10xf32, #tpu.memory_space<vmem>>, %arg10: memref<2x10xf32, #tpu.memory_space<vmem>>, %arg11: memref<2x6x128xf32, #tpu.memory_space<vmem>>, %arg12: memref<4x128xf32, #tpu.memory_space<vmem>>) attributes {dimension_semantics = [#tpu.dimension_semantics<parallel>], iteration_bounds = array<i64: 1>, scalar_prefetch = 0 : i64, scratch_operands = 2 : i64, tpu.core_type = #tpu.core_type<tc>, window_params = [{transform_indices = @transform_0, window_bounds = array<i64: 2, 4, 7, 28>}, {pipeline_mode = #tpu.pipeline_mode<synchronous>, transform_indices = @transform_1, window_bounds = array<i64: 5, 28, 256>}, {pipeline_mode = #tpu.pipeline_mode<synchronous>, transform_indices = @transform_2, window_bounds = array<i64: 1, 128>}, {pipeline_mode = #tpu.pipeline_mode<synchronous>, transform_indices = @transform_3, window_bounds = array<i64: 5, 128, 256>}, {pipeline_mode = #tpu.pipeline_mode<synchronous>, transform_indices = @transform_4, window_bounds = array<i64: 1, 128>}, {pipeline_mode = #tpu.pipeline_mode<synchronous>, transform_indices = @transform_5, window_bounds = array<i64: 4, 128, 50>}, {pipeline_mode = #tpu.pipeline_mode<synchronous>, transform_indices = @transform_6, window_bounds = array<i64: 1, 50>}, {pipeline_mode = #tpu.pipeline_mode<synchronous>, transform_indices = @transform_7, window_bounds = array<i64: 50, 10>}, {pipeline_mode = #tpu.pipeline_mode<synchronous>, transform_indices = @transform_8, window_bounds = array<i64: 1, 10>}, {transform_indices = @transform_9, window_bounds = array<i64: 2, 10>}]} {
    %c0 = arith.constant 0 : index
    %c0_0 = arith.constant 0 : index
    %c0_1 = arith.constant 0 : index
    %0 = vector.load %arg2[%c0, %c0_0, %c0_1] : memref<5x28x256xf32, #tpu.memory_space<vmem>>, vector<1x28x256xf32>
    %1 = vector.shape_cast %0 : vector<1x28x256xf32> to vector<28x256xf32>
    %c1 = arith.constant 1 : index
    %c0_2 = arith.constant 0 : index
    %c0_3 = arith.constant 0 : index
    %2 = vector.load %arg2[%c1, %c0_2, %c0_3] : memref<5x28x256xf32, #tpu.memory_space<vmem>>, vector<1x28x256xf32>
    %3 = vector.shape_cast %2 : vector<1x28x256xf32> to vector<28x256xf32>
    %c2 = arith.constant 2 : index
    %c0_4 = arith.constant 0 : index
    %c0_5 = arith.constant 0 : index
    %4 = vector.load %arg2[%c2, %c0_4, %c0_5] : memref<5x28x256xf32, #tpu.memory_space<vmem>>, vector<1x28x256xf32>
    %5 = vector.shape_cast %4 : vector<1x28x256xf32> to vector<28x256xf32>
    %c3 = arith.constant 3 : index
    %c0_6 = arith.constant 0 : index
    %c0_7 = arith.constant 0 : index
    %6 = vector.load %arg2[%c3, %c0_6, %c0_7] : memref<5x28x256xf32, #tpu.memory_space<vmem>>, vector<1x28x256xf32>
    %7 = vector.shape_cast %6 : vector<1x28x256xf32> to vector<28x256xf32>
    %c4 = arith.constant 4 : index
    %c0_8 = arith.constant 0 : index
    %c0_9 = arith.constant 0 : index
    %8 = vector.load %arg2[%c4, %c0_8, %c0_9] : memref<5x28x256xf32, #tpu.memory_space<vmem>>, vector<1x28x256xf32>
    %9 = vector.shape_cast %8 : vector<1x28x256xf32> to vector<28x256xf32>
    %c0_10 = arith.constant 0 : index
    %c0_11 = arith.constant 0 : index
    %c0_12 = arith.constant 0 : index
    %10 = vector.load %arg4[%c0_10, %c0_11, %c0_12] : memref<5x128x256xf32, #tpu.memory_space<vmem>>, vector<1x128x256xf32>
    %11 = vector.shape_cast %10 : vector<1x128x256xf32> to vector<128x256xf32>
    %c1_13 = arith.constant 1 : index
    %c0_14 = arith.constant 0 : index
    %c0_15 = arith.constant 0 : index
    %12 = vector.load %arg4[%c1_13, %c0_14, %c0_15] : memref<5x128x256xf32, #tpu.memory_space<vmem>>, vector<1x128x256xf32>
    %13 = vector.shape_cast %12 : vector<1x128x256xf32> to vector<128x256xf32>
    %c2_16 = arith.constant 2 : index
    %c0_17 = arith.constant 0 : index
    %c0_18 = arith.constant 0 : index
    %14 = vector.load %arg4[%c2_16, %c0_17, %c0_18] : memref<5x128x256xf32, #tpu.memory_space<vmem>>, vector<1x128x256xf32>
    %15 = vector.shape_cast %14 : vector<1x128x256xf32> to vector<128x256xf32>
    %c3_19 = arith.constant 3 : index
    %c0_20 = arith.constant 0 : index
    %c0_21 = arith.constant 0 : index
    %16 = vector.load %arg4[%c3_19, %c0_20, %c0_21] : memref<5x128x256xf32, #tpu.memory_space<vmem>>, vector<1x128x256xf32>
    %17 = vector.shape_cast %16 : vector<1x128x256xf32> to vector<128x256xf32>
    %c4_22 = arith.constant 4 : index
    %c0_23 = arith.constant 0 : index
    %c0_24 = arith.constant 0 : index
    %18 = vector.load %arg4[%c4_22, %c0_23, %c0_24] : memref<5x128x256xf32, #tpu.memory_space<vmem>>, vector<1x128x256xf32>
    %19 = vector.shape_cast %18 : vector<1x128x256xf32> to vector<128x256xf32>
    %c0_25 = arith.constant 0 : index
    %c0_26 = arith.constant 0 : index
    %c0_27 = arith.constant 0 : index
    %20 = vector.load %arg6[%c0_25, %c0_26, %c0_27] : memref<4x128x50xf32, #tpu.memory_space<vmem>>, vector<1x128x50xf32>
    %21 = vector.shape_cast %20 : vector<1x128x50xf32> to vector<128x50xf32>
    %c1_28 = arith.constant 1 : index
    %c0_29 = arith.constant 0 : index
    %c0_30 = arith.constant 0 : index
    %22 = vector.load %arg6[%c1_28, %c0_29, %c0_30] : memref<4x128x50xf32, #tpu.memory_space<vmem>>, vector<1x128x50xf32>
    %23 = vector.shape_cast %22 : vector<1x128x50xf32> to vector<128x50xf32>
    %c2_31 = arith.constant 2 : index
    %c0_32 = arith.constant 0 : index
    %c0_33 = arith.constant 0 : index
    %24 = vector.load %arg6[%c2_31, %c0_32, %c0_33] : memref<4x128x50xf32, #tpu.memory_space<vmem>>, vector<1x128x50xf32>
    %25 = vector.shape_cast %24 : vector<1x128x50xf32> to vector<128x50xf32>
    %c3_34 = arith.constant 3 : index
    %c0_35 = arith.constant 0 : index
    %c0_36 = arith.constant 0 : index
    %26 = vector.load %arg6[%c3_34, %c0_35, %c0_36] : memref<4x128x50xf32, #tpu.memory_space<vmem>>, vector<1x128x50xf32>
    %27 = vector.shape_cast %26 : vector<1x128x50xf32> to vector<128x50xf32>
    %c0_37 = arith.constant 0 : index
    %c0_38 = arith.constant 0 : index
    %28 = vector.load %arg3[%c0_37, %c0_38] : memref<1x128xf32, #tpu.memory_space<vmem>>, vector<1x128xf32>
    %c0_39 = arith.constant 0 : index
    %c0_40 = arith.constant 0 : index
    %29 = vector.load %arg5[%c0_39, %c0_40] : memref<1x128xf32, #tpu.memory_space<vmem>>, vector<1x128xf32>
    %c0_41 = arith.constant 0 : index
    %c0_42 = arith.constant 0 : index
    %30 = vector.load %arg7[%c0_41, %c0_42] : memref<1x50xf32, #tpu.memory_space<vmem>>, vector<1x50xf32>
    %c0_43 = arith.constant 0 : index
    %c0_44 = arith.constant 0 : index
    %31 = vector.load %arg8[%c0_43, %c0_44] : memref<50x10xf32, #tpu.memory_space<vmem>>, vector<50x10xf32>
    %c0_45 = arith.constant 0 : index
    %c0_46 = arith.constant 0 : index
    %32 = vector.load %arg9[%c0_45, %c0_46] : memref<1x10xf32, #tpu.memory_space<vmem>>, vector<1x10xf32>
    %c0_47 = arith.constant 0 : index
    %c0_48 = arith.constant 0 : index
    %c0_49 = arith.constant 0 : index
    %c0_50 = arith.constant 0 : index
    %33 = vector.load %arg1[%c0_47, %c0_48, %c0_49, %c0_50] : memref<2x4x7x28xf32, #tpu.memory_space<vmem>>, vector<1x1x6x28xf32>
    %34 = vector.shape_cast %33 : vector<1x1x6x28xf32> to vector<6x28xf32>
    %c0_51 = arith.constant 0 : index
    %c1_52 = arith.constant 1 : index
    %c0_53 = arith.constant 0 : index
    %c0_54 = arith.constant 0 : index
    %35 = vector.load %arg1[%c0_51, %c1_52, %c0_53, %c0_54] : memref<2x4x7x28xf32, #tpu.memory_space<vmem>>, vector<1x1x6x28xf32>
    %36 = vector.shape_cast %35 : vector<1x1x6x28xf32> to vector<6x28xf32>
    %c0_55 = arith.constant 0 : index
    %c2_56 = arith.constant 2 : index
    %c0_57 = arith.constant 0 : index
    %c0_58 = arith.constant 0 : index
    %37 = vector.load %arg1[%c0_55, %c2_56, %c0_57, %c0_58] : memref<2x4x7x28xf32, #tpu.memory_space<vmem>>, vector<1x1x6x28xf32>
    %38 = vector.shape_cast %37 : vector<1x1x6x28xf32> to vector<6x28xf32>
    %c0_59 = arith.constant 0 : index
    %c3_60 = arith.constant 3 : index
    %c0_61 = arith.constant 0 : index
    %c0_62 = arith.constant 0 : index
    %39 = vector.load %arg1[%c0_59, %c3_60, %c0_61, %c0_62] : memref<2x4x7x28xf32, #tpu.memory_space<vmem>>, vector<1x1x6x28xf32>
    %40 = vector.shape_cast %39 : vector<1x1x6x28xf32> to vector<6x28xf32>
    %c0_63 = arith.constant 0 : index
    %c0_64 = arith.constant 0 : index
    %c1_65 = arith.constant 1 : index
    %c0_66 = arith.constant 0 : index
    %41 = vector.load %arg1[%c0_63, %c0_64, %c1_65, %c0_66] : memref<2x4x7x28xf32, #tpu.memory_space<vmem>>, vector<1x1x6x28xf32>
    %42 = vector.shape_cast %41 : vector<1x1x6x28xf32> to vector<6x28xf32>
    %c0_67 = arith.constant 0 : index
    %c1_68 = arith.constant 1 : index
    %c1_69 = arith.constant 1 : index
    %c0_70 = arith.constant 0 : index
    %43 = vector.load %arg1[%c0_67, %c1_68, %c1_69, %c0_70] : memref<2x4x7x28xf32, #tpu.memory_space<vmem>>, vector<1x1x6x28xf32>
    %44 = vector.shape_cast %43 : vector<1x1x6x28xf32> to vector<6x28xf32>
    %c0_71 = arith.constant 0 : index
    %c2_72 = arith.constant 2 : index
    %c1_73 = arith.constant 1 : index
    %c0_74 = arith.constant 0 : index
    %45 = vector.load %arg1[%c0_71, %c2_72, %c1_73, %c0_74] : memref<2x4x7x28xf32, #tpu.memory_space<vmem>>, vector<1x1x6x28xf32>
    %46 = vector.shape_cast %45 : vector<1x1x6x28xf32> to vector<6x28xf32>
    %c0_75 = arith.constant 0 : index
    %c3_76 = arith.constant 3 : index
    %c1_77 = arith.constant 1 : index
    %c0_78 = arith.constant 0 : index
    %47 = vector.load %arg1[%c0_75, %c3_76, %c1_77, %c0_78] : memref<2x4x7x28xf32, #tpu.memory_space<vmem>>, vector<1x1x6x28xf32>
    %48 = vector.shape_cast %47 : vector<1x1x6x28xf32> to vector<6x28xf32>
    %cst = arith.constant dense<0.000000e+00> : vector<6x256xf32>
    %49 = tpu.matmul %34, %1, %cst {dimension_numbers = #tpu.dot_dimension_numbers<[1], [0], [0], [1], [0, 0, 1, 1], [], []>} : vector<6x28xf32>, vector<28x256xf32>, vector<6x256xf32> -> vector<6x256xf32>
    %cst_79 = arith.constant dense<0.000000e+00> : vector<6x256xf32>
    %50 = tpu.matmul %36, %3, %cst_79 {dimension_numbers = #tpu.dot_dimension_numbers<[1], [0], [0], [1], [0, 0, 1, 1], [], []>} : vector<6x28xf32>, vector<28x256xf32>, vector<6x256xf32> -> vector<6x256xf32>
    %51 = arith.addf %49, %50 : vector<6x256xf32>
    %cst_80 = arith.constant dense<0.000000e+00> : vector<6x256xf32>
    %52 = tpu.matmul %38, %5, %cst_80 {dimension_numbers = #tpu.dot_dimension_numbers<[1], [0], [0], [1], [0, 0, 1, 1], [], []>} : vector<6x28xf32>, vector<28x256xf32>, vector<6x256xf32> -> vector<6x256xf32>
    %53 = arith.addf %51, %52 : vector<6x256xf32>
    %cst_81 = arith.constant dense<0.000000e+00> : vector<6x256xf32>
    %54 = tpu.matmul %40, %7, %cst_81 {dimension_numbers = #tpu.dot_dimension_numbers<[1], [0], [0], [1], [0, 0, 1, 1], [], []>} : vector<6x28xf32>, vector<28x256xf32>, vector<6x256xf32> -> vector<6x256xf32>
    %55 = arith.addf %53, %54 : vector<6x256xf32>
    %cst_82 = arith.constant dense<0.000000e+00> : vector<6x256xf32>
    %56 = tpu.matmul %42, %9, %cst_82 {dimension_numbers = #tpu.dot_dimension_numbers<[1], [0], [0], [1], [0, 0, 1, 1], [], []>} : vector<6x28xf32>, vector<28x256xf32>, vector<6x256xf32> -> vector<6x256xf32>
    %57 = arith.addf %55, %56 : vector<6x256xf32>
    %cst_83 = arith.constant dense<0.000000e+00> : vector<6x256xf32>
    %58 = tpu.matmul %36, %1, %cst_83 {dimension_numbers = #tpu.dot_dimension_numbers<[1], [0], [0], [1], [0, 0, 1, 1], [], []>} : vector<6x28xf32>, vector<28x256xf32>, vector<6x256xf32> -> vector<6x256xf32>
    %cst_84 = arith.constant dense<0.000000e+00> : vector<6x256xf32>
    %59 = tpu.matmul %38, %3, %cst_84 {dimension_numbers = #tpu.dot_dimension_numbers<[1], [0], [0], [1], [0, 0, 1, 1], [], []>} : vector<6x28xf32>, vector<28x256xf32>, vector<6x256xf32> -> vector<6x256xf32>
    %60 = arith.addf %58, %59 : vector<6x256xf32>
    %cst_85 = arith.constant dense<0.000000e+00> : vector<6x256xf32>
    %61 = tpu.matmul %40, %5, %cst_85 {dimension_numbers = #tpu.dot_dimension_numbers<[1], [0], [0], [1], [0, 0, 1, 1], [], []>} : vector<6x28xf32>, vector<28x256xf32>, vector<6x256xf32> -> vector<6x256xf32>
    %62 = arith.addf %60, %61 : vector<6x256xf32>
    %cst_86 = arith.constant dense<0.000000e+00> : vector<6x256xf32>
    %63 = tpu.matmul %42, %7, %cst_86 {dimension_numbers = #tpu.dot_dimension_numbers<[1], [0], [0], [1], [0, 0, 1, 1], [], []>} : vector<6x28xf32>, vector<28x256xf32>, vector<6x256xf32> -> vector<6x256xf32>
    %64 = arith.addf %62, %63 : vector<6x256xf32>
    %cst_87 = arith.constant dense<0.000000e+00> : vector<6x256xf32>
    %65 = tpu.matmul %44, %9, %cst_87 {dimension_numbers = #tpu.dot_dimension_numbers<[1], [0], [0], [1], [0, 0, 1, 1], [], []>} : vector<6x28xf32>, vector<28x256xf32>, vector<6x256xf32> -> vector<6x256xf32>
    %66 = arith.addf %64, %65 : vector<6x256xf32>
    %67 = arith.maximumf %57, %66 : vector<6x256xf32>
    %68 = vector.extract_strided_slice %67 {offsets = [0, 0], sizes = [6, 128], strides = [1, 1]} : vector<6x256xf32> to vector<6x128xf32>
    %69 = vector.extract_strided_slice %67 {offsets = [0, 128], sizes = [6, 128], strides = [1, 1]} : vector<6x256xf32> to vector<6x128xf32>
    %70 = arith.maximumf %68, %69 : vector<6x128xf32>
    %71 = vector.broadcast %28 : vector<1x128xf32> to vector<6x128xf32>
    %72 = arith.addf %70, %71 : vector<6x128xf32>
    %cst_88 = arith.constant 0.000000e+00 : f32
    %73 = vector.broadcast %cst_88 : f32 to vector<6x128xf32>
    %74 = arith.maximumf %72, %73 : vector<6x128xf32>
    %c0_89 = arith.constant 0 : index
    %c0_90 = arith.constant 0 : index
    %c0_91 = arith.constant 0 : index
    %75 = vector.load %arg11[%c0_89, %c0_90, %c0_91] : memref<2x6x128xf32, #tpu.memory_space<vmem>>, vector<1x6x128xf32>
    %76 = vector.shape_cast %75 : vector<1x6x128xf32> to vector<6x128xf32>
    %77 = vector.shape_cast %74 : vector<6x128xf32> to vector<1x6x128xf32>
    tpu.vector_store %arg11[%c0_89, %c0_90, %c0_91], %77 {strides = array<i32>} : memref<2x6x128xf32, #tpu.memory_space<vmem>>, vector<1x6x128xf32>,
    %cst_92 = arith.constant dense<0.000000e+00> : vector<6x256xf32>
    %78 = tpu.matmul %38, %1, %cst_92 {dimension_numbers = #tpu.dot_dimension_numbers<[1], [0], [0], [1], [0, 0, 1, 1], [], []>} : vector<6x28xf32>, vector<28x256xf32>, vector<6x256xf32> -> vector<6x256xf32>
    %cst_93 = arith.constant dense<0.000000e+00> : vector<6x256xf32>
    %79 = tpu.matmul %40, %3, %cst_93 {dimension_numbers = #tpu.dot_dimension_numbers<[1], [0], [0], [1], [0, 0, 1, 1], [], []>} : vector<6x28xf32>, vector<28x256xf32>, vector<6x256xf32> -> vector<6x256xf32>
    %80 = arith.addf %78, %79 : vector<6x256xf32>
    %cst_94 = arith.constant dense<0.000000e+00> : vector<6x256xf32>
    %81 = tpu.matmul %42, %5, %cst_94 {dimension_numbers = #tpu.dot_dimension_numbers<[1], [0], [0], [1], [0, 0, 1, 1], [], []>} : vector<6x28xf32>, vector<28x256xf32>, vector<6x256xf32> -> vector<6x256xf32>
    %82 = arith.addf %80, %81 : vector<6x256xf32>
    %cst_95 = arith.constant dense<0.000000e+00> : vector<6x256xf32>
    %83 = tpu.matmul %44, %7, %cst_95 {dimension_numbers = #tpu.dot_dimension_numbers<[1], [0], [0], [1], [0, 0, 1, 1], [], []>} : vector<6x28xf32>, vector<28x256xf32>, vector<6x256xf32> -> vector<6x256xf32>
    %84 = arith.addf %82, %83 : vector<6x256xf32>
    %cst_96 = arith.constant dense<0.000000e+00> : vector<6x256xf32>
    %85 = tpu.matmul %46, %9, %cst_96 {dimension_numbers = #tpu.dot_dimension_numbers<[1], [0], [0], [1], [0, 0, 1, 1], [], []>} : vector<6x28xf32>, vector<28x256xf32>, vector<6x256xf32> -> vector<6x256xf32>
    %86 = arith.addf %84, %85 : vector<6x256xf32>
    %cst_97 = arith.constant dense<0.000000e+00> : vector<6x256xf32>
    %87 = tpu.matmul %40, %1, %cst_97 {dimension_numbers = #tpu.dot_dimension_numbers<[1], [0], [0], [1], [0, 0, 1, 1], [], []>} : vector<6x28xf32>, vector<28x256xf32>, vector<6x256xf32> -> vector<6x256xf32>
    %cst_98 = arith.constant dense<0.000000e+00> : vector<6x256xf32>
    %88 = tpu.matmul %42, %3, %cst_98 {dimension_numbers = #tpu.dot_dimension_numbers<[1], [0], [0], [1], [0, 0, 1, 1], [], []>} : vector<6x28xf32>, vector<28x256xf32>, vector<6x256xf32> -> vector<6x256xf32>
    %89 = arith.addf %87, %88 : vector<6x256xf32>
    %cst_99 = arith.constant dense<0.000000e+00> : vector<6x256xf32>
    %90 = tpu.matmul %44, %5, %cst_99 {dimension_numbers = #tpu.dot_dimension_numbers<[1], [0], [0], [1], [0, 0, 1, 1], [], []>} : vector<6x28xf32>, vector<28x256xf32>, vector<6x256xf32> -> vector<6x256xf32>
    %91 = arith.addf %89, %90 : vector<6x256xf32>
    %cst_100 = arith.constant dense<0.000000e+00> : vector<6x256xf32>
    %92 = tpu.matmul %46, %7, %cst_100 {dimension_numbers = #tpu.dot_dimension_numbers<[1], [0], [0], [1], [0, 0, 1, 1], [], []>} : vector<6x28xf32>, vector<28x256xf32>, vector<6x256xf32> -> vector<6x256xf32>
    %93 = arith.addf %91, %92 : vector<6x256xf32>
    %cst_101 = arith.constant dense<0.000000e+00> : vector<6x256xf32>
    %94 = tpu.matmul %48, %9, %cst_101 {dimension_numbers = #tpu.dot_dimension_numbers<[1], [0], [0], [1], [0, 0, 1, 1], [], []>} : vector<6x28xf32>, vector<28x256xf32>, vector<6x256xf32> -> vector<6x256xf32>
    %95 = arith.addf %93, %94 : vector<6x256xf32>
    %96 = arith.maximumf %86, %95 : vector<6x256xf32>
    %97 = vector.extract_strided_slice %96 {offsets = [0, 0], sizes = [6, 128], strides = [1, 1]} : vector<6x256xf32> to vector<6x128xf32>
    %98 = vector.extract_strided_slice %96 {offsets = [0, 128], sizes = [6, 128], strides = [1, 1]} : vector<6x256xf32> to vector<6x128xf32>
    %99 = arith.maximumf %97, %98 : vector<6x128xf32>
    %100 = vector.broadcast %28 : vector<1x128xf32> to vector<6x128xf32>
    %101 = arith.addf %99, %100 : vector<6x128xf32>
    %cst_102 = arith.constant 0.000000e+00 : f32
    %102 = vector.broadcast %cst_102 : f32 to vector<6x128xf32>
    %103 = arith.maximumf %101, %102 : vector<6x128xf32>
    %c1_103 = arith.constant 1 : index
    %c0_104 = arith.constant 0 : index
    %c0_105 = arith.constant 0 : index
    %104 = vector.load %arg11[%c1_103, %c0_104, %c0_105] : memref<2x6x128xf32, #tpu.memory_space<vmem>>, vector<1x6x128xf32>
    %105 = vector.shape_cast %104 : vector<1x6x128xf32> to vector<6x128xf32>
    %106 = vector.shape_cast %103 : vector<6x128xf32> to vector<1x6x128xf32>
    tpu.vector_store %arg11[%c1_103, %c0_104, %c0_105], %106 {strides = array<i32>} : memref<2x6x128xf32, #tpu.memory_space<vmem>>, vector<1x6x128xf32>,
    %c0_106 = arith.constant 0 : index
    %c0_107 = arith.constant 0 : index
    %c0_108 = arith.constant 0 : index
    %107 = vector.load %arg11[%c0_106, %c0_107, %c0_108] : memref<2x6x128xf32, #tpu.memory_space<vmem>>, vector<1x4x128xf32>
    %108 = vector.shape_cast %107 : vector<1x4x128xf32> to vector<4x128xf32>
    %c1_109 = arith.constant 1 : index
    %c0_110 = arith.constant 0 : index
    %c0_111 = arith.constant 0 : index
    %109 = vector.load %arg11[%c1_109, %c0_110, %c0_111] : memref<2x6x128xf32, #tpu.memory_space<vmem>>, vector<1x4x128xf32>
    %110 = vector.shape_cast %109 : vector<1x4x128xf32> to vector<4x128xf32>
    %c0_112 = arith.constant 0 : index
    %c1_113 = arith.constant 1 : index
    %c0_114 = arith.constant 0 : index
    %111 = vector.load %arg11[%c0_112, %c1_113, %c0_114] : memref<2x6x128xf32, #tpu.memory_space<vmem>>, vector<1x4x128xf32>
    %112 = vector.shape_cast %111 : vector<1x4x128xf32> to vector<4x128xf32>
    %c1_115 = arith.constant 1 : index
    %c1_116 = arith.constant 1 : index
    %c0_117 = arith.constant 0 : index
    %113 = vector.load %arg11[%c1_115, %c1_116, %c0_117] : memref<2x6x128xf32, #tpu.memory_space<vmem>>, vector<1x4x128xf32>
    %114 = vector.shape_cast %113 : vector<1x4x128xf32> to vector<4x128xf32>
    %c0_118 = arith.constant 0 : index
    %c2_119 = arith.constant 2 : index
    %c0_120 = arith.constant 0 : index
    %115 = vector.load %arg11[%c0_118, %c2_119, %c0_120] : memref<2x6x128xf32, #tpu.memory_space<vmem>>, vector<1x4x128xf32>
    %116 = vector.shape_cast %115 : vector<1x4x128xf32> to vector<4x128xf32>
    %c1_121 = arith.constant 1 : index
    %c2_122 = arith.constant 2 : index
    %c0_123 = arith.constant 0 : index
    %117 = vector.load %arg11[%c1_121, %c2_122, %c0_123] : memref<2x6x128xf32, #tpu.memory_space<vmem>>, vector<1x4x128xf32>
    %118 = vector.shape_cast %117 : vector<1x4x128xf32> to vector<4x128xf32>
    %cst_124 = arith.constant dense<0.000000e+00> : vector<4x256xf32>
    %119 = tpu.matmul %108, %11, %cst_124 {dimension_numbers = #tpu.dot_dimension_numbers<[1], [0], [0], [1], [0, 0, 1, 1], [], []>} : vector<4x128xf32>, vector<128x256xf32>, vector<4x256xf32> -> vector<4x256xf32>
    %cst_125 = arith.constant dense<0.000000e+00> : vector<4x256xf32>
    %120 = tpu.matmul %110, %13, %cst_125 {dimension_numbers = #tpu.dot_dimension_numbers<[1], [0], [0], [1], [0, 0, 1, 1], [], []>} : vector<4x128xf32>, vector<128x256xf32>, vector<4x256xf32> -> vector<4x256xf32>
    %121 = arith.addf %119, %120 : vector<4x256xf32>
    %cst_126 = arith.constant dense<0.000000e+00> : vector<4x256xf32>
    %122 = tpu.matmul %112, %15, %cst_126 {dimension_numbers = #tpu.dot_dimension_numbers<[1], [0], [0], [1], [0, 0, 1, 1], [], []>} : vector<4x128xf32>, vector<128x256xf32>, vector<4x256xf32> -> vector<4x256xf32>
    %123 = arith.addf %121, %122 : vector<4x256xf32>
    %cst_127 = arith.constant dense<0.000000e+00> : vector<4x256xf32>
    %124 = tpu.matmul %114, %17, %cst_127 {dimension_numbers = #tpu.dot_dimension_numbers<[1], [0], [0], [1], [0, 0, 1, 1], [], []>} : vector<4x128xf32>, vector<128x256xf32>, vector<4x256xf32> -> vector<4x256xf32>
    %125 = arith.addf %123, %124 : vector<4x256xf32>
    %cst_128 = arith.constant dense<0.000000e+00> : vector<4x256xf32>
    %126 = tpu.matmul %116, %19, %cst_128 {dimension_numbers = #tpu.dot_dimension_numbers<[1], [0], [0], [1], [0, 0, 1, 1], [], []>} : vector<4x128xf32>, vector<128x256xf32>, vector<4x256xf32> -> vector<4x256xf32>
    %127 = arith.addf %125, %126 : vector<4x256xf32>
    %cst_129 = arith.constant dense<0.000000e+00> : vector<4x256xf32>
    %128 = tpu.matmul %110, %11, %cst_129 {dimension_numbers = #tpu.dot_dimension_numbers<[1], [0], [0], [1], [0, 0, 1, 1], [], []>} : vector<4x128xf32>, vector<128x256xf32>, vector<4x256xf32> -> vector<4x256xf32>
    %cst_130 = arith.constant dense<0.000000e+00> : vector<4x256xf32>
    %129 = tpu.matmul %112, %13, %cst_130 {dimension_numbers = #tpu.dot_dimension_numbers<[1], [0], [0], [1], [0, 0, 1, 1], [], []>} : vector<4x128xf32>, vector<128x256xf32>, vector<4x256xf32> -> vector<4x256xf32>
    %130 = arith.addf %128, %129 : vector<4x256xf32>
    %cst_131 = arith.constant dense<0.000000e+00> : vector<4x256xf32>
    %131 = tpu.matmul %114, %15, %cst_131 {dimension_numbers = #tpu.dot_dimension_numbers<[1], [0], [0], [1], [0, 0, 1, 1], [], []>} : vector<4x128xf32>, vector<128x256xf32>, vector<4x256xf32> -> vector<4x256xf32>
    %132 = arith.addf %130, %131 : vector<4x256xf32>
    %cst_132 = arith.constant dense<0.000000e+00> : vector<4x256xf32>
    %133 = tpu.matmul %116, %17, %cst_132 {dimension_numbers = #tpu.dot_dimension_numbers<[1], [0], [0], [1], [0, 0, 1, 1], [], []>} : vector<4x128xf32>, vector<128x256xf32>, vector<4x256xf32> -> vector<4x256xf32>
    %134 = arith.addf %132, %133 : vector<4x256xf32>
    %cst_133 = arith.constant dense<0.000000e+00> : vector<4x256xf32>
    %135 = tpu.matmul %118, %19, %cst_133 {dimension_numbers = #tpu.dot_dimension_numbers<[1], [0], [0], [1], [0, 0, 1, 1], [], []>} : vector<4x128xf32>, vector<128x256xf32>, vector<4x256xf32> -> vector<4x256xf32>
    %136 = arith.addf %134, %135 : vector<4x256xf32>
    %137 = arith.maximumf %127, %136 : vector<4x256xf32>
    %138 = vector.extract_strided_slice %137 {offsets = [0, 0], sizes = [4, 128], strides = [1, 1]} : vector<4x256xf32> to vector<4x128xf32>
    %139 = vector.extract_strided_slice %137 {offsets = [0, 128], sizes = [4, 128], strides = [1, 1]} : vector<4x256xf32> to vector<4x128xf32>
    %140 = arith.maximumf %138, %139 : vector<4x128xf32>
    %141 = vector.broadcast %29 : vector<1x128xf32> to vector<4x128xf32>
    %142 = arith.addf %140, %141 : vector<4x128xf32>
    %cst_134 = arith.constant 0.000000e+00 : f32
    %143 = vector.broadcast %cst_134 : f32 to vector<4x128xf32>
    %144 = arith.maximumf %142, %143 : vector<4x128xf32>
    %c0_135 = arith.constant 0 : index
    %c0_136 = arith.constant 0 : index
    %145 = vector.load %arg12[%c0_135, %c0_136] : memref<4x128xf32, #tpu.memory_space<vmem>>, vector<4x128xf32>
    tpu.vector_store %arg12[%c0_135, %c0_136], %144 {strides = array<i32>} : memref<4x128xf32, #tpu.memory_space<vmem>>, vector<4x128xf32>,
    %c0_137 = arith.constant 0 : index
    %c0_138 = arith.constant 0 : index
    %146 = vector.load %arg12[%c0_137, %c0_138] : memref<4x128xf32, #tpu.memory_space<vmem>>, vector<1x128xf32>
    %cst_139 = arith.constant dense<0.000000e+00> : vector<1x50xf32>
    %147 = tpu.matmul %146, %21, %cst_139 {dimension_numbers = #tpu.dot_dimension_numbers<[1], [0], [0], [1], [0, 0, 1, 1], [], []>} : vector<1x128xf32>, vector<128x50xf32>, vector<1x50xf32> -> vector<1x50xf32>
    %c1_140 = arith.constant 1 : index
    %c0_141 = arith.constant 0 : index
    %148 = vector.load %arg12[%c1_140, %c0_141] : memref<4x128xf32, #tpu.memory_space<vmem>>, vector<1x128xf32>
    %cst_142 = arith.constant dense<0.000000e+00> : vector<1x50xf32>
    %149 = tpu.matmul %148, %23, %cst_142 {dimension_numbers = #tpu.dot_dimension_numbers<[1], [0], [0], [1], [0, 0, 1, 1], [], []>} : vector<1x128xf32>, vector<128x50xf32>, vector<1x50xf32> -> vector<1x50xf32>
    %150 = arith.addf %147, %149 : vector<1x50xf32>
    %c2_143 = arith.constant 2 : index
    %c0_144 = arith.constant 0 : index
    %151 = vector.load %arg12[%c2_143, %c0_144] : memref<4x128xf32, #tpu.memory_space<vmem>>, vector<1x128xf32>
    %cst_145 = arith.constant dense<0.000000e+00> : vector<1x50xf32>
    %152 = tpu.matmul %151, %25, %cst_145 {dimension_numbers = #tpu.dot_dimension_numbers<[1], [0], [0], [1], [0, 0, 1, 1], [], []>} : vector<1x128xf32>, vector<128x50xf32>, vector<1x50xf32> -> vector<1x50xf32>
    %153 = arith.addf %150, %152 : vector<1x50xf32>
    %c3_146 = arith.constant 3 : index
    %c0_147 = arith.constant 0 : index
    %154 = vector.load %arg12[%c3_146, %c0_147] : memref<4x128xf32, #tpu.memory_space<vmem>>, vector<1x128xf32>
    %cst_148 = arith.constant dense<0.000000e+00> : vector<1x50xf32>
    %155 = tpu.matmul %154, %27, %cst_148 {dimension_numbers = #tpu.dot_dimension_numbers<[1], [0], [0], [1], [0, 0, 1, 1], [], []>} : vector<1x128xf32>, vector<128x50xf32>, vector<1x50xf32> -> vector<1x50xf32>
    %156 = arith.addf %153, %155 : vector<1x50xf32>
    %157 = arith.addf %156, %30 : vector<1x50xf32>
    %cst_149 = arith.constant 0.000000e+00 : f32
    %158 = vector.broadcast %cst_149 : f32 to vector<1x50xf32>
    %159 = arith.maximumf %157, %158 : vector<1x50xf32>
    %cst_150 = arith.constant dense<0.000000e+00> : vector<1x10xf32>
    %160 = tpu.matmul %159, %31, %cst_150 {dimension_numbers = #tpu.dot_dimension_numbers<[1], [0], [0], [1], [0, 0, 1, 1], [], []>} : vector<1x50xf32>, vector<50x10xf32>, vector<1x10xf32> -> vector<1x10xf32>
    %161 = arith.addf %160, %32 : vector<1x10xf32>
    %cst_151 = arith.constant dense<0xFF800000> : vector<1xf32>
    %162 = vector.multi_reduction <maximumf>, %161, %cst_151 [1] : vector<1x10xf32> to vector<1xf32>
    %163 = vector.shape_cast %162 : vector<1xf32> to vector<1x1xf32>
    %164 = vector.broadcast %163 : vector<1x1xf32> to vector<1x10xf32>
    %165 = arith.subf %161, %164 : vector<1x10xf32>
    %166 = math.exp %165 : vector<1x10xf32>
    %cst_152 = arith.constant dense<0.000000e+00> : vector<1xf32>
    %167 = vector.multi_reduction <add>, %166, %cst_152 [1] : vector<1x10xf32> to vector<1xf32>
    %168 = vector.shape_cast %167 : vector<1xf32> to vector<1x1xf32>
    %169 = math.log %168 : vector<1x1xf32>
    %170 = vector.broadcast %169 : vector<1x1xf32> to vector<1x10xf32>
    %171 = arith.subf %165, %170 : vector<1x10xf32>
    %c0_153 = arith.constant 0 : index
    %c0_154 = arith.constant 0 : index
    %172 = vector.load %arg10[%c0_153, %c0_154] : memref<2x10xf32, #tpu.memory_space<vmem>>, vector<1x10xf32>
    tpu.vector_store %arg10[%c0_153, %c0_154], %171 {strides = array<i32>} : memref<2x10xf32, #tpu.memory_space<vmem>>, vector<1x10xf32>,
    %c1_155 = arith.constant 1 : index
    %c0_156 = arith.constant 0 : index
    %c0_157 = arith.constant 0 : index
    %c0_158 = arith.constant 0 : index
    %173 = vector.load %arg1[%c1_155, %c0_156, %c0_157, %c0_158] : memref<2x4x7x28xf32, #tpu.memory_space<vmem>>, vector<1x1x6x28xf32>
    %174 = vector.shape_cast %173 : vector<1x1x6x28xf32> to vector<6x28xf32>
    %c1_159 = arith.constant 1 : index
    %c1_160 = arith.constant 1 : index
    %c0_161 = arith.constant 0 : index
    %c0_162 = arith.constant 0 : index
    %175 = vector.load %arg1[%c1_159, %c1_160, %c0_161, %c0_162] : memref<2x4x7x28xf32, #tpu.memory_space<vmem>>, vector<1x1x6x28xf32>
    %176 = vector.shape_cast %175 : vector<1x1x6x28xf32> to vector<6x28xf32>
    %c1_163 = arith.constant 1 : index
    %c2_164 = arith.constant 2 : index
    %c0_165 = arith.constant 0 : index
    %c0_166 = arith.constant 0 : index
    %177 = vector.load %arg1[%c1_163, %c2_164, %c0_165, %c0_166] : memref<2x4x7x28xf32, #tpu.memory_space<vmem>>, vector<1x1x6x28xf32>
    %178 = vector.shape_cast %177 : vector<1x1x6x28xf32> to vector<6x28xf32>
    %c1_167 = arith.constant 1 : index
    %c3_168 = arith.constant 3 : index
    %c0_169 = arith.constant 0 : index
    %c0_170 = arith.constant 0 : index
    %179 = vector.load %arg1[%c1_167, %c3_168, %c0_169, %c0_170] : memref<2x4x7x28xf32, #tpu.memory_space<vmem>>, vector<1x1x6x28xf32>
    %180 = vector.shape_cast %179 : vector<1x1x6x28xf32> to vector<6x28xf32>
    %c1_171 = arith.constant 1 : index
    %c0_172 = arith.constant 0 : index
    %c1_173 = arith.constant 1 : index
    %c0_174 = arith.constant 0 : index
    %181 = vector.load %arg1[%c1_171, %c0_172, %c1_173, %c0_174] : memref<2x4x7x28xf32, #tpu.memory_space<vmem>>, vector<1x1x6x28xf32>
    %182 = vector.shape_cast %181 : vector<1x1x6x28xf32> to vector<6x28xf32>
    %c1_175 = arith.constant 1 : index
    %c1_176 = arith.constant 1 : index
    %c1_177 = arith.constant 1 : index
    %c0_178 = arith.constant 0 : index
    %183 = vector.load %arg1[%c1_175, %c1_176, %c1_177, %c0_178] : memref<2x4x7x28xf32, #tpu.memory_space<vmem>>, vector<1x1x6x28xf32>
    %184 = vector.shape_cast %183 : vector<1x1x6x28xf32> to vector<6x28xf32>
    %c1_179 = arith.constant 1 : index
    %c2_180 = arith.constant 2 : index
    %c1_181 = arith.constant 1 : index
    %c0_182 = arith.constant 0 : index
    %185 = vector.load %arg1[%c1_179, %c2_180, %c1_181, %c0_182] : memref<2x4x7x28xf32, #tpu.memory_space<vmem>>, vector<1x1x6x28xf32>
    %186 = vector.shape_cast %185 : vector<1x1x6x28xf32> to vector<6x28xf32>
    %c1_183 = arith.constant 1 : index
    %c3_184 = arith.constant 3 : index
    %c1_185 = arith.constant 1 : index
    %c0_186 = arith.constant 0 : index
    %187 = vector.load %arg1[%c1_183, %c3_184, %c1_185, %c0_186] : memref<2x4x7x28xf32, #tpu.memory_space<vmem>>, vector<1x1x6x28xf32>
    %188 = vector.shape_cast %187 : vector<1x1x6x28xf32> to vector<6x28xf32>
    %cst_187 = arith.constant dense<0.000000e+00> : vector<6x256xf32>
    %189 = tpu.matmul %174, %1, %cst_187 {dimension_numbers = #tpu.dot_dimension_numbers<[1], [0], [0], [1], [0, 0, 1, 1], [], []>} : vector<6x28xf32>, vector<28x256xf32>, vector<6x256xf32> -> vector<6x256xf32>
    %cst_188 = arith.constant dense<0.000000e+00> : vector<6x256xf32>
    %190 = tpu.matmul %176, %3, %cst_188 {dimension_numbers = #tpu.dot_dimension_numbers<[1], [0], [0], [1], [0, 0, 1, 1], [], []>} : vector<6x28xf32>, vector<28x256xf32>, vector<6x256xf32> -> vector<6x256xf32>
    %191 = arith.addf %189, %190 : vector<6x256xf32>
    %cst_189 = arith.constant dense<0.000000e+00> : vector<6x256xf32>
    %192 = tpu.matmul %178, %5, %cst_189 {dimension_numbers = #tpu.dot_dimension_numbers<[1], [0], [0], [1], [0, 0, 1, 1], [], []>} : vector<6x28xf32>, vector<28x256xf32>, vector<6x256xf32> -> vector<6x256xf32>
    %193 = arith.addf %191, %192 : vector<6x256xf32>
    %cst_190 = arith.constant dense<0.000000e+00> : vector<6x256xf32>
    %194 = tpu.matmul %180, %7, %cst_190 {dimension_numbers = #tpu.dot_dimension_numbers<[1], [0], [0], [1], [0, 0, 1, 1], [], []>} : vector<6x28xf32>, vector<28x256xf32>, vector<6x256xf32> -> vector<6x256xf32>
    %195 = arith.addf %193, %194 : vector<6x256xf32>
    %cst_191 = arith.constant dense<0.000000e+00> : vector<6x256xf32>
    %196 = tpu.matmul %182, %9, %cst_191 {dimension_numbers = #tpu.dot_dimension_numbers<[1], [0], [0], [1], [0, 0, 1, 1], [], []>} : vector<6x28xf32>, vector<28x256xf32>, vector<6x256xf32> -> vector<6x256xf32>
    %197 = arith.addf %195, %196 : vector<6x256xf32>
    %cst_192 = arith.constant dense<0.000000e+00> : vector<6x256xf32>
    %198 = tpu.matmul %176, %1, %cst_192 {dimension_numbers = #tpu.dot_dimension_numbers<[1], [0], [0], [1], [0, 0, 1, 1], [], []>} : vector<6x28xf32>, vector<28x256xf32>, vector<6x256xf32> -> vector<6x256xf32>
    %cst_193 = arith.constant dense<0.000000e+00> : vector<6x256xf32>
    %199 = tpu.matmul %178, %3, %cst_193 {dimension_numbers = #tpu.dot_dimension_numbers<[1], [0], [0], [1], [0, 0, 1, 1], [], []>} : vector<6x28xf32>, vector<28x256xf32>, vector<6x256xf32> -> vector<6x256xf32>
    %200 = arith.addf %198, %199 : vector<6x256xf32>
    %cst_194 = arith.constant dense<0.000000e+00> : vector<6x256xf32>
    %201 = tpu.matmul %180, %5, %cst_194 {dimension_numbers = #tpu.dot_dimension_numbers<[1], [0], [0], [1], [0, 0, 1, 1], [], []>} : vector<6x28xf32>, vector<28x256xf32>, vector<6x256xf32> -> vector<6x256xf32>
    %202 = arith.addf %200, %201 : vector<6x256xf32>
    %cst_195 = arith.constant dense<0.000000e+00> : vector<6x256xf32>
    %203 = tpu.matmul %182, %7, %cst_195 {dimension_numbers = #tpu.dot_dimension_numbers<[1], [0], [0], [1], [0, 0, 1, 1], [], []>} : vector<6x28xf32>, vector<28x256xf32>, vector<6x256xf32> -> vector<6x256xf32>
    %204 = arith.addf %202, %203 : vector<6x256xf32>
    %cst_196 = arith.constant dense<0.000000e+00> : vector<6x256xf32>
    %205 = tpu.matmul %184, %9, %cst_196 {dimension_numbers = #tpu.dot_dimension_numbers<[1], [0], [0], [1], [0, 0, 1, 1], [], []>} : vector<6x28xf32>, vector<28x256xf32>, vector<6x256xf32> -> vector<6x256xf32>
    %206 = arith.addf %204, %205 : vector<6x256xf32>
    %207 = arith.maximumf %197, %206 : vector<6x256xf32>
    %208 = vector.extract_strided_slice %207 {offsets = [0, 0], sizes = [6, 128], strides = [1, 1]} : vector<6x256xf32> to vector<6x128xf32>
    %209 = vector.extract_strided_slice %207 {offsets = [0, 128], sizes = [6, 128], strides = [1, 1]} : vector<6x256xf32> to vector<6x128xf32>
    %210 = arith.maximumf %208, %209 : vector<6x128xf32>
    %211 = vector.broadcast %28 : vector<1x128xf32> to vector<6x128xf32>
    %212 = arith.addf %210, %211 : vector<6x128xf32>
    %cst_197 = arith.constant 0.000000e+00 : f32
    %213 = vector.broadcast %cst_197 : f32 to vector<6x128xf32>
    %214 = arith.maximumf %212, %213 : vector<6x128xf32>
    %c0_198 = arith.constant 0 : index
    %c0_199 = arith.constant 0 : index
    %c0_200 = arith.constant 0 : index
    %215 = vector.load %arg11[%c0_198, %c0_199, %c0_200] : memref<2x6x128xf32, #tpu.memory_space<vmem>>, vector<1x6x128xf32>
    %216 = vector.shape_cast %215 : vector<1x6x128xf32> to vector<6x128xf32>
    %217 = vector.shape_cast %214 : vector<6x128xf32> to vector<1x6x128xf32>
    tpu.vector_store %arg11[%c0_198, %c0_199, %c0_200], %217 {strides = array<i32>} : memref<2x6x128xf32, #tpu.memory_space<vmem>>, vector<1x6x128xf32>,
    %cst_201 = arith.constant dense<0.000000e+00> : vector<6x256xf32>
    %218 = tpu.matmul %178, %1, %cst_201 {dimension_numbers = #tpu.dot_dimension_numbers<[1], [0], [0], [1], [0, 0, 1, 1], [], []>} : vector<6x28xf32>, vector<28x256xf32>, vector<6x256xf32> -> vector<6x256xf32>
    %cst_202 = arith.constant dense<0.000000e+00> : vector<6x256xf32>
    %219 = tpu.matmul %180, %3, %cst_202 {dimension_numbers = #tpu.dot_dimension_numbers<[1], [0], [0], [1], [0, 0, 1, 1], [], []>} : vector<6x28xf32>, vector<28x256xf32>, vector<6x256xf32> -> vector<6x256xf32>
    %220 = arith.addf %218, %219 : vector<6x256xf32>
    %cst_203 = arith.constant dense<0.000000e+00> : vector<6x256xf32>
    %221 = tpu.matmul %182, %5, %cst_203 {dimension_numbers = #tpu.dot_dimension_numbers<[1], [0], [0], [1], [0, 0, 1, 1], [], []>} : vector<6x28xf32>, vector<28x256xf32>, vector<6x256xf32> -> vector<6x256xf32>
    %222 = arith.addf %220, %221 : vector<6x256xf32>
    %cst_204 = arith.constant dense<0.000000e+00> : vector<6x256xf32>
    %223 = tpu.matmul %184, %7, %cst_204 {dimension_numbers = #tpu.dot_dimension_numbers<[1], [0], [0], [1], [0, 0, 1, 1], [], []>} : vector<6x28xf32>, vector<28x256xf32>, vector<6x256xf32> -> vector<6x256xf32>
    %224 = arith.addf %222, %223 : vector<6x256xf32>
    %cst_205 = arith.constant dense<0.000000e+00> : vector<6x256xf32>
    %225 = tpu.matmul %186, %9, %cst_205 {dimension_numbers = #tpu.dot_dimension_numbers<[1], [0], [0], [1], [0, 0, 1, 1], [], []>} : vector<6x28xf32>, vector<28x256xf32>, vector<6x256xf32> -> vector<6x256xf32>
    %226 = arith.addf %224, %225 : vector<6x256xf32>
    %cst_206 = arith.constant dense<0.000000e+00> : vector<6x256xf32>
    %227 = tpu.matmul %180, %1, %cst_206 {dimension_numbers = #tpu.dot_dimension_numbers<[1], [0], [0], [1], [0, 0, 1, 1], [], []>} : vector<6x28xf32>, vector<28x256xf32>, vector<6x256xf32> -> vector<6x256xf32>
    %cst_207 = arith.constant dense<0.000000e+00> : vector<6x256xf32>
    %228 = tpu.matmul %182, %3, %cst_207 {dimension_numbers = #tpu.dot_dimension_numbers<[1], [0], [0], [1], [0, 0, 1, 1], [], []>} : vector<6x28xf32>, vector<28x256xf32>, vector<6x256xf32> -> vector<6x256xf32>
    %229 = arith.addf %227, %228 : vector<6x256xf32>
    %cst_208 = arith.constant dense<0.000000e+00> : vector<6x256xf32>
    %230 = tpu.matmul %184, %5, %cst_208 {dimension_numbers = #tpu.dot_dimension_numbers<[1], [0], [0], [1], [0, 0, 1, 1], [], []>} : vector<6x28xf32>, vector<28x256xf32>, vector<6x256xf32> -> vector<6x256xf32>
    %231 = arith.addf %229, %230 : vector<6x256xf32>
    %cst_209 = arith.constant dense<0.000000e+00> : vector<6x256xf32>
    %232 = tpu.matmul %186, %7, %cst_209 {dimension_numbers = #tpu.dot_dimension_numbers<[1], [0], [0], [1], [0, 0, 1, 1], [], []>} : vector<6x28xf32>, vector<28x256xf32>, vector<6x256xf32> -> vector<6x256xf32>
    %233 = arith.addf %231, %232 : vector<6x256xf32>
    %cst_210 = arith.constant dense<0.000000e+00> : vector<6x256xf32>
    %234 = tpu.matmul %188, %9, %cst_210 {dimension_numbers = #tpu.dot_dimension_numbers<[1], [0], [0], [1], [0, 0, 1, 1], [], []>} : vector<6x28xf32>, vector<28x256xf32>, vector<6x256xf32> -> vector<6x256xf32>
    %235 = arith.addf %233, %234 : vector<6x256xf32>
    %236 = arith.maximumf %226, %235 : vector<6x256xf32>
    %237 = vector.extract_strided_slice %236 {offsets = [0, 0], sizes = [6, 128], strides = [1, 1]} : vector<6x256xf32> to vector<6x128xf32>
    %238 = vector.extract_strided_slice %236 {offsets = [0, 128], sizes = [6, 128], strides = [1, 1]} : vector<6x256xf32> to vector<6x128xf32>
    %239 = arith.maximumf %237, %238 : vector<6x128xf32>
    %240 = vector.broadcast %28 : vector<1x128xf32> to vector<6x128xf32>
    %241 = arith.addf %239, %240 : vector<6x128xf32>
    %cst_211 = arith.constant 0.000000e+00 : f32
    %242 = vector.broadcast %cst_211 : f32 to vector<6x128xf32>
    %243 = arith.maximumf %241, %242 : vector<6x128xf32>
    %c1_212 = arith.constant 1 : index
    %c0_213 = arith.constant 0 : index
    %c0_214 = arith.constant 0 : index
    %244 = vector.load %arg11[%c1_212, %c0_213, %c0_214] : memref<2x6x128xf32, #tpu.memory_space<vmem>>, vector<1x6x128xf32>
    %245 = vector.shape_cast %244 : vector<1x6x128xf32> to vector<6x128xf32>
    %246 = vector.shape_cast %243 : vector<6x128xf32> to vector<1x6x128xf32>
    tpu.vector_store %arg11[%c1_212, %c0_213, %c0_214], %246 {strides = array<i32>} : memref<2x6x128xf32, #tpu.memory_space<vmem>>, vector<1x6x128xf32>,
    %c0_215 = arith.constant 0 : index
    %c0_216 = arith.constant 0 : index
    %c0_217 = arith.constant 0 : index
    %247 = vector.load %arg11[%c0_215, %c0_216, %c0_217] : memref<2x6x128xf32, #tpu.memory_space<vmem>>, vector<1x4x128xf32>
    %248 = vector.shape_cast %247 : vector<1x4x128xf32> to vector<4x128xf32>
    %c1_218 = arith.constant 1 : index
    %c0_219 = arith.constant 0 : index
    %c0_220 = arith.constant 0 : index
    %249 = vector.load %arg11[%c1_218, %c0_219, %c0_220] : memref<2x6x128xf32, #tpu.memory_space<vmem>>, vector<1x4x128xf32>
    %250 = vector.shape_cast %249 : vector<1x4x128xf32> to vector<4x128xf32>
    %c0_221 = arith.constant 0 : index
    %c1_222 = arith.constant 1 : index
    %c0_223 = arith.constant 0 : index
    %251 = vector.load %arg11[%c0_221, %c1_222, %c0_223] : memref<2x6x128xf32, #tpu.memory_space<vmem>>, vector<1x4x128xf32>
    %252 = vector.shape_cast %251 : vector<1x4x128xf32> to vector<4x128xf32>
    %c1_224 = arith.constant 1 : index
    %c1_225 = arith.constant 1 : index
    %c0_226 = arith.constant 0 : index
    %253 = vector.load %arg11[%c1_224, %c1_225, %c0_226] : memref<2x6x128xf32, #tpu.memory_space<vmem>>, vector<1x4x128xf32>
    %254 = vector.shape_cast %253 : vector<1x4x128xf32> to vector<4x128xf32>
    %c0_227 = arith.constant 0 : index
    %c2_228 = arith.constant 2 : index
    %c0_229 = arith.constant 0 : index
    %255 = vector.load %arg11[%c0_227, %c2_228, %c0_229] : memref<2x6x128xf32, #tpu.memory_space<vmem>>, vector<1x4x128xf32>
    %256 = vector.shape_cast %255 : vector<1x4x128xf32> to vector<4x128xf32>
    %c1_230 = arith.constant 1 : index
    %c2_231 = arith.constant 2 : index
    %c0_232 = arith.constant 0 : index
    %257 = vector.load %arg11[%c1_230, %c2_231, %c0_232] : memref<2x6x128xf32, #tpu.memory_space<vmem>>, vector<1x4x128xf32>
    %258 = vector.shape_cast %257 : vector<1x4x128xf32> to vector<4x128xf32>
    %cst_233 = arith.constant dense<0.000000e+00> : vector<4x256xf32>
    %259 = tpu.matmul %248, %11, %cst_233 {dimension_numbers = #tpu.dot_dimension_numbers<[1], [0], [0], [1], [0, 0, 1, 1], [], []>} : vector<4x128xf32>, vector<128x256xf32>, vector<4x256xf32> -> vector<4x256xf32>
    %cst_234 = arith.constant dense<0.000000e+00> : vector<4x256xf32>
    %260 = tpu.matmul %250, %13, %cst_234 {dimension_numbers = #tpu.dot_dimension_numbers<[1], [0], [0], [1], [0, 0, 1, 1], [], []>} : vector<4x128xf32>, vector<128x256xf32>, vector<4x256xf32> -> vector<4x256xf32>
    %261 = arith.addf %259, %260 : vector<4x256xf32>
    %cst_235 = arith.constant dense<0.000000e+00> : vector<4x256xf32>
    %262 = tpu.matmul %252, %15, %cst_235 {dimension_numbers = #tpu.dot_dimension_numbers<[1], [0], [0], [1], [0, 0, 1, 1], [], []>} : vector<4x128xf32>, vector<128x256xf32>, vector<4x256xf32> -> vector<4x256xf32>
    %263 = arith.addf %261, %262 : vector<4x256xf32>
    %cst_236 = arith.constant dense<0.000000e+00> : vector<4x256xf32>
    %264 = tpu.matmul %254, %17, %cst_236 {dimension_numbers = #tpu.dot_dimension_numbers<[1], [0], [0], [1], [0, 0, 1, 1], [], []>} : vector<4x128xf32>, vector<128x256xf32>, vector<4x256xf32> -> vector<4x256xf32>
    %265 = arith.addf %263, %264 : vector<4x256xf32>
    %cst_237 = arith.constant dense<0.000000e+00> : vector<4x256xf32>
    %266 = tpu.matmul %256, %19, %cst_237 {dimension_numbers = #tpu.dot_dimension_numbers<[1], [0], [0], [1], [0, 0, 1, 1], [], []>} : vector<4x128xf32>, vector<128x256xf32>, vector<4x256xf32> -> vector<4x256xf32>
    %267 = arith.addf %265, %266 : vector<4x256xf32>
    %cst_238 = arith.constant dense<0.000000e+00> : vector<4x256xf32>
    %268 = tpu.matmul %250, %11, %cst_238 {dimension_numbers = #tpu.dot_dimension_numbers<[1], [0], [0], [1], [0, 0, 1, 1], [], []>} : vector<4x128xf32>, vector<128x256xf32>, vector<4x256xf32> -> vector<4x256xf32>
    %cst_239 = arith.constant dense<0.000000e+00> : vector<4x256xf32>
    %269 = tpu.matmul %252, %13, %cst_239 {dimension_numbers = #tpu.dot_dimension_numbers<[1], [0], [0], [1], [0, 0, 1, 1], [], []>} : vector<4x128xf32>, vector<128x256xf32>, vector<4x256xf32> -> vector<4x256xf32>
    %270 = arith.addf %268, %269 : vector<4x256xf32>
    %cst_240 = arith.constant dense<0.000000e+00> : vector<4x256xf32>
    %271 = tpu.matmul %254, %15, %cst_240 {dimension_numbers = #tpu.dot_dimension_numbers<[1], [0], [0], [1], [0, 0, 1, 1], [], []>} : vector<4x128xf32>, vector<128x256xf32>, vector<4x256xf32> -> vector<4x256xf32>
    %272 = arith.addf %270, %271 : vector<4x256xf32>
    %cst_241 = arith.constant dense<0.000000e+00> : vector<4x256xf32>
    %273 = tpu.matmul %256, %17, %cst_241 {dimension_numbers = #tpu.dot_dimension_numbers<[1], [0], [0], [1], [0, 0, 1, 1], [], []>} : vector<4x128xf32>, vector<128x256xf32>, vector<4x256xf32> -> vector<4x256xf32>
    %274 = arith.addf %272, %273 : vector<4x256xf32>
    %cst_242 = arith.constant dense<0.000000e+00> : vector<4x256xf32>
    %275 = tpu.matmul %258, %19, %cst_242 {dimension_numbers = #tpu.dot_dimension_numbers<[1], [0], [0], [1], [0, 0, 1, 1], [], []>} : vector<4x128xf32>, vector<128x256xf32>, vector<4x256xf32> -> vector<4x256xf32>
    %276 = arith.addf %274, %275 : vector<4x256xf32>
    %277 = arith.maximumf %267, %276 : vector<4x256xf32>
    %278 = vector.extract_strided_slice %277 {offsets = [0, 0], sizes = [4, 128], strides = [1, 1]} : vector<4x256xf32> to vector<4x128xf32>
    %279 = vector.extract_strided_slice %277 {offsets = [0, 128], sizes = [4, 128], strides = [1, 1]} : vector<4x256xf32> to vector<4x128xf32>
    %280 = arith.maximumf %278, %279 : vector<4x128xf32>
    %281 = vector.broadcast %29 : vector<1x128xf32> to vector<4x128xf32>
    %282 = arith.addf %280, %281 : vector<4x128xf32>
    %cst_243 = arith.constant 0.000000e+00 : f32
    %283 = vector.broadcast %cst_243 : f32 to vector<4x128xf32>
    %284 = arith.maximumf %282, %283 : vector<4x128xf32>
    %c0_244 = arith.constant 0 : index
    %c0_245 = arith.constant 0 : index
    %285 = vector.load %arg12[%c0_244, %c0_245] : memref<4x128xf32, #tpu.memory_space<vmem>>, vector<4x128xf32>
    tpu.vector_store %arg12[%c0_244, %c0_245], %284 {strides = array<i32>} : memref<4x128xf32, #tpu.memory_space<vmem>>, vector<4x128xf32>,
    %c0_246 = arith.constant 0 : index
    %c0_247 = arith.constant 0 : index
    %286 = vector.load %arg12[%c0_246, %c0_247] : memref<4x128xf32, #tpu.memory_space<vmem>>, vector<1x128xf32>
    %cst_248 = arith.constant dense<0.000000e+00> : vector<1x50xf32>
    %287 = tpu.matmul %286, %21, %cst_248 {dimension_numbers = #tpu.dot_dimension_numbers<[1], [0], [0], [1], [0, 0, 1, 1], [], []>} : vector<1x128xf32>, vector<128x50xf32>, vector<1x50xf32> -> vector<1x50xf32>
    %c1_249 = arith.constant 1 : index
    %c0_250 = arith.constant 0 : index
    %288 = vector.load %arg12[%c1_249, %c0_250] : memref<4x128xf32, #tpu.memory_space<vmem>>, vector<1x128xf32>
    %cst_251 = arith.constant dense<0.000000e+00> : vector<1x50xf32>
    %289 = tpu.matmul %288, %23, %cst_251 {dimension_numbers = #tpu.dot_dimension_numbers<[1], [0], [0], [1], [0, 0, 1, 1], [], []>} : vector<1x128xf32>, vector<128x50xf32>, vector<1x50xf32> -> vector<1x50xf32>
    %290 = arith.addf %287, %289 : vector<1x50xf32>
    %c2_252 = arith.constant 2 : index
    %c0_253 = arith.constant 0 : index
    %291 = vector.load %arg12[%c2_252, %c0_253] : memref<4x128xf32, #tpu.memory_space<vmem>>, vector<1x128xf32>
    %cst_254 = arith.constant dense<0.000000e+00> : vector<1x50xf32>
    %292 = tpu.matmul %291, %25, %cst_254 {dimension_numbers = #tpu.dot_dimension_numbers<[1], [0], [0], [1], [0, 0, 1, 1], [], []>} : vector<1x128xf32>, vector<128x50xf32>, vector<1x50xf32> -> vector<1x50xf32>
    %293 = arith.addf %290, %292 : vector<1x50xf32>
    %c3_255 = arith.constant 3 : index
    %c0_256 = arith.constant 0 : index
    %294 = vector.load %arg12[%c3_255, %c0_256] : memref<4x128xf32, #tpu.memory_space<vmem>>, vector<1x128xf32>
    %cst_257 = arith.constant dense<0.000000e+00> : vector<1x50xf32>
    %295 = tpu.matmul %294, %27, %cst_257 {dimension_numbers = #tpu.dot_dimension_numbers<[1], [0], [0], [1], [0, 0, 1, 1], [], []>} : vector<1x128xf32>, vector<128x50xf32>, vector<1x50xf32> -> vector<1x50xf32>
    %296 = arith.addf %293, %295 : vector<1x50xf32>
    %297 = arith.addf %296, %30 : vector<1x50xf32>
    %cst_258 = arith.constant 0.000000e+00 : f32
    %298 = vector.broadcast %cst_258 : f32 to vector<1x50xf32>
    %299 = arith.maximumf %297, %298 : vector<1x50xf32>
    %cst_259 = arith.constant dense<0.000000e+00> : vector<1x10xf32>
    %300 = tpu.matmul %299, %31, %cst_259 {dimension_numbers = #tpu.dot_dimension_numbers<[1], [0], [0], [1], [0, 0, 1, 1], [], []>} : vector<1x50xf32>, vector<50x10xf32>, vector<1x10xf32> -> vector<1x10xf32>
    %301 = arith.addf %300, %32 : vector<1x10xf32>
    %cst_260 = arith.constant dense<0xFF800000> : vector<1xf32>
    %302 = vector.multi_reduction <maximumf>, %301, %cst_260 [1] : vector<1x10xf32> to vector<1xf32>
    %303 = vector.shape_cast %302 : vector<1xf32> to vector<1x1xf32>
    %304 = vector.broadcast %303 : vector<1x1xf32> to vector<1x10xf32>
    %305 = arith.subf %301, %304 : vector<1x10xf32>
    %306 = math.exp %305 : vector<1x10xf32>
    %cst_261 = arith.constant dense<0.000000e+00> : vector<1xf32>
    %307 = vector.multi_reduction <add>, %306, %cst_261 [1] : vector<1x10xf32> to vector<1xf32>
    %308 = vector.shape_cast %307 : vector<1xf32> to vector<1x1xf32>
    %309 = math.log %308 : vector<1x1xf32>
    %310 = vector.broadcast %309 : vector<1x1xf32> to vector<1x10xf32>
    %311 = arith.subf %305, %310 : vector<1x10xf32>
    %c1_262 = arith.constant 1 : index
    %c0_263 = arith.constant 0 : index
    %312 = vector.load %arg10[%c1_262, %c0_263] : memref<2x10xf32, #tpu.memory_space<vmem>>, vector<1x10xf32>
    tpu.vector_store %arg10[%c1_262, %c0_263], %311 {strides = array<i32>} : memref<2x10xf32, #tpu.memory_space<vmem>>, vector<1x10xf32>,
    return
  }
  func.func @transform_0(%arg0: i32) -> (i32, i32, i32, i32) {
    %c0_i32 = arith.constant 0 : i32
    %c0_i32_0 = arith.constant 0 : i32
    %c0_i32_1 = arith.constant 0 : i32
    %c0_i32_2 = arith.constant 0 : i32
    return %arg0, %c0_i32, %c0_i32_0, %c0_i32_1 : i32, i32, i32, i32
  }
  func.func @transform_1(%arg0: i32) -> (i32, i32, i32) {
    %c0_i32 = arith.constant 0 : i32
    %c0_i32_0 = arith.constant 0 : i32
    %c0_i32_1 = arith.constant 0 : i32
    %c0_i32_2 = arith.constant 0 : i32
    return %c0_i32, %c0_i32_0, %c0_i32_1 : i32, i32, i32
  }
  func.func @transform_2(%arg0: i32) -> (i32, i32) {
    %c0_i32 = arith.constant 0 : i32
    %c0_i32_0 = arith.constant 0 : i32
    %c0_i32_1 = arith.constant 0 : i32
    return %c0_i32, %c0_i32_0 : i32, i32
  }
  func.func @transform_3(%arg0: i32) -> (i32, i32, i32) {
    %c0_i32 = arith.constant 0 : i32
    %c0_i32_0 = arith.constant 0 : i32
    %c0_i32_1 = arith.constant 0 : i32
    %c0_i32_2 = arith.constant 0 : i32
    return %c0_i32, %c0_i32_0, %c0_i32_1 : i32, i32, i32
  }
  func.func @transform_4(%arg0: i32) -> (i32, i32) {
    %c0_i32 = arith.constant 0 : i32
    %c0_i32_0 = arith.constant 0 : i32
    %c0_i32_1 = arith.constant 0 : i32
    return %c0_i32, %c0_i32_0 : i32, i32
  }
  func.func @transform_5(%arg0: i32) -> (i32, i32, i32) {
    %c0_i32 = arith.constant 0 : i32
    %c0_i32_0 = arith.constant 0 : i32
    %c0_i32_1 = arith.constant 0 : i32
    %c0_i32_2 = arith.constant 0 : i32
    return %c0_i32, %c0_i32_0, %c0_i32_1 : i32, i32, i32
  }
  func.func @transform_6(%arg0: i32) -> (i32, i32) {
    %c0_i32 = arith.constant 0 : i32
    %c0_i32_0 = arith.constant 0 : i32
    %c0_i32_1 = arith.constant 0 : i32
    return %c0_i32, %c0_i32_0 : i32, i32
  }
  func.func @transform_7(%arg0: i32) -> (i32, i32) {
    %c0_i32 = arith.constant 0 : i32
    %c0_i32_0 = arith.constant 0 : i32
    %c0_i32_1 = arith.constant 0 : i32
    return %c0_i32, %c0_i32_0 : i32, i32
  }
  func.func @transform_8(%arg0: i32) -> (i32, i32) {
    %c0_i32 = arith.constant 0 : i32
    %c0_i32_0 = arith.constant 0 : i32
    %c0_i32_1 = arith.constant 0 : i32
    return %c0_i32, %c0_i32_0 : i32, i32
  }
  func.func @transform_9(%arg0: i32) -> (i32, i32) {
    %c0_i32 = arith.constant 0 : i32
    %c0_i32_0 = arith.constant 0 : i32
    return %arg0, %c0_i32 : i32, i32
  }
}

</mosaic_0001>

<bundles_post_ra>
// kernel: forward.1
= control target key start
LH: loop header
LB: loop body
LE: loop exit
PB: predicated region body
PF: predicated region fallthrough
CT: control target
= control target key end

     0   :  { %14 = vsyncpa [#allocation5], 0  ;;  %s9625_s0 = inlined_call_operand.vmem [shape: f32[2,4,7,28], index: 0, kind: input, shape index: {}]   ;;  %s9626_s1 = inlined_call_operand.vmem [shape: f32[5,28,256], index: 1, kind: input, shape index: {}]   ;;  %s9627_s2 = inlined_call_operand.vmem [shape: f32[1,128], index: 2, kind: input, shape index: {}]   ;;  %s9628_s3 = inlined_call_operand.hbm [shape: f32[5,128,256], index: 3, kind: input, shape index: {}]   ;;  %s9629_s4 = inlined_call_operand.vmem [shape: f32[1,128], index: 4, kind: input, shape index: {}]   ;;  %s9630_s5 = inlined_call_operand.vmem [shape: f32[4,128,50], index: 5, kind: input, shape index: {}]   ;;  %s9631_s6 = inlined_call_operand.vmem [shape: f32[1,50], index: 6, kind: input, shape index: {}]   ;;  %s9632_s7 = inlined_call_operand.vmem [shape: f32[50,10], index: 7, kind: input, shape index: {}]   ;;  %s9633_s8 = inlined_call_operand.vmem [shape: f32[1,10], index: 8, kind: input, shape index: {}]   ;;  %s9634_s9 = inlined_call_operand.hbm [shape: f32[2,10], index: 9, kind: output, shape index: {}]  }
   0x1   :  { %15 = vsyncpa [#allocation6], 0  ;;  %s6617_s30 = smov [#allocation4]  }
   0x2   :  { %s27_s10 = sshll.u32 %s6617_s30, 4  ;;  %s28_s10 = int_to_ptr.vmem [resolvable:$true] %s27_s10 }
   0x3   :  { %s6581_s11 = scalar_lea.vmem %s28_s10, 20480  ;;  %p6586_p1 = scmp.lt.s32.totalorder %s28_s10, %s28_s10 }
   0x4   :  { %p6582_p0 = scmp.ne.s32.totalorder %s28_s10, %s6581_s11  ;;  %p6587_p2 = scmp.lt.s32.totalorder %s6581_s11, %s6581_s11 }
   0x6   :  { %p6588_p3 = por %p6587_p2, %p6586_p1 }
   0x8   :  { %p6589_p4 = pnand %p6588_p3, %p6582_p0 }
   0xa   :  { %6592 = shalt.err (!%p6589_p4)
}
   0xb   :  { %s6618_s12 = smov 256   ;;  %s6619_s13 = smov 16  }
   0xc   :  { %33 = dma.hbm_to_vmem [thread:$0]  %s9628_s3, 20480, %s28_s10, [#allocation5], %s6618_s12, %s6618_s12, %s6619_s13  }
   0xd   :  { %6613 = dma.done.wait [#allocation5], 20480  }
   0xe   :  { %6614 = vsyncadd [#allocation5], 4294946816  ;;  %v9635_v0 = vmov 0.0   ;;  %vm348_vm0 = vcmask 1043456   ;;  %v6681_v1 = vld [vmem:[%s9626_s1 + $0x78] sm:$0xf] }
   0xf   :  { %419 = vmatprep.mubr.f32.mxu1 %v9635_v0  ;;  %579 = vmatprep.mubr.f32.mxu0 %v9635_v0  ;;  %v6686_v2 = vld [vmem:[%s9626_s1 + $0x70] sm:$0xf]  ;;  %v6691_v3 = vld [vmem:[%s9626_s1 + $0x68] sm:$0xff]  ;;  %v6698_v4 = vld [vmem:[%s9626_s1 + $0x60] sm:$0xff]  ;;  %vm344_vm1 = vcmask 228352   ;;  %vm6621_vm2 = vmmov 0  }
  0x10   :  { %5684 = vmatprep.subr.msk.mxu1 %vm348_vm0, %v6681_v1  ;;  %v6705_v5 = vld [vmem:[%s9626_s1 + $0x58] sm:$0xff]  ;;  %v6711_v6 = vld [vmem:[%s9626_s1 + $0x50] sm:$0xff]  ;;  %v6722_v8 = vld [vmem:[%s9626_s1 + $0x48] sm:$0xff]  ;;  %vm2895_vm3 = vcmask 1041408   ;;  %vm2891_vm4 = vcmask 408576   ;;  %vm2969_vm5 = vcmask 73728  }
  0x11   :  { %5685 = vmatpush1.msk.msra.mxu1 %vm348_vm0, %v6686_v2  ;;  %v6716_v7 = vld [vmem:[%s9626_s1 + $0xb8] sm:$0xf]  ;;  %v6729_v9 = vld [vmem:[%s9626_s1 + $0xb0] sm:$0xf]  ;;  %v6734_v10 = vld [vmem:[%s9626_s1 + $0xa8] sm:$0xff] }
  0x12   :  { %381 = vmatprep.subr.mxu1 %v6691_v3  ;;  %5690 = vmatprep.subr.msk.mxu0 %vm348_vm0, %v6716_v7  ;;  %v6740_v11 = vld [vmem:[%s9626_s1 + $0x40] sm:$0xff]  ;;  %v6753_v13 = vld [vmem:[%s9625_s0 + $0x8] sm:$0x3f]  ;;  %v6758_v14 = vld [vmem:[%s9626_s1 + $0x38] sm:$0xf] }
  0x13   :  { %382 = vmatpush1.msra.mxu1 %v6698_v4  ;;  %5691 = vmatpush1.msk.msra.mxu0 %vm348_vm0, %v6729_v9  ;;  %v6747_v12 = vld [vmem:[%s9626_s1 + $0xa0] sm:$0xff]  ;;  %v6764_v15 = vld [vmem:[%s9626_s1 + $0x98] sm:$0xff]  ;;  %v6770_v16 = vld [vmem:[%s9626_s1 + $0x30] sm:$0xf] }
  0x14   :  { %383 = vmatprep.subr.mxu1 %v6705_v5  ;;  %541 = vmatprep.subr.mxu0 %v6734_v10  ;;  %v6776_v17 = vld [vmem:[%s9626_s1 + $0x90] sm:$0xff]  ;;  %v6782_v18 = vld [vmem:[%s9626_s1 + $0x28] sm:$0xff]  ;;  %v6797_v20 = vld [vmem:[%s9626_s1 + $0x20] sm:$0xff] }
  0x15   :  { %384 = vmatpush1.msra.mxu1 %v6711_v6  ;;  %542 = vmatpush1.msra.mxu0 %v6747_v12  ;;  %v6788_v19 = vld [vmem:[%s9626_s1 + $0x88] sm:$0xff]  ;;  %v6804_v21 = vld [vmem:[%s9626_s1 + $0x18] sm:$0xff]  ;;  %v6810_v22 = vld [vmem:[%s9626_s1 + $0x80] sm:$0xff] }
  0x16   :  { %385 = vmatprep.subr.mxu1 %v6722_v8  ;;  %543 = vmatprep.subr.mxu0 %v6764_v15  ;;  %v6816_v23 = vld [vmem:[%s9626_s1 + $0x10] sm:$0xff]  ;;  %v6822_v24 = vld [vmem:[%s9626_s1 + $0x138] sm:$0xf]  ;;  %v6828_v25 = vld [vmem:[%s9626_s1 + $0x8] sm:$0xff] }
  0x17   :  { %386 = vmatpush1.msra.mxu1 %v6740_v11  ;;  %544 = vmatpush1.msra.mxu0 %v6776_v17  ;;  %v6834_v26 = vld [vmem:[%s9625_s0 + $0x10] sm:$0x3f]  ;;  %v6840_v27 = vld [vmem:[%s9626_s1] sm:$0xff]  ;;  %v6855_v30 = vld [vmem:[%s9626_s1 + $0xf8] sm:$0xf] }
  0x18   :  { %5686 = vmatmul.mubr.msk.f32.vlgmr.msra.gmra.mxu1 %vm344_vm1, %v6753_v13  ;;  %5687 = vmatprep.subr.msk.mxu1 %vm348_vm0, %v6758_v14  ;;  %v6846_v28 = vld [vmem:[%s9626_s1 + $0x130] sm:$0xf]  ;;  %v333_v29 = vld [vmem:[%s9625_s0] sm:$0x3f]  ;;  %v6870_v32 = vld [vmem:[%s9626_s1 + $0x128] sm:$0xff] }
  0x19   :  { %5688 = vmatpush1.msk.msra.mxu1 %vm348_vm0, %v6770_v16  ;;  %545 = vmatprep.subr.mxu0 %v6788_v19  ;;  %v6865_v31 = vld [vmem:[%s9626_s1 + $0xf0] sm:$0xf]  ;;  %v6878_v33 = vld [vmem:[%s9626_s1 + $0xe8] sm:$0xff]  ;;  %v6883_v34 = vld [vmem:[%s9626_s1 + $0x120] sm:$0xff] }
  0x1a   :  { %461 = vmatprep.subr.mxu1 %v6782_v18  ;;  %499 = vmatprep.mubr.f32.mxu1 %v9635_v0  ;;  %v6891_v35 = vld [vmem:[%s9626_s1 + $0xe0] sm:$0xff]  ;;  %v6896_v36 = vld [vmem:[%s9626_s1 + $0x118] sm:$0xff]  ;;  %v6909_v38 = vld [vmem:[%s9626_s1 + $0x110] sm:$0xff] }
  0x1b   :  { %462 = vmatpush1.msra.mxu1 %v6797_v20  ;;  %546 = vmatpush1.msra.mxu0 %v6810_v22  ;;  %v6904_v37 = vld [vmem:[%s9626_s1 + $0xd8] sm:$0xff]  ;;  %v6916_v39 = vld [vmem:[%s9626_s1 + $0xd0] sm:$0xff]  ;;  %v6921_v40 = vld [vmem:[%s9626_s1 + $0x108] sm:$0xff] }
  0x1c   :  { %463 = vmatprep.subr.mxu1 %v6804_v21  ;;  %5696 = vmatprep.subr.msk.mxu0 %vm348_vm0, %v6822_v24  ;;  %v6928_v41 = vld [vmem:[%s9626_s1 + $0xc8] sm:$0xff]  ;;  %v6935_v42 = vld [vmem:[%s9626_s1 + $0xc0] sm:$0xff]  ;;  %v6947_v44 = vld [vmem:[%s9625_s0 + $0x18] sm:$0x3f] }
  0x1d   :  { %464 = vmatpush1.msra.mxu1 %v6816_v23  ;;  %5692 = vmatmul.mubr.msk.f32.vlgmr.msra.gmra.mxu0 %vm344_vm1, %v6834_v26  ;;  %v6940_v43 = vld [vmem:[%s9626_s1 + $0x100] sm:$0xff]  ;;  %v7035_v46 = vld [vmem:[%s9625_s0 + $0x9] sm:$0x3f]  ;;  %v5682_v47 = vld [vmem:[%s9625_s0 + $0x11] sm:$0x3f] }
  0x1e   :  { %465 = vmatprep.subr.mxu1 %v6828_v25  ;;  %5697 = vmatpush1.msk.msra.mxu0 %vm348_vm0, %v6846_v28  ;;  %v6956_v45 = vld [vmem:[%s9625_s0 + $0x1] sm:$0x3f]  ;;  %v5683_v48 = vld [vmem:[%s9625_s0 + $0x19] sm:$0x3f]  ;;  %v7167_v49 = vld [vmem:[#allocation4 + $0xf8] sm:$0xff] }
  0x1f   :  { %466 = vmatpush1.msra.mxu1 %v6840_v27  ;;  %705 = vmatprep.subr.mxu0 %v6870_v32  ;;  %9739 = vst [vmem:[#allocation10_spill] sm:$0xff] %v7167_v49  ;;  %v7169_v50 = vld [vmem:[#allocation4 + $0xf0] sm:$0xff]  ;;  %v7171_v51 = vld [vmem:[#allocation4 + $0xe8] sm:$0xff]  ;;  %v7177_v52 = vld [vmem:[#allocation4 + $0xe0] sm:$0xff] }
  0x20   :  { %5689 = vmatmul.mubr.msk.f32.vlgmr.msra.gmra.mxu1 %vm344_vm1, %v333_v29  ;;  %5693 = vmatprep.subr.msk.mxu1 %vm348_vm0, %v6855_v30  ;;  %9740 = vst [vmem:[#allocation11_spill] sm:$0xff] %v7169_v50  ;;  %9741 = vst [vmem:[#allocation12_spill] sm:$0xff] %v7171_v51  ;;  %v7179_v53 = vld [vmem:[#allocation4 + $0xd8] sm:$0xff]  ;;  %v7183_v54 = vld [vmem:[#allocation4 + $0xd0] sm:$0xff] }
  0x21   :  { %5694 = vmatpush1.msk.msra.mxu1 %vm348_vm0, %v6865_v31  ;;  %706 = vmatpush1.msra.mxu0 %v6883_v34  ;;  %9742 = vst [vmem:[#allocation13_spill] sm:$0xff] %v7177_v52  ;;  %9743 = vst [vmem:[#allocation14_spill] sm:$0xff] %v7179_v53  ;;  %v7185_v55 = vld [vmem:[#allocation4 + $0xc8] sm:$0xff]  ;;  %v7189_v56 = vld [vmem:[#allocation4 + $0xc0] sm:$0xff] }
  0x22   :  { %623 = vmatprep.subr.mxu1 %v6878_v33  ;;  %707 = vmatprep.subr.mxu0 %v6896_v36  ;;  %9744 = vst [vmem:[#allocation15_spill] sm:$0xff] %v7183_v54  ;;  %9745 = vst [vmem:[#allocation16_spill] sm:$0xff] %v7185_v55  ;;  %v7191_v57 = vld [vmem:[#allocation4 + $0xb8] sm:$0xff]  ;;  %v7193_v58 = vld [vmem:[#allocation4 + $0xb0] sm:$0xff] }
  0x23   :  { %624 = vmatpush1.msra.mxu1 %v6891_v35  ;;  %708 = vmatpush1.msra.mxu0 %v6909_v38  ;;  %9746 = vst [vmem:[#allocation17_spill] sm:$0xff] %v7189_v56  ;;  %9747 = vst [vmem:[#allocation18_spill] sm:$0xff] %v7191_v57  ;;  %v7196_v59 = vld [vmem:[#allocation4 + $0xa8] sm:$0xff]  ;;  %v7201_v60 = vld [vmem:[#allocation4 + $0xa0] sm:$0xff] }
  0x24   :  { %625 = vmatprep.subr.mxu1 %v6904_v37  ;;  %709 = vmatprep.subr.mxu0 %v6921_v40  ;;  %9748 = vst [vmem:[#allocation19_spill] sm:$0xff] %v7193_v58  ;;  %9749 = vst [vmem:[#allocation20_spill] sm:$0xff] %v7196_v59  ;;  %v7203_v61 = vld [vmem:[#allocation4 + $0x98] sm:$0xff]  ;;  %v7207_v62 = vld [vmem:[#allocation4 + $0x90] sm:$0xff] }
  0x25   :  { %626 = vmatpush1.msra.mxu1 %v6916_v39  ;;  %661 = vmatprep.mubr.f32.mxu1 %v9635_v0  ;;  %9750 = vst [vmem:[#allocation21_spill] sm:$0xff] %v7201_v60  ;;  %9751 = vst [vmem:[#allocation22_spill] sm:$0xff] %v7203_v61  ;;  %v7210_v63 = vld [vmem:[#allocation4 + $0x88] sm:$0xff] }
  0x26   :  { %627 = vmatprep.subr.mxu1 %v6928_v41  ;;  %710 = vmatpush1.msra.mxu0 %v6940_v43  ;;  %9752 = vst [vmem:[#allocation23_spill] sm:$0xff] %v7207_v62  ;;  %9753 = vst [vmem:[#allocation24_spill] sm:$0xff] %v7210_v63  ;;  %v7297_v29 = vld [vmem:[#allocation4 + $0x1a8] sm:$0xff] }
  0x27   :  { %628 = vmatpush1.msra.mxu1 %v6935_v42  ;;  %743 = vmatprep.mubr.f32.mxu0 %v9635_v0 }
  0x28   :  { %5695 = vmatmul.mubr.msk.f32.vlgmr.msra.gmra.mxu1 %vm344_vm1, %v6947_v44  ;;  %5699 = vmatprep.subr.msk.mxu1 %vm348_vm0, %v6681_v1 }
  0x29   :  { %5702 = vmatprep.subr.msk.mxu0 %vm348_vm0, %v6758_v14  ;;  %5698 = vmatmul.mubr.msk.f32.vlgmr.msra.gmra.mxu0 %vm344_vm1, %v6956_v45 }
  0x2a   :  { %5700 = vmatpush1.msk.msra.mxu1 %vm348_vm0, %v6686_v2  ;;  %5703 = vmatpush1.msk.msra.mxu0 %vm348_vm0, %v6770_v16 }
  0x2b   :  { %778 = vmatprep.subr.mxu1 %v6691_v3  ;;  %849 = vmatprep.subr.mxu0 %v6782_v18 }
  0x2c   :  { %779 = vmatpush1.msra.mxu1 %v6698_v4  ;;  %850 = vmatpush1.msra.mxu0 %v6797_v20 }
  0x2d   :  { %780 = vmatprep.subr.mxu1 %v6705_v5  ;;  %851 = vmatprep.subr.mxu0 %v6804_v21 }
  0x2e   :  { %781 = vmatpush1.msra.mxu1 %v6711_v6  ;;  %852 = vmatpush1.msra.mxu0 %v6816_v23 }
  0x2f   :  { %782 = vmatprep.subr.mxu1 %v6722_v8  ;;  %853 = vmatprep.subr.mxu0 %v6828_v25 }
  0x30   :  { %783 = vmatpush1.msra.mxu1 %v6740_v11  ;;  %816 = vmatprep.mubr.f32.mxu1 %v9635_v0 }
  0x31   :  { %854 = vmatpush1.msra.mxu0 %v6840_v27  ;;  %887 = vmatprep.mubr.f32.mxu0 %v9635_v0 }
  0x32   :  { %5701 = vmatmul.mubr.msk.f32.vlgmr.msra.gmra.mxu1 %vm344_vm1, %v6834_v26  ;;  %5704 = vmatmul.mubr.msk.f32.vlgmr.msra.gmra.mxu0 %vm344_vm1, %v6753_v13  ;;  %v7247_v13 = vld [vmem:[#allocation4 + $0x20] sm:$0xff] }
  0x33   :  { %5705 = vmatprep.subr.msk.mxu1 %vm348_vm0, %v6716_v7  ;;  %5708 = vmatprep.subr.msk.mxu0 %vm348_vm0, %v6855_v30  ;;  %9766 = vst [vmem:[#allocation37_spill] sm:$0xff] %v7247_v13 }
  0x34   :  { %5706 = vmatpush1.msk.msra.mxu1 %vm348_vm0, %v6729_v9  ;;  %5709 = vmatpush1.msk.msra.mxu0 %vm348_vm0, %v6865_v31 }
  0x35   :  { %920 = vmatprep.subr.mxu1 %v6734_v10  ;;  %993 = vmatprep.subr.mxu0 %v6878_v33 }
  0x36   :  { %921 = vmatpush1.msra.mxu1 %v6747_v12  ;;  %994 = vmatpush1.msra.mxu0 %v6891_v35 }
  0x37   :  { %922 = vmatprep.subr.mxu1 %v6764_v15  ;;  %995 = vmatprep.subr.mxu0 %v6904_v37 }
  0x38   :  { %923 = vmatpush1.msra.mxu1 %v6776_v17  ;;  %996 = vmatpush1.msra.mxu0 %v6916_v39 }
  0x39   :  { %924 = vmatprep.subr.mxu1 %v6788_v19  ;;  %997 = vmatprep.subr.mxu0 %v6928_v41 }
  0x3a   :  { %925 = vmatpush1.msra.mxu1 %v6810_v22  ;;  %958 = vmatprep.mubr.f32.mxu1 %v9635_v0 }
  0x3b   :  { %998 = vmatpush1.msra.mxu0 %v6935_v42  ;;  %5707 = vmatmul.mubr.msk.f32.vlgmr.msra.gmra.mxu1 %vm344_vm1, %v6947_v44 }
  0x3c   :  { %1031 = vmatprep.mubr.f32.mxu0 %v9635_v0  ;;  %5711 = vmatprep.subr.msk.mxu1 %vm348_vm0, %v6822_v24 }
  0x3d   :  { %5715 = vmatprep.subr.msk.mxu0 %vm348_vm0, %v6681_v1  ;;  %5710 = vmatmul.mubr.msk.f32.vlgmr.msra.gmra.mxu0 %vm344_vm1, %v6956_v45 }
  0x3e   :  { %5712 = vmatpush1.msk.msra.mxu1 %vm348_vm0, %v6846_v28  ;;  %5716 = vmatpush1.msk.msra.mxu0 %vm348_vm0, %v6686_v2 }
  0x3f   :  { %1069 = vmatprep.subr.mxu1 %v6870_v32  ;;  %1154 = vmatprep.subr.mxu0 %v6691_v3 }
  0x40   :  { %1070 = vmatpush1.msra.mxu1 %v6883_v34  ;;  %1155 = vmatpush1.msra.mxu0 %v6698_v4 }
  0x41   :  { %1071 = vmatprep.subr.mxu1 %v6896_v36  ;;  %1156 = vmatprep.subr.mxu0 %v6705_v5 }
  0x42   :  { %1072 = vmatpush1.msra.mxu1 %v6909_v38  ;;  %1157 = vmatpush1.msra.mxu0 %v6711_v6 }
  0x43   :  { %1073 = vmatprep.subr.mxu1 %v6921_v40  ;;  %1158 = vmatprep.subr.mxu0 %v6722_v8 }
  0x44   :  { %1074 = vmatpush1.msra.mxu1 %v6940_v43  ;;  %1107 = vmatprep.mubr.f32.mxu1 %v9635_v0 }
  0x45   :  { %1159 = vmatpush1.msra.mxu0 %v6740_v11  ;;  %5713 = vmatmul.mubr.msk.f32.vlgmr.msra.gmra.mxu1 %vm344_vm1, %v7035_v46 }
  0x46   :  { %1192 = vmatprep.mubr.f32.mxu0 %v9635_v0  ;;  %5718 = vmatprep.subr.msk.mxu1 %vm348_vm0, %v6758_v14 }
  0x47   :  { %5721 = vmatprep.subr.msk.mxu0 %vm348_vm0, %v6716_v7  ;;  %5717 = vmatmul.mubr.msk.f32.vlgmr.msra.gmra.mxu0 %vm344_vm1, %v6947_v44 }
  0x48   :  { %5719 = vmatpush1.msk.msra.mxu1 %vm348_vm0, %v6770_v16  ;;  %5722 = vmatpush1.msk.msra.mxu0 %vm348_vm0, %v6729_v9 }
  0x49   :  { %1225 = vmatprep.subr.mxu1 %v6782_v18  ;;  %1296 = vmatprep.subr.mxu0 %v6734_v10 }
  0x4a   :  { %1226 = vmatpush1.msra.mxu1 %v6797_v20  ;;  %1297 = vmatpush1.msra.mxu0 %v6747_v12 }
  0x4b   :  { %1227 = vmatprep.subr.mxu1 %v6804_v21  ;;  %1298 = vmatprep.subr.mxu0 %v6764_v15 }
  0x4c   :  { %1228 = vmatpush1.msra.mxu1 %v6816_v23  ;;  %1299 = vmatpush1.msra.mxu0 %v6776_v17 }
  0x4d   :  { %1229 = vmatprep.subr.mxu1 %v6828_v25  ;;  %1300 = vmatprep.subr.mxu0 %v6788_v19 }
  0x4e   :  { %1230 = vmatpush1.msra.mxu1 %v6840_v27  ;;  %1263 = vmatprep.mubr.f32.mxu1 %v9635_v0 }
  0x4f   :  { %1301 = vmatpush1.msra.mxu0 %v6810_v22  ;;  %5720 = vmatmul.mubr.msk.f32.vlgmr.msra.gmra.mxu1 %vm344_vm1, %v6834_v26  ;;  %v7288_v26 = vld [vmem:[#allocation4 + $0x1c0] sm:$0xff] }
  0x50   :  { %1334 = vmatprep.mubr.f32.mxu0 %v9635_v0  ;;  %5724 = vmatprep.subr.msk.mxu1 %vm348_vm0, %v6855_v30 }
  0x51   :  { %5727 = vmatprep.subr.msk.mxu0 %vm348_vm0, %v6822_v24  ;;  %5723 = vmatmul.mubr.msk.f32.vlgmr.msra.gmra.mxu0 %vm344_vm1, %v6956_v45 }
  0x52   :  { %5725 = vmatpush1.msk.msra.mxu1 %vm348_vm0, %v6865_v31  ;;  %5728 = vmatpush1.msk.msra.mxu0 %vm348_vm0, %v6846_v28 }
  0x53   :  { %1369 = vmatprep.subr.mxu1 %v6878_v33  ;;  %1445 = vmatprep.subr.mxu0 %v6870_v32 }
  0x54   :  { %1370 = vmatpush1.msra.mxu1 %v6891_v35  ;;  %1446 = vmatpush1.msra.mxu0 %v6883_v34 }
  0x55   :  { %1371 = vmatprep.subr.mxu1 %v6904_v37  ;;  %1447 = vmatprep.subr.mxu0 %v6896_v36 }
  0x56   :  { %1372 = vmatpush1.msra.mxu1 %v6916_v39  ;;  %1448 = vmatpush1.msra.mxu0 %v6909_v38 }
  0x57   :  { %1373 = vmatprep.subr.mxu1 %v6928_v41  ;;  %1449 = vmatprep.subr.mxu0 %v6921_v40 }
  0x58   :  { %1374 = vmatpush1.msra.mxu1 %v6935_v42  ;;  %1407 = vmatprep.mubr.f32.mxu1 %v9635_v0 }
  0x59   :  { %1450 = vmatpush1.msra.mxu0 %v6940_v43  ;;  %5726 = vmatmul.mubr.msk.f32.vlgmr.msra.gmra.mxu1 %vm344_vm1, %v7035_v46 }
  0x5a   :  { %1483 = vmatprep.mubr.f32.mxu0 %v9635_v0  ;;  %5730 = vmatprep.subr.msk.mxu1 %vm348_vm0, %v6681_v1  ;;  %v7213_v1 = vld [vmem:[#allocation4 + $0x80] sm:$0xff] }
  0x5b   :  { %5733 = vmatprep.subr.msk.mxu0 %vm348_vm0, %v6758_v14  ;;  %5729 = vmatmul.mubr.msk.f32.vlgmr.msra.gmra.mxu0 %vm344_vm1, %v5682_v47  ;;  %9754 = vst [vmem:[#allocation25_spill] sm:$0xff] %v7213_v1  ;;  %v7250_v14 = vld [vmem:[#allocation4 + $0x18] sm:$0xff] }
  0x5c   :  { %5731 = vmatpush1.msk.msra.mxu1 %vm348_vm0, %v6686_v2  ;;  %5734 = vmatpush1.msk.msra.mxu0 %vm348_vm0, %v6770_v16  ;;  %v7216_v2 = vld [vmem:[#allocation4 + $0x78] sm:$0xff]  ;;  %9767 = vst [vmem:[#allocation38_spill] sm:$0xff] %v7250_v14  ;;  %v7256_v16 = vld [vmem:[#allocation4 + $0x8] sm:$0xff] }
  0x5d   :  { %1518 = vmatprep.subr.mxu1 %v6691_v3  ;;  %1589 = vmatprep.subr.mxu0 %v6782_v18  ;;  %9755 = vst [vmem:[#allocation26_spill] sm:$0xff] %v7216_v2  ;;  %v7219_v3 = vld [vmem:[#allocation4 + $0x70] sm:$0xff]  ;;  %9769 = vst [vmem:[#allocation40_spill] sm:$0xff] %v7256_v16  ;;  %v7264_v18 = vld [vmem:[#allocation4 + $0x1f8] sm:$0xff] }
  0x5e   :  { %1519 = vmatpush1.msra.mxu1 %v6698_v4  ;;  %1590 = vmatpush1.msra.mxu0 %v6797_v20  ;;  %9756 = vst [vmem:[#allocation27_spill] sm:$0xff] %v7219_v3  ;;  %v7221_v4 = vld [vmem:[#allocation4 + $0x68] sm:$0xff]  ;;  %v7268_v20 = vld [vmem:[#allocation4 + $0x1f0] sm:$0xff] }
  0x5f   :  { %1520 = vmatprep.subr.mxu1 %v6705_v5  ;;  %1591 = vmatprep.subr.mxu0 %v6804_v21  ;;  %9757 = vst [vmem:[#allocation28_spill] sm:$0xff] %v7221_v4  ;;  %v7223_v5 = vld [vmem:[#allocation4 + $0x60] sm:$0xff]  ;;  %v7272_v21 = vld [vmem:[#allocation4 + $0x1e8] sm:$0xff] }
  0x60   :  { %1521 = vmatpush1.msra.mxu1 %v6711_v6  ;;  %1592 = vmatpush1.msra.mxu0 %v6816_v23  ;;  %9758 = vst [vmem:[#allocation29_spill] sm:$0xff] %v7223_v5  ;;  %v7226_v6 = vld [vmem:[#allocation4 + $0x58] sm:$0xff] }
  0x61   :  { %1522 = vmatprep.subr.mxu1 %v6722_v8  ;;  %1593 = vmatprep.subr.mxu0 %v6828_v25  ;;  %9759 = vst [vmem:[#allocation30_spill] sm:$0xff] %v7226_v6  ;;  %v7232_v8 = vld [vmem:[#allocation4 + $0x48] sm:$0xff]  ;;  %v7279_v23 = vld [vmem:[#allocation4 + $0x1d8] sm:$0xff] }
  0x62   :  { %1523 = vmatpush1.msra.mxu1 %v6740_v11  ;;  %1556 = vmatprep.mubr.f32.mxu1 %v9635_v0  ;;  %9761 = vst [vmem:[#allocation32_spill] sm:$0xff] %v7232_v8  ;;  %v7241_v11 = vld [vmem:[#allocation4 + $0x30] sm:$0xff]  ;;  %v7285_v25 = vld [vmem:[#allocation4 + $0x1c8] sm:$0xff] }
  0x63   :  { %1594 = vmatpush1.msra.mxu0 %v6840_v27  ;;  %1627 = vmatprep.mubr.f32.mxu0 %v9635_v0  ;;  %9764 = vst [vmem:[#allocation35_spill] sm:$0xff] %v7241_v11  ;;  %v7291_v27 = vld [vmem:[#allocation4 + $0x1b8] sm:$0xff] }
  0x64   :  { %5732 = vmatmul.mubr.msk.f32.vlgmr.msra.gmra.mxu1 %vm344_vm1, %v6956_v45  ;;  %5735 = vmatmul.mubr.msk.f32.vlgmr.msra.gmra.mxu0 %vm344_vm1, %v6947_v44  ;;  %v7342_v44 = vld [vmem:[#allocation4 + $0x130] sm:$0xff]  ;;  %v7345_v45 = vld [vmem:[#allocation4 + $0x128] sm:$0xff] }
  0x65   :  { %5736 = vmatprep.subr.msk.mxu1 %vm348_vm0, %v6716_v7  ;;  %5739 = vmatprep.subr.msk.mxu0 %vm348_vm0, %v6855_v30  ;;  %v7229_v7 = vld [vmem:[#allocation4 + $0x50] sm:$0xff]  ;;  %v7299_v30 = vld [vmem:[#allocation4 + $0x1a0] sm:$0xff] }
  0x66   :  { %5737 = vmatpush1.msk.msra.mxu1 %vm348_vm0, %v6729_v9  ;;  %5740 = vmatpush1.msk.msra.mxu0 %vm348_vm0, %v6865_v31  ;;  %9760 = vst [vmem:[#allocation31_spill] sm:$0xff] %v7229_v7  ;;  %v7235_v9 = vld [vmem:[#allocation4 + $0x40] sm:$0xff]  ;;  %v7303_v31 = vld [vmem:[#allocation4 + $0x198] sm:$0xff] }
  0x67   :  { %1660 = vmatprep.subr.mxu1 %v6734_v10  ;;  %1733 = vmatprep.subr.mxu0 %v6878_v33  ;;  %9762 = vst [vmem:[#allocation33_spill] sm:$0xff] %v7235_v9  ;;  %v7238_v10 = vld [vmem:[#allocation4 + $0x38] sm:$0xff]  ;;  %v7309_v33 = vld [vmem:[#allocation4 + $0x188] sm:$0xff] }
  0x68   :  { %1661 = vmatpush1.msra.mxu1 %v6747_v12  ;;  %1734 = vmatpush1.msra.mxu0 %v6891_v35  ;;  %9763 = vst [vmem:[#allocation34_spill] sm:$0xff] %v7238_v10  ;;  %v7244_v12 = vld [vmem:[#allocation4 + $0x28] sm:$0xff]  ;;  %v7315_v35 = vld [vmem:[#allocation4 + $0x178] sm:$0xff] }
  0x69   :  { %1662 = vmatprep.subr.mxu1 %v6764_v15  ;;  %1735 = vmatprep.subr.mxu0 %v6904_v37  ;;  %9765 = vst [vmem:[#allocation36_spill] sm:$0xff] %v7244_v12  ;;  %v7253_v15 = vld [vmem:[#allocation4 + $0x10] sm:$0xff]  ;;  %v7321_v37 = vld [vmem:[#allocation4 + $0x168] sm:$0xff] }
  0x6a   :  { %1663 = vmatpush1.msra.mxu1 %v6776_v17  ;;  %1698 = vmatprep.mubr.f32.mxu1 %v9635_v0  ;;  %9768 = vst [vmem:[#allocation39_spill] sm:$0xff] %v7253_v15  ;;  %v7259_v17 = vld [vmem:[#allocation4] sm:$0xff] }
  0x6b   :  { %1664 = vmatprep.subr.mxu1 %v6788_v19  ;;  %1736 = vmatpush1.msra.mxu0 %v6916_v39  ;;  %9770 = vst [vmem:[#allocation41_spill] sm:$0xff] %v7259_v17  ;;  %v7266_v19 = vld [vmem:[#allocation4 + $0x3f8] sm:$0xff] }
  0x6c   :  { %1665 = vmatpush1.msra.mxu1 %v6810_v22  ;;  %1737 = vmatprep.subr.mxu0 %v6928_v41  ;;  %9771 = vst [vmem:[#allocation42_spill] sm:$0xff] %v7266_v19  ;;  %v7275_v22 = vld [vmem:[#allocation4 + $0x1e0] sm:$0xff]  ;;  %v7327_v39 = vld [vmem:[#allocation4 + $0x158] sm:$0xff]  ;;  %v7333_v41 = vld [vmem:[#allocation4 + $0x148] sm:$0xff] }
  0x6d   :  { %5738 = vmatmul.mubr.msk.f32.vlgmr.msra.gmra.mxu1 %vm344_vm1, %v7035_v46  ;;  %5742 = vmatprep.subr.msk.mxu1 %vm348_vm0, %v6822_v24  ;;  %v7282_v24 = vld [vmem:[#allocation4 + $0x1d0] sm:$0xff]  ;;  %v7347_v46 = vld [vmem:[#allocation4 + $0x120] sm:$0xff] }
  0x6e   :  { %1738 = vmatpush1.msra.mxu0 %v6935_v42  ;;  %1771 = vmatprep.mubr.f32.mxu0 %v9635_v0  ;;  %v7336_v42 = vld [vmem:[#allocation4 + $0x140] sm:$0xff] }
  0x6f   :  { %5743 = vmatpush1.msk.msra.mxu1 %vm348_vm0, %v6846_v28  ;;  %5741 = vmatmul.mubr.msk.f32.vlgmr.msra.gmra.mxu0 %vm344_vm1, %v5682_v47  ;;  %v7294_v28 = vld [vmem:[#allocation4 + $0x1b0] sm:$0xff]  ;;  %v7350_v47 = vld [vmem:[#allocation4 + $0x118] sm:$0xff] }
  0x70   :  { %1809 = vmatprep.subr.mxu1 %v6870_v32  ;;  %1847 = vmatprep.mubr.f32.mxu1 %v9635_v0  ;;  %v7306_v32 = vld [vmem:[#allocation4 + $0x190] sm:$0xff] }
  0x71   :  { %1810 = vmatpush1.msra.mxu1 %v6883_v34  ;;  %1933 = vmatprep.mubr.f32.mxu0 %v9635_v0  ;;  %v7312_v34 = vld [vmem:[#allocation4 + $0x180] sm:$0xff] }
  0x72   :  { %1811 = vmatprep.subr.mxu1 %v6896_v36  ;;  %1869 = vmatprep.subr.mxu0 %v7264_v18  ;;  %v7318_v36 = vld [vmem:[#allocation4 + $0x170] sm:$0xff] }
  0x73   :  { %1812 = vmatpush1.msra.mxu1 %v6909_v38  ;;  %1870 = vmatpush1.msra.mxu0 %v7268_v20  ;;  %v7324_v38 = vld [vmem:[#allocation4 + $0x160] sm:$0xff] }
  0x74   :  { %1813 = vmatprep.subr.mxu1 %v6921_v40  ;;  %1871 = vmatprep.subr.mxu0 %v7272_v21  ;;  %v7330_v40 = vld [vmem:[#allocation4 + $0x150] sm:$0xff] }
  0x75   :  { %1814 = vmatpush1.msra.mxu1 %v6940_v43  ;;  %1872 = vmatpush1.msra.mxu0 %v7275_v22  ;;  %v7339_v43 = vld [vmem:[#allocation4 + $0x138] sm:$0xff] }
  0x76   :  { %5744 = vmatmul.mubr.msk.f32.vlgmr.msra.gmra.mxu1 %vm344_vm1, %v5683_v48  ;;  %1940 = vmatprep.subr.mxu1 %v7167_v49  ;;  %v7353_v48 = vld [vmem:[#allocation4 + $0x110] sm:$0xff] }
  0x77   :  { %2004 = vmatprep.mubr.f32.mxu1 %v9635_v0  ;;  %1941 = vmatpush1.msra.mxu1 %v7169_v50  ;;  %9772 = vst [vmem:[#allocation43_spill] sm:$0xff] %v7353_v48  ;;  %v7355_v0 = vld [vmem:[#allocation4 + $0x108] sm:$0xff] }
  0x78   :  { %1942 = vmatprep.subr.mxu1 %v7171_v51  ;;  %1873 = vmatprep.subr.mxu0 %v7279_v23  ;;  %9773 = vst [vmem:[#allocation44_spill] sm:$0xff] %v7355_v0 }
  0x79   :  { %1943 = vmatpush1.msra.mxu1 %v7177_v52  ;;  %1874 = vmatpush1.msra.mxu0 %v7282_v24 }
  0x7a   :  { %1944 = vmatprep.subr.mxu1 %v7179_v53  ;;  %1875 = vmatprep.subr.mxu0 %v7285_v25 }
  0x7b   :  { %1945 = vmatpush1.msra.mxu1 %v7183_v54  ;;  %1876 = vmatpush1.msra.mxu0 %v7288_v26 }
  0x7c   :  { %1946 = vmatprep.subr.mxu1 %v7185_v55  ;;  %1877 = vmatprep.subr.mxu0 %v7291_v27 }
  0x7d   :  { %1947 = vmatpush1.msra.mxu1 %v7189_v56  ;;  %1878 = vmatpush1.msra.mxu0 %v7294_v28 }
  0x7e   :  { %1948 = vmatprep.subr.mxu1 %v7191_v57  ;;  %1879 = vmatprep.subr.mxu0 %v7297_v29 }
  0x7f   :  { %1949 = vmatpush1.msra.mxu1 %v7193_v58  ;;  %1880 = vmatpush1.msra.mxu0 %v7299_v30 }
  0x80   :  { %1950 = vmatprep.subr.mxu1 %v7196_v59  ;;  %1881 = vmatprep.subr.mxu0 %v7303_v31 }
  0x81   :  { %1951 = vmatpush1.msra.mxu1 %v7201_v60  ;;  %1882 = vmatpush1.msra.mxu0 %v7306_v32 }
  0x82   :  { %1952 = vmatprep.subr.mxu1 %v7203_v61  ;;  %1883 = vmatprep.subr.mxu0 %v7309_v33 }
  0x83   :  { %1953 = vmatpush1.msra.mxu1 %v7207_v62  ;;  %1884 = vmatpush1.msra.mxu0 %v7312_v34 }
  0x84   :  { %1954 = vmatprep.subr.mxu1 %v7210_v63  ;;  %1885 = vmatprep.subr.mxu0 %v7315_v35 }
  0x85   :  { %1955 = vmatpush1.msra.mxu1 %v7213_v1  ;;  %1886 = vmatpush1.msra.mxu0 %v7318_v36 }
  0x86   :  { %1956 = vmatprep.subr.mxu1 %v7216_v2  ;;  %1887 = vmatprep.subr.mxu0 %v7321_v37 }
  0x87   :  { %1957 = vmatpush1.msra.mxu1 %v7219_v3  ;;  %1888 = vmatpush1.msra.mxu0 %v7324_v38 }
  0x88   :  { %1958 = vmatprep.subr.mxu1 %v7221_v4  ;;  %1889 = vmatprep.subr.mxu0 %v7327_v39 }
  0x89   :  { %1959 = vmatpush1.msra.mxu1 %v7223_v5  ;;  %1890 = vmatpush1.msra.mxu0 %v7330_v40 }
  0x8a   :  { %1960 = vmatprep.subr.mxu1 %v7226_v6  ;;  %1891 = vmatprep.subr.mxu0 %v7333_v41 }
  0x8b   :  { %1961 = vmatpush1.msra.mxu1 %v7229_v7  ;;  %1892 = vmatpush1.msra.mxu0 %v7336_v42 }
  0x8c   :  { %1962 = vmatprep.subr.mxu1 %v7232_v8  ;;  %1893 = vmatprep.subr.mxu0 %v7339_v43 }
  0x8d   :  { %1963 = vmatpush1.msra.mxu1 %v7235_v9  ;;  %1894 = vmatpush1.msra.mxu0 %v7342_v44 }
  0x8e   :  { %1964 = vmatprep.subr.mxu1 %v7238_v10  ;;  %1895 = vmatprep.subr.mxu0 %v7345_v45 }
  0x8f   :  { %1965 = vmatpush1.msra.mxu1 %v7241_v11  ;;  %1896 = vmatpush1.msra.mxu0 %v7347_v46 }
  0x90   :  { %1966 = vmatprep.subr.mxu1 %v7244_v12  ;;  %1897 = vmatprep.subr.mxu0 %v7350_v47 }
  0x91   :  { %1967 = vmatpush1.msra.mxu1 %v7247_v13  ;;  %1898 = vmatpush1.msra.mxu0 %v7353_v48 }
  0x92   :  { %1968 = vmatprep.subr.mxu1 %v7250_v14  ;;  %1899 = vmatprep.subr.mxu0 %v7355_v0 }
  0x93   :  { %1969 = vmatpush1.msra.mxu1 %v7253_v15 }
  0x94   :  { %1970 = vmatprep.subr.mxu1 %v7256_v16 }
  0x95   :  { %1971 = vmatpush1.msra.mxu1 %v7259_v17  ;;  %v7361_v17 = vld [vmem:[#allocation4 + $0x2f8] sm:$0xff] }
  0x96   :  { %2084 = vmatprep.subr.mxu1 %v7266_v19  ;;  %v7358_v19 = vld [vmem:[#allocation4 + $0x100] sm:$0xff]  ;;  %9775 = vst [vmem:[#allocation46_spill] sm:$0xff] %v7361_v17 }
  0x97   :  { %9774 = vst [vmem:[#allocation45_spill] sm:$0xff] %v7358_v19  ;;  %1900 = vmatpush1.msra.mxu0 %v7358_v19 }
  0x98   :  { %2011 = vmatprep.subr.mxu0 %v7361_v17 }
  0xd8   :  { %v421_v16 = vpop.f32.mrf.mxu1 }
  0xda   :  { %v423_v15 = vpop.f32.mrf.mxu1 }
  0xdd   :  { %v581_v12 = vpop.f32.mrf.mxu0 }
  0xdf   :  { %v583_v10 = vpop.f32.mrf.mxu0 }
  0xe0   :  { %v501_v14 = vpop.f32.mrf.mxu1 }
  0xe1   :  { %v502_v1 = vadd.f32 %v501_v14, %v421_v16  ;;  %v7412_v16 = vld [vmem:[#allocation4 + $0x388] sm:$0xff] }
  0xe2   :  { %v503_v13 = vpop.f32.mrf.mxu1  ;;  %9785 = vst [vmem:[#allocation55_spill] sm:$0xff] %v7412_v16 }
  0xe3   :  { %v504_v63 = vadd.f32 %v503_v13, %v423_v15  ;;  %v586_v57 = vadd.f32 %v581_v12, %v502_v1  ;;  %v7409_v15 = vld [vmem:[#allocation4 + $0x390] sm:$0xff] }
  0xe4   :  { %9784 = vst [vmem:[#allocation54_spill] sm:$0xff] %v7409_v15 }
  0xe5   :  { %v587_v56 = vadd.f32 %v583_v10, %v504_v63 }
  0xe8   :  { %v663_v11 = vpop.f32.mrf.mxu1 }
  0xe9   :  { %v745_v8 = vpop.f32.mrf.mxu0  ;;  %v668_v53 = vadd.f32 %v663_v11, %v586_v57  ;;  %v7406_v11 = vld [vmem:[#allocation4 + $0x398] sm:$0xff] }
  0xea   :  { %v665_v9 = vpop.f32.mrf.mxu1  ;;  %9783 = vst [vmem:[#allocation53_spill] sm:$0xff] %v7406_v11 }
  0xeb   :  { %v747_v6 = vpop.f32.mrf.mxu0  ;;  %v669_v52 = vadd.f32 %v665_v9, %v587_v56  ;;  %v750_v0 = vadd.f32 %v745_v8, %v668_v53  ;;  %v7374_v53 = vld [vmem:[#allocation4 + $0x3e8] sm:$0xff]  ;;  %v7401_v9 = vld [vmem:[#allocation4 + $0x3a0] sm:$0xff] }
  0xec   :  { %v7398_v8 = vld [vmem:[#allocation4 + $0x3a8] sm:$0xff]  ;;  %9782 = vst [vmem:[#allocation52_spill] sm:$0xff] %v7401_v9 }
  0xed   :  { %v751_v48 = vadd.f32 %v747_v6, %v669_v52  ;;  %v7379_v52 = vld [vmem:[#allocation4 + $0x3d8] sm:$0xff]  ;;  %v7395_v6 = vld [vmem:[#allocation4 + $0x3b0] sm:$0xff]  ;;  %9781 = vst [vmem:[#allocation51_spill] sm:$0xff] %v7398_v8 }
  0xee   :  { %9780 = vst [vmem:[#allocation50_spill] sm:$0xff] %v7395_v6 }
  0xf2   :  { %v818_v7 = vpop.f32.mrf.mxu1  ;;  %v889_v5 = vpop.f32.mrf.mxu0 }
  0xf3   :  { %v890_v62 = vadd.f32 %v889_v5, %v818_v7 }
  0xf4   :  { %v820_v4 = vpop.f32.mrf.mxu1  ;;  %v891_v2 = vpop.f32.mrf.mxu0 }
  0xf5   :  { %v892_v59 = vadd.f32 %v891_v2, %v820_v4  ;;  %v7389_v2 = vld [vmem:[#allocation4 + $0x3c0] sm:$0xff] }
  0xf6   :  { %9778 = vst [vmem:[#allocation48_spill] sm:$0xff] %v7389_v2 }
  0xfb   :  { %v960_v3 = vpop.f32.mrf.mxu1 }
  0xfc   :  { %v965_v58 = vadd.f32 %v960_v3, %v890_v62  ;;  %v7369_v62 = vld [vmem:[%s9627_s2] ss:$0 sm:$0xff]  ;;  %v7392_v3 = vld [vmem:[#allocation4 + $0x3b8] sm:$0xff] }
  0xfd   :  { %v962_v61 = vpop.f32.mrf.mxu1  ;;  %v1033_v60 = vpop.f32.mrf.mxu0  ;;  %9779 = vst [vmem:[#allocation49_spill] sm:$0xff] %v7392_v3 }
  0xfe   :  { %v966_v55 = vadd.f32 %v962_v61, %v892_v59  ;;  %v1038_v51 = vadd.f32 %v1033_v60, %v965_v58  ;;  %v7372_v58 = vld [vmem:[#allocation4 + $0x3f0] sm:$0xff]  ;;  %v7386_v61 = vld [vmem:[#allocation4 + $0x3c8] sm:$0xff] }
  0xff   :  { %v1035_v54 = vpop.f32.mrf.mxu0  ;;  %9777 = vst [vmem:[#allocation47_spill] sm:$0xff] %v7386_v61 }
 0x100   :  { %v1039_v49 = vadd.f32 %v1035_v54, %v966_v55  ;;  %v9776_v54 = vmov 0.0   ;;  %v7383_v55 = vld [vmem:[#allocation4 + $0x3d0] sm:$0xff] }
 0x105   :  { %v1109_v50 = vpop.f32.mrf.mxu1 }
 0x106   :  { %v1114_v17 = vadd.f32 %v1109_v50, %v1038_v51 }
 0x107   :  { %v1111_v19 = vpop.f32.mrf.mxu1  ;;  %v1194_v56 = vpop.f32.mrf.mxu0 }
 0x108   :  { %v1115_v14 = vadd.f32 %v1111_v19, %v1039_v49  ;;  %v1116_v13 = vmax.f32 %v750_v0, %v1114_v17  ;;  %v7376_v0 = vld [vmem:[#allocation4 + $0x3e0] sm:$0xff] }
 0x109   :  { %v1196_v50 = vpop.f32.mrf.mxu0  ;;  %v7415_v19 = vld [vmem:[#allocation4 + $0x380] sm:$0xff] }
 0x10a   :  { %v1117_v5 = vmax.f32 %v751_v48, %v1115_v14  ;;  %9786 = vst [vmem:[#allocation56_spill] sm:$0xff] %v7415_v19  ;;  %v7418_v14 = vld [vmem:[#allocation4 + $0x378] sm:$0xff] }
 0x10b   :  { %9787 = vst [vmem:[#allocation57_spill] sm:$0xff] %v7418_v14 }
 0x10c   :  { %v1118_v63 = vmax.f32 %v1116_v13, %v1117_v5  ;;  %v7421_v13 = vld [vmem:[#allocation4 + $0x370] sm:$0xff] }
 0x10d   :  { %9788 = vst [vmem:[#allocation58_spill] sm:$0xff] %v7421_v13 }
 0x10e   :  { %v1125_v59 = vadd.f32 %v7369_v62, %v1118_v63  ;;  %v7424_v63 = vld [vmem:[#allocation4 + $0x368] sm:$0xff] }
 0x10f   :  { %v1265_v49 = vpop.f32.mrf.mxu1  ;;  %9789 = vst [vmem:[#allocation59_spill] sm:$0xff] %v7424_v63 }
 0x110   :  { %v1126_v57 = vmax.f32 %v1125_v59, 0.0 }
 0x111   :  { %v1336_v60 = vpop.f32.mrf.mxu0  ;;  %v1267_v1 = vpop.f32.mrf.mxu1 }
 0x112   :  { %1127 = vst [vmem:[#allocation2] sm:$0x3f] %v1126_v57  ;;  %v7427_v57 = vld [vmem:[#allocation4 + $0x360] sm:$0xff] }
 0x113   :  { %v1338_v7 = vpop.f32.mrf.mxu0  ;;  %9790 = vst [vmem:[#allocation60_spill] sm:$0xff] %v7427_v57 }
 0x119   :  { %v1863_v51 = vld [vmem:[#allocation2] sm:$0xf]  ;;  %v1409_v4 = vpop.f32.mrf.mxu1 }
 0x11a   :  { %2005 = vmatmul.mubr.f32.vlgmr.msra.gmra.mxu1 %v1863_v51  ;;  %v7430_v51 = vld [vmem:[#allocation4 + $0x358] sm:$0xff] }
 0x11b   :  { %2085 = vmatpush1.msra.mxu1 %v7372_v58  ;;  %2148 = vmatprep.mubr.f32.mxu1 %v9776_v54  ;;  %v7403_v10 = vpop.f32.mrf.mxu0  ;;  %v1411_v12 = vpop.f32.mrf.mxu1 }
 0x11c   :  { %2086 = vmatprep.subr.mxu1 %v7374_v53 }
 0x11d   :  { %2087 = vmatpush1.msra.mxu1 %v7376_v0  ;;  %v1487_v48 = vpop.f32.mrf.mxu0 }
 0x11e   :  { %2088 = vmatprep.subr.mxu1 %v7379_v52 }
 0x11f   :  { %2089 = vmatpush1.msra.mxu1 %v7383_v55 }
 0x120   :  { %2090 = vmatprep.subr.mxu1 %v7386_v61 }
 0x121   :  { %2091 = vmatpush1.msra.mxu1 %v7389_v2  ;;  %v7442_v2 = vld [vmem:[#allocation4 + $0x338] sm:$0xff] }
 0x122   :  { %2092 = vmatprep.subr.mxu1 %v7392_v3 }
 0x123   :  { %2093 = vmatpush1.msra.mxu1 %v7395_v6 }
 0x124   :  { %2094 = vmatprep.subr.mxu1 %v7398_v8  ;;  %v1558_v17 = vpop.f32.mrf.mxu1  ;;  %v1629_v5 = vpop.f32.mrf.mxu0  ;;  %v1268_v8 = vadd.f32 %v1267_v1, %v1196_v50 }
 0x125   :  { %2095 = vmatpush1.msra.mxu1 %v7401_v9  ;;  %v1266_v9 = vadd.f32 %v1265_v49, %v1194_v56  ;;  %v1630_v6 = vadd.f32 %v1629_v5, %v1558_v17  ;;  %v7448_v56 = vld [vmem:[#allocation4 + $0x328] sm:$0xff]  ;;  %v7451_v17 = vld [vmem:[#allocation4 + $0x320] sm:$0xff] }
 0x126   :  { %2096 = vmatprep.subr.mxu1 %v7406_v11  ;;  %v1560_v59 = vpop.f32.mrf.mxu1  ;;  %v1631_v11 = vpop.f32.mrf.mxu0  ;;  %v1342_v49 = vadd.f32 %v1338_v7, %v1268_v8 }
 0x127   :  { %2097 = vmatpush1.msra.mxu1 %v7409_v15  ;;  %v1341_v50 = vadd.f32 %v1336_v60, %v1266_v9  ;;  %v7460_v60 = vld [vmem:[#allocation4 + $0x308] sm:$0xff]  ;;  %v7463_v9 = vld [vmem:[#allocation4 + $0x300] sm:$0xff] }
 0x128   :  { %2098 = vmatprep.subr.mxu1 %v7412_v16  ;;  %v7433_v16 = vld [vmem:[#allocation4 + $0x350] sm:$0xff] }
 0x129   :  { %2099 = vmatpush1.msra.mxu1 %v7415_v19  ;;  %v7436_v19 = vld [vmem:[#allocation4 + $0x348] sm:$0xff] }
 0x12a   :  { %2100 = vmatprep.subr.mxu1 %v7418_v14  ;;  %9791 = vst [vmem:[#allocation61_spill] sm:$0xff] %v7436_v19  ;;  %v7439_v14 = vld [vmem:[#allocation4 + $0x340] sm:$0xff] }
 0x12b   :  { %2101 = vmatpush1.msra.mxu1 %v7421_v13  ;;  %9792 = vst [vmem:[#allocation62_spill] sm:$0xff] %v7439_v14 }
 0x12c   :  { %2102 = vmatprep.subr.mxu1 %v7424_v63  ;;  %v1632_v63 = vadd.f32 %v1631_v11, %v1560_v59  ;;  %v7454_v11 = vld [vmem:[#allocation4 + $0x318] sm:$0xff] }
 0x12d   :  { %v1700_v15 = vpop.f32.mrf.mxu1  ;;  %2103 = vmatpush1.msra.mxu1 %v7427_v57  ;;  %v7445_v57 = vld [vmem:[#allocation4 + $0x330] sm:$0xff] }
 0x12e   :  { %2104 = vmatprep.subr.mxu1 %v7430_v51  ;;  %v1705_v61 = vadd.f32 %v1700_v15, %v1630_v6  ;;  %v1414_v6 = vadd.f32 %v1409_v4, %v1341_v50  ;;  %v1415_v15 = vadd.f32 %v1411_v12, %v1342_v49 }
 0x12f   :  { %v1702_v13 = vpop.f32.mrf.mxu1  ;;  %v1773_v3 = vpop.f32.mrf.mxu0  ;;  %2105 = vmatpush1.msra.mxu1 %v7433_v16 }
 0x130   :  { %2106 = vmatprep.subr.mxu1 %v7436_v19  ;;  %v1706_v1 = vadd.f32 %v1702_v13, %v1632_v63  ;;  %v1778_v59 = vadd.f32 %v1773_v3, %v1705_v61  ;;  %v1490_v61 = vadd.f32 %v7403_v10, %v1414_v6  ;;  %v1491_v3 = vadd.f32 %v1487_v48, %v1415_v15  ;;  %v7477_v48 = vld [vmem:[#allocation4 + $0x2e8] sm:$0xff]  ;;  %v7481_v6 = vld [vmem:[#allocation4 + $0x2e0] sm:$0xff] }
 0x131   :  { %2107 = vmatpush1.msra.mxu1 %v7439_v14  ;;  %v1775_v5 = vpop.f32.mrf.mxu0  ;;  %v7457_v14 = vld [vmem:[#allocation4 + $0x310] sm:$0xff]  ;;  %v7493_v15 = vld [vmem:[#allocation4 + $0x2c8] sm:$0xff] }
 0x132   :  { %2108 = vmatprep.subr.mxu1 %v7442_v2  ;;  %v1779_v7 = vadd.f32 %v1775_v5, %v1706_v1  ;;  %v7471_v1 = vld [vmem:[#allocation4 + $0x2f0] sm:$0xff] }
 0x133   :  { %2109 = vmatpush1.msra.mxu1 %v7445_v57 }
 0x134   :  { %2110 = vmatprep.subr.mxu1 %v7448_v56 }
 0x135   :  { %2111 = vmatpush1.msra.mxu1 %v7451_v17 }
 0x136   :  { %v1849_v19 = vpop.f32.mrf.mxu1  ;;  %2112 = vmatprep.subr.mxu1 %v7454_v11 }
 0x137   :  { %v1854_v8 = vadd.f32 %v1849_v19, %v1778_v59  ;;  %2113 = vmatpush1.msra.mxu1 %v7457_v14  ;;  %v7497_v59 = vld [vmem:[#allocation4 + $0x2c0] sm:$0xff] }
 0x138   :  { %v1851_v13 = vpop.f32.mrf.mxu1  ;;  %2114 = vmatprep.subr.mxu1 %v7460_v60 }
 0x139   :  { %v1855_v4 = vadd.f32 %v1851_v13, %v1779_v7  ;;  %2115 = vmatpush1.msra.mxu1 %v7463_v9  ;;  %v1856_v12 = vmax.f32 %v1490_v61, %v1854_v8  ;;  %v7599_v7 = vld [vmem:[#allocation4 + $0x4f8] sm:$0xff]  ;;  %v7605_v8 = vld [vmem:[#allocation4 + $0x4f0] sm:$0xff]  ;;  %v7608_v13 = vld [vmem:[#allocation4 + $0x4e8] sm:$0xff] }
 0x13a   :  { %2230 = vmatprep.subr.mxu1 %v7264_v18  ;;  %v7485_v18 = vld [vmem:[#allocation4 + $0x2d8] sm:$0xff]  ;;  %v9796_v61 = vld [vmem:[#allocation46_spill] sm:$0xff] }
 0x13b   :  { %v1857_v63 = vmax.f32 %v1491_v3, %v1855_v4  ;;  %v7611_v3 = vld [vmem:[#allocation4 + $0x4e0] sm:$0xff]  ;;  %v7615_v4 = vld [vmem:[#allocation4 + $0x4d8] sm:$0xff] }
 0x13d   :  { %v1858_v19 = vmax.f32 %v1856_v12, %v1857_v63  ;;  %v7619_v12 = vld [vmem:[#allocation4 + $0x4d0] sm:$0xff]  ;;  %v7623_v63 = vld [vmem:[#allocation4 + $0x4c8] sm:$0xff] }
 0x13f   :  { %v1859_v50 = vadd.f32 %v7369_v62, %v1858_v19  ;;  %v7489_v62 = vld [vmem:[#allocation4 + $0x2d0] sm:$0xff]  ;;  %v7627_v19 = vld [vmem:[#allocation4 + $0x4c0] sm:$0xff] }
 0x141   :  { %v1860_v49 = vmax.f32 %v1859_v50, 0.0  ;;  %v7631_v50 = vld [vmem:[#allocation4 + $0x4b8] sm:$0xff] }
 0x143   :  { %1862 = vst [vmem:[#allocation2 + $0x8] sm:$0x3f] %v1860_v49  ;;  %v7635_v49 = vld [vmem:[#allocation4 + $0x4b0] sm:$0xff] }
 0x14a   :  { %v7473_v5 = vld [vmem:[#allocation2 + $0x8] sm:$0xf] }
 0x14b   :  { %v7475_v10 = vld [vmem:[#allocation2 + $0x9] sm:$0xf]  ;;  %1934 = vmatmul.mubr.f32.vlgmr.msra.gmra.mxu0 %v7473_v5 }
 0x14c   :  { %2149 = vmatmul.mubr.f32.vlgmr.msra.gmra.mxu1 %v7475_v10  ;;  %2012 = vmatpush1.msra.mxu0 %v7471_v1 }
 0x14d   :  { %2231 = vmatpush1.msra.mxu1 %v7268_v20  ;;  %2013 = vmatprep.subr.mxu0 %v7477_v48  ;;  %v7501_v20 = vld [vmem:[#allocation4 + $0x2b8] sm:$0xff] }
 0x14e   :  { %2232 = vmatprep.subr.mxu1 %v7272_v21  ;;  %2014 = vmatpush1.msra.mxu0 %v7481_v6  ;;  %v7505_v21 = vld [vmem:[#allocation4 + $0x2b0] sm:$0xff] }
 0x14f   :  { %2233 = vmatpush1.msra.mxu1 %v7275_v22  ;;  %2015 = vmatprep.subr.mxu0 %v7485_v18  ;;  %v7509_v22 = vld [vmem:[#allocation4 + $0x2a8] sm:$0xff] }
 0x150   :  { %2234 = vmatprep.subr.mxu1 %v7279_v23  ;;  %2016 = vmatpush1.msra.mxu0 %v7489_v62  ;;  %v7513_v23 = vld [vmem:[#allocation4 + $0x2a0] sm:$0xff] }
 0x151   :  { %2235 = vmatpush1.msra.mxu1 %v7282_v24  ;;  %2017 = vmatprep.subr.mxu0 %v7493_v15  ;;  %v7517_v24 = vld [vmem:[#allocation4 + $0x298] sm:$0xff] }
 0x152   :  { %2236 = vmatprep.subr.mxu1 %v7285_v25  ;;  %2018 = vmatpush1.msra.mxu0 %v7497_v59  ;;  %v7521_v25 = vld [vmem:[#allocation4 + $0x290] sm:$0xff] }
 0x153   :  { %2237 = vmatpush1.msra.mxu1 %v7288_v26  ;;  %2019 = vmatprep.subr.mxu0 %v7501_v20  ;;  %v7525_v26 = vld [vmem:[#allocation4 + $0x288] sm:$0xff] }
 0x154   :  { %2238 = vmatprep.subr.mxu1 %v7291_v27  ;;  %2020 = vmatpush1.msra.mxu0 %v7505_v21  ;;  %v7529_v27 = vld [vmem:[#allocation4 + $0x280] sm:$0xff] }
 0x155   :  { %2239 = vmatpush1.msra.mxu1 %v7294_v28  ;;  %2021 = vmatprep.subr.mxu0 %v7509_v22  ;;  %v7533_v28 = vld [vmem:[#allocation4 + $0x278] sm:$0xff] }
 0x156   :  { %2240 = vmatprep.subr.mxu1 %v7297_v29  ;;  %2022 = vmatpush1.msra.mxu0 %v7513_v23  ;;  %v7537_v29 = vld [vmem:[#allocation4 + $0x270] sm:$0xff] }
 0x157   :  { %2241 = vmatpush1.msra.mxu1 %v7299_v30  ;;  %2023 = vmatprep.subr.mxu0 %v7517_v24  ;;  %v7541_v30 = vld [vmem:[#allocation4 + $0x268] sm:$0xff] }
 0x158   :  { %2242 = vmatprep.subr.mxu1 %v7303_v31  ;;  %2024 = vmatpush1.msra.mxu0 %v7521_v25  ;;  %v7545_v31 = vld [vmem:[#allocation4 + $0x260] sm:$0xff] }
 0x159   :  { %2243 = vmatpush1.msra.mxu1 %v7306_v32  ;;  %2025 = vmatprep.subr.mxu0 %v7525_v26  ;;  %v7549_v32 = vld [vmem:[#allocation4 + $0x258] sm:$0xff] }
 0x15a   :  { %2244 = vmatprep.subr.mxu1 %v7309_v33  ;;  %2026 = vmatpush1.msra.mxu0 %v7529_v27  ;;  %v7553_v33 = vld [vmem:[#allocation4 + $0x250] sm:$0xff] }
 0x15b   :  { %2245 = vmatpush1.msra.mxu1 %v7312_v34  ;;  %2027 = vmatprep.subr.mxu0 %v7533_v28  ;;  %v7557_v34 = vld [vmem:[#allocation4 + $0x248] sm:$0xff] }
 0x15c   :  { %2246 = vmatprep.subr.mxu1 %v7315_v35  ;;  %2028 = vmatpush1.msra.mxu0 %v7537_v29  ;;  %v7561_v35 = vld [vmem:[#allocation4 + $0x240] sm:$0xff] }
 0x15d   :  { %2247 = vmatpush1.msra.mxu1 %v7318_v36  ;;  %2029 = vmatprep.subr.mxu0 %v7541_v30  ;;  %v7565_v36 = vld [vmem:[#allocation4 + $0x238] sm:$0xff] }
 0x15e   :  { %2248 = vmatprep.subr.mxu1 %v7321_v37  ;;  %2030 = vmatpush1.msra.mxu0 %v7545_v31  ;;  %v7569_v37 = vld [vmem:[#allocation4 + $0x230] sm:$0xff] }
 0x15f   :  { %2249 = vmatpush1.msra.mxu1 %v7324_v38  ;;  %2031 = vmatprep.subr.mxu0 %v7549_v32  ;;  %v7573_v38 = vld [vmem:[#allocation4 + $0x228] sm:$0xff] }
 0x160   :  { %2250 = vmatprep.subr.mxu1 %v7327_v39  ;;  %2032 = vmatpush1.msra.mxu0 %v7553_v33  ;;  %v7577_v39 = vld [vmem:[#allocation4 + $0x220] sm:$0xff] }
 0x161   :  { %2251 = vmatpush1.msra.mxu1 %v7330_v40  ;;  %2033 = vmatprep.subr.mxu0 %v7557_v34  ;;  %v7581_v40 = vld [vmem:[#allocation4 + $0x218] sm:$0xff] }
 0x162   :  { %2252 = vmatprep.subr.mxu1 %v7333_v41  ;;  %2034 = vmatpush1.msra.mxu0 %v7561_v35  ;;  %v7585_v41 = vld [vmem:[#allocation4 + $0x210] sm:$0xff] }
 0x163   :  { %2253 = vmatpush1.msra.mxu1 %v7336_v42  ;;  %2035 = vmatprep.subr.mxu0 %v7565_v36  ;;  %v7589_v42 = vld [vmem:[#allocation4 + $0x208] sm:$0xff] }
 0x164   :  { %2254 = vmatprep.subr.mxu1 %v7339_v43  ;;  %2036 = vmatpush1.msra.mxu0 %v7569_v37  ;;  %v7593_v43 = vld [vmem:[#allocation4 + $0x200] sm:$0xff] }
 0x165   :  { %2255 = vmatpush1.msra.mxu1 %v7342_v44  ;;  %2037 = vmatprep.subr.mxu0 %v7573_v38  ;;  %v9793_v44 = vld [vmem:[#allocation43_spill] sm:$0xff] }
 0x166   :  { %2256 = vmatprep.subr.mxu1 %v7345_v45  ;;  %2038 = vmatpush1.msra.mxu0 %v7577_v39  ;;  %v9794_v45 = vld [vmem:[#allocation44_spill] sm:$0xff] }
 0x167   :  { %2257 = vmatpush1.msra.mxu1 %v7347_v46  ;;  %2039 = vmatprep.subr.mxu0 %v7581_v40  ;;  %v9795_v46 = vld [vmem:[#allocation45_spill] sm:$0xff] }
 0x168   :  { %2258 = vmatprep.subr.mxu1 %v7350_v47  ;;  %2040 = vmatpush1.msra.mxu0 %v7585_v41  ;;  %v1865_v47 = vld [vmem:[#allocation2 + $0x1] sm:$0xf] }
 0x169   :  { %2259 = vmatpush1.msra.mxu1 %v9793_v44  ;;  %2041 = vmatprep.subr.mxu0 %v7589_v42  ;;  %v9806_v44 = vld [vmem:[#allocation19_spill] sm:$0xff] }
 0x16a   :  { %2260 = vmatprep.subr.mxu1 %v9794_v45  ;;  %2042 = vmatpush1.msra.mxu0 %v7593_v43  ;;  %v9807_v45 = vld [vmem:[#allocation20_spill] sm:$0xff] }
 0x16b   :  { %2075 = vmatprep.mubr.f32.mxu0 %v9776_v54  ;;  %2261 = vmatpush1.msra.mxu1 %v9795_v46  ;;  %v9809_v46 = vld [vmem:[#allocation22_spill] sm:$0xff] }
 0x16c   :  { %2294 = vmatprep.mubr.f32.mxu1 %v9776_v54  ;;  %2076 = vmatmul.mubr.f32.vlgmr.msra.gmra.mxu0 %v1865_v47 }
 0x16d   :  { %2157 = vmatprep.subr.mxu0 %v7599_v7  ;;  %2295 = vmatmul.mubr.f32.vlgmr.msra.gmra.mxu1 %v1865_v47  ;;  %v9810_v47 = vld [vmem:[#allocation23_spill] sm:$0xff] }
 0x16e   :  { %2372 = vmatprep.subr.mxu1 %v9796_v61  ;;  %2158 = vmatpush1.msra.mxu0 %v7605_v8  ;;  %v9813_v61 = vld [vmem:[#allocation26_spill] sm:$0xff] }
 0x16f   :  { %2373 = vmatpush1.msra.mxu1 %v7471_v1  ;;  %2159 = vmatprep.subr.mxu0 %v7608_v13  ;;  %v7639_v1 = vld [vmem:[#allocation4 + $0x4a8] sm:$0xff] }
 0x170   :  { %2374 = vmatprep.subr.mxu1 %v7477_v48  ;;  %2160 = vmatpush1.msra.mxu0 %v7611_v3  ;;  %v7643_v48 = vld [vmem:[#allocation4 + $0x4a0] sm:$0xff] }
 0x171   :  { %2375 = vmatpush1.msra.mxu1 %v7481_v6  ;;  %2161 = vmatprep.subr.mxu0 %v7615_v4  ;;  %v7647_v6 = vld [vmem:[#allocation4 + $0x498] sm:$0xff] }
 0x172   :  { %2376 = vmatprep.subr.mxu1 %v7485_v18  ;;  %2162 = vmatpush1.msra.mxu0 %v7619_v12  ;;  %v7651_v18 = vld [vmem:[#allocation4 + $0x490] sm:$0xff] }
 0x173   :  { %2377 = vmatpush1.msra.mxu1 %v7489_v62  ;;  %2163 = vmatprep.subr.mxu0 %v7623_v63  ;;  %v7655_v62 = vld [vmem:[#allocation4 + $0x488] sm:$0xff] }
 0x174   :  { %2378 = vmatprep.subr.mxu1 %v7493_v15  ;;  %2164 = vmatpush1.msra.mxu0 %v7627_v19  ;;  %v7659_v15 = vld [vmem:[#allocation4 + $0x480] sm:$0xff] }
 0x175   :  { %2379 = vmatpush1.msra.mxu1 %v7497_v59  ;;  %2165 = vmatprep.subr.mxu0 %v7631_v50  ;;  %v7663_v59 = vld [vmem:[#allocation4 + $0x478] sm:$0xff] }
 0x176   :  { %2380 = vmatprep.subr.mxu1 %v7501_v20  ;;  %2166 = vmatpush1.msra.mxu0 %v7635_v49  ;;  %v7667_v20 = vld [vmem:[#allocation4 + $0x470] sm:$0xff] }
 0x177   :  { %2381 = vmatpush1.msra.mxu1 %v7505_v21  ;;  %2167 = vmatprep.subr.mxu0 %v7639_v1  ;;  %v7671_v21 = vld [vmem:[#allocation4 + $0x468] sm:$0xff] }
 0x178   :  { %2382 = vmatprep.subr.mxu1 %v7509_v22  ;;  %2168 = vmatpush1.msra.mxu0 %v7643_v48  ;;  %v7675_v22 = vld [vmem:[#allocation4 + $0x460] sm:$0xff] }
 0x179   :  { %2383 = vmatpush1.msra.mxu1 %v7513_v23  ;;  %2169 = vmatprep.subr.mxu0 %v7647_v6  ;;  %v7679_v23 = vld [vmem:[#allocation4 + $0x458] sm:$0xff] }
 0x17a   :  { %2384 = vmatprep.subr.mxu1 %v7517_v24  ;;  %2170 = vmatpush1.msra.mxu0 %v7651_v18  ;;  %v7683_v24 = vld [vmem:[#allocation4 + $0x450] sm:$0xff] }
 0x17b   :  { %2385 = vmatpush1.msra.mxu1 %v7521_v25  ;;  %2171 = vmatprep.subr.mxu0 %v7655_v62  ;;  %v7687_v25 = vld [vmem:[#allocation4 + $0x448] sm:$0xff] }
 0x17c   :  { %2386 = vmatprep.subr.mxu1 %v7525_v26  ;;  %2172 = vmatpush1.msra.mxu0 %v7659_v15  ;;  %v7691_v26 = vld [vmem:[#allocation4 + $0x440] sm:$0xff] }
 0x17d   :  { %2387 = vmatpush1.msra.mxu1 %v7529_v27  ;;  %2173 = vmatprep.subr.mxu0 %v7663_v59  ;;  %v7695_v27 = vld [vmem:[#allocation4 + $0x438] sm:$0xff] }
 0x17e   :  { %2388 = vmatprep.subr.mxu1 %v7533_v28  ;;  %2174 = vmatpush1.msra.mxu0 %v7667_v20  ;;  %v7699_v28 = vld [vmem:[#allocation4 + $0x430] sm:$0xff] }
 0x17f   :  { %2389 = vmatpush1.msra.mxu1 %v7537_v29  ;;  %2175 = vmatprep.subr.mxu0 %v7671_v21  ;;  %v7703_v29 = vld [vmem:[#allocation4 + $0x428] sm:$0xff] }
 0x180   :  { %2390 = vmatprep.subr.mxu1 %v7541_v30  ;;  %2176 = vmatpush1.msra.mxu0 %v7675_v22  ;;  %v7707_v30 = vld [vmem:[#allocation4 + $0x420] sm:$0xff] }
 0x181   :  { %2391 = vmatpush1.msra.mxu1 %v7545_v31  ;;  %2177 = vmatprep.subr.mxu0 %v7679_v23  ;;  %v7711_v31 = vld [vmem:[#allocation4 + $0x418] sm:$0xff] }
 0x182   :  { %2392 = vmatprep.subr.mxu1 %v7549_v32  ;;  %2178 = vmatpush1.msra.mxu0 %v7683_v24  ;;  %v7715_v32 = vld [vmem:[#allocation4 + $0x410] sm:$0xff] }
 0x183   :  { %2393 = vmatpush1.msra.mxu1 %v7553_v33  ;;  %2179 = vmatprep.subr.mxu0 %v7687_v25  ;;  %v7719_v33 = vld [vmem:[#allocation4 + $0x408] sm:$0xff] }
 0x184   :  { %2394 = vmatprep.subr.mxu1 %v7557_v34  ;;  %2180 = vmatpush1.msra.mxu0 %v7691_v26  ;;  %v7723_v34 = vld [vmem:[#allocation4 + $0x400] sm:$0xff] }
 0x185   :  { %2395 = vmatpush1.msra.mxu1 %v7561_v35  ;;  %2181 = vmatprep.subr.mxu0 %v7695_v27  ;;  %v7733_v35 = vld [vmem:[#allocation2 + $0x2] sm:$0xf] }
 0x186   :  { %2396 = vmatprep.subr.mxu1 %v7565_v36  ;;  %2182 = vmatpush1.msra.mxu0 %v7699_v28  ;;  %v9797_v36 = vld [vmem:[#allocation10_spill] sm:$0xff] }
 0x187   :  { %2397 = vmatpush1.msra.mxu1 %v7569_v37  ;;  %2183 = vmatprep.subr.mxu0 %v7703_v29  ;;  %v9798_v37 = vld [vmem:[#allocation11_spill] sm:$0xff] }
 0x188   :  { %2398 = vmatprep.subr.mxu1 %v7573_v38  ;;  %2184 = vmatpush1.msra.mxu0 %v7707_v30  ;;  %v9799_v38 = vld [vmem:[#allocation12_spill] sm:$0xff] }
 0x189   :  { %2399 = vmatpush1.msra.mxu1 %v7577_v39  ;;  %2185 = vmatprep.subr.mxu0 %v7711_v31  ;;  %v9800_v39 = vld [vmem:[#allocation13_spill] sm:$0xff] }
 0x18a   :  { %2400 = vmatprep.subr.mxu1 %v7581_v40  ;;  %2186 = vmatpush1.msra.mxu0 %v7715_v32  ;;  %v9801_v40 = vld [vmem:[#allocation14_spill] sm:$0xff] }
 0x18b   :  { %2401 = vmatpush1.msra.mxu1 %v7585_v41  ;;  %2187 = vmatprep.subr.mxu0 %v7719_v33  ;;  %v9802_v41 = vld [vmem:[#allocation15_spill] sm:$0xff] }
 0x18c   :  { %2402 = vmatprep.subr.mxu1 %v7589_v42  ;;  %2188 = vmatpush1.msra.mxu0 %v7723_v34  ;;  %v9804_v42 = vld [vmem:[#allocation17_spill] sm:$0xff] }
 0x18d   :  { %2221 = vmatprep.mubr.f32.mxu0 %v9776_v54  ;;  %2403 = vmatpush1.msra.mxu1 %v7593_v43  ;;  %v9805_v43 = vld [vmem:[#allocation18_spill] sm:$0xff] }
 0x18e   :  { %2436 = vmatprep.mubr.f32.mxu1 %v9776_v54  ;;  %2222 = vmatmul.mubr.f32.vlgmr.msra.gmra.mxu0 %v7733_v35 }
 0x18f   :  { %2301 = vmatprep.subr.mxu0 %v9797_v36  ;;  %2437 = vmatmul.mubr.f32.vlgmr.msra.gmra.mxu1 %v7475_v10  ;;  %v9803_v10 = vld [vmem:[#allocation16_spill] sm:$0xff] }
 0x190   :  { %2518 = vmatprep.subr.mxu1 %v7599_v7  ;;  %2302 = vmatpush1.msra.mxu0 %v9798_v37  ;;  %v9808_v7 = vld [vmem:[#allocation21_spill] sm:$0xff]  ;;  %v5638_v37 = vld [vmem:[%s9630_s5 + $0xc0] sm:$0xff] }
 0x191   :  { %2519 = vmatpush1.msra.mxu1 %v7605_v8  ;;  %2303 = vmatprep.subr.mxu0 %v9799_v38  ;;  %v9811_v8 = vld [vmem:[#allocation24_spill] sm:$0xff] }
 0x192   :  { %2520 = vmatprep.subr.mxu1 %v7608_v13  ;;  %2304 = vmatpush1.msra.mxu0 %v9800_v39  ;;  %v9812_v13 = vld [vmem:[#allocation25_spill] sm:$0xff]  ;;  %v263_v38 = vld [vmem:[%s9630_s5 + $0x40] sm:$0xff]  ;;  %v5637_v39 = vld [vmem:[%s9630_s5 + $0xb8] sm:$0xff] }
 0x193   :  { %2521 = vmatpush1.msra.mxu1 %v7611_v3  ;;  %2305 = vmatprep.subr.mxu0 %v9801_v40  ;;  %v9814_v3 = vld [vmem:[#allocation27_spill] sm:$0xff]  ;;  %v264_v36 = vld [vmem:[%s9630_s5 + $0x48] sm:$0xff] }
 0x194   :  { %2522 = vmatprep.subr.mxu1 %v7615_v4  ;;  %2306 = vmatpush1.msra.mxu0 %v9802_v41  ;;  %v9815_v4 = vld [vmem:[#allocation28_spill] sm:$0xff]  ;;  %v262_v40 = vld [vmem:[%s9630_s5 + $0x38] sm:$0xff]  ;;  %v5636_v41 = vld [vmem:[%s9630_s5 + $0xb0] sm:$0xff] }
 0x195   :  { %2523 = vmatpush1.msra.mxu1 %v7619_v12  ;;  %2307 = vmatprep.subr.mxu0 %v9803_v10  ;;  %v9816_v12 = vld [vmem:[#allocation29_spill] sm:$0xff] }
 0x196   :  { %2524 = vmatprep.subr.mxu1 %v7623_v63  ;;  %2308 = vmatpush1.msra.mxu0 %v9804_v42  ;;  %v9817_v63 = vld [vmem:[#allocation30_spill] sm:$0xff]  ;;  %v5635_v42 = vld [vmem:[%s9630_s5 + $0xa8] sm:$0xff] }
 0x197   :  { %2525 = vmatpush1.msra.mxu1 %v7627_v19  ;;  %2309 = vmatprep.subr.mxu0 %v9805_v43  ;;  %v9818_v19 = vld [vmem:[#allocation31_spill] sm:$0xff]  ;;  %v261_v10 = vld [vmem:[%s9630_s5 + $0x30] sm:$0xff]  ;;  %v260_v43 = vld [vmem:[%s9630_s5 + $0x28] sm:$0xff] }
 0x198   :  { %2526 = vmatprep.subr.mxu1 %v7631_v50  ;;  %2310 = vmatpush1.msra.mxu0 %v9806_v44  ;;  %v9819_v50 = vld [vmem:[#allocation32_spill] sm:$0xff] }
 0x199   :  { %2527 = vmatpush1.msra.mxu1 %v7635_v49  ;;  %2311 = vmatprep.subr.mxu0 %v9807_v45  ;;  %v9820_v49 = vld [vmem:[#allocation33_spill] sm:$0xff]  ;;  %v5634_v44 = vld [vmem:[%s9630_s5 + $0xa0] sm:$0xff] }
 0x19a   :  { %2528 = vmatprep.subr.mxu1 %v7639_v1  ;;  %2312 = vmatpush1.msra.mxu0 %v9808_v7  ;;  %v9821_v1 = vld [vmem:[#allocation34_spill] sm:$0xff]  ;;  %v259_v45 = vld [vmem:[%s9630_s5 + $0x20] sm:$0xff] }
 0x19b   :  { %2529 = vmatpush1.msra.mxu1 %v7643_v48  ;;  %2313 = vmatprep.subr.mxu0 %v9809_v46  ;;  %v9822_v48 = vld [vmem:[#allocation35_spill] sm:$0xff] }
 0x19c   :  { %2530 = vmatprep.subr.mxu1 %v7647_v6  ;;  %2314 = vmatpush1.msra.mxu0 %v9810_v47  ;;  %v9823_v6 = vld [vmem:[#allocation36_spill] sm:$0xff]  ;;  %v5633_v7 = vld [vmem:[%s9630_s5 + $0x98] sm:$0xff]  ;;  %v5632_v47 = vld [vmem:[%s9630_s5 + $0x90] sm:$0xff] }
 0x19d   :  { %2531 = vmatpush1.msra.mxu1 %v7651_v18  ;;  %2315 = vmatprep.subr.mxu0 %v9811_v8  ;;  %v9824_v18 = vld [vmem:[#allocation37_spill] sm:$0xff]  ;;  %v258_v46 = vld [vmem:[%s9630_s5 + $0x18] sm:$0xff] }
 0x19e   :  { %2532 = vmatprep.subr.mxu1 %v7655_v62  ;;  %2316 = vmatpush1.msra.mxu0 %v9812_v13  ;;  %v9825_v62 = vld [vmem:[#allocation38_spill] sm:$0xff]  ;;  %v5631_v13 = vld [vmem:[%s9630_s5 + $0x88] sm:$0xff] }
 0x19f   :  { %2533 = vmatpush1.msra.mxu1 %v7659_v15  ;;  %2317 = vmatprep.subr.mxu0 %v9813_v61  ;;  %v9826_v15 = vld [vmem:[#allocation39_spill] sm:$0xff]  ;;  %v257_v8 = vld [vmem:[%s9630_s5 + $0x10] sm:$0xff]  ;;  %v256_v61 = vld [vmem:[%s9630_s5 + $0x8] sm:$0xff] }
 0x1a0   :  { %2534 = vmatprep.subr.mxu1 %v7663_v59  ;;  %2318 = vmatpush1.msra.mxu0 %v9814_v3  ;;  %v9827_v59 = vld [vmem:[#allocation40_spill] sm:$0xff] }
 0x1a1   :  { %2535 = vmatpush1.msra.mxu1 %v7667_v20  ;;  %2319 = vmatprep.subr.mxu0 %v9815_v4  ;;  %v9828_v20 = vld [vmem:[#allocation41_spill] sm:$0xff]  ;;  %v5630_v3 = vld [vmem:[%s9630_s5 + $0x80] sm:$0xff] }
 0x1a2   :  { %2536 = vmatprep.subr.mxu1 %v7671_v21  ;;  %2320 = vmatpush1.msra.mxu0 %v9816_v12  ;;  %v9829_v21 = vld [vmem:[#allocation42_spill] sm:$0xff]  ;;  %v255_v4 = vld [vmem:[%s9630_s5] sm:$0xff] }
 0x1a3   :  { %2537 = vmatpush1.msra.mxu1 %v7675_v22  ;;  %2321 = vmatprep.subr.mxu0 %v9817_v63  ;;  %v1868_v22 = vld [vmem:[#allocation2 + $0xa] sm:$0xf] }
 0x1a4   :  { %2538 = vmatprep.subr.mxu1 %v7679_v23  ;;  %2322 = vmatpush1.msra.mxu0 %v9818_v19  ;;  %v9830_v23 = vld [vmem:[#allocation47_spill] sm:$0xff] }
 0x1a5   :  { %2539 = vmatpush1.msra.mxu1 %v7683_v24  ;;  %2323 = vmatprep.subr.mxu0 %v9819_v50  ;;  %v9832_v24 = vld [vmem:[#allocation49_spill] sm:$0xff] }
 0x1a6   :  { %2540 = vmatprep.subr.mxu1 %v7687_v25  ;;  %2324 = vmatpush1.msra.mxu0 %v9820_v49  ;;  %v9833_v25 = vld [vmem:[#allocation50_spill] sm:$0xff] }
 0x1a7   :  { %2541 = vmatpush1.msra.mxu1 %v7691_v26  ;;  %2325 = vmatprep.subr.mxu0 %v9821_v1  ;;  %v9836_v26 = vld [vmem:[#allocation53_spill] sm:$0xff] }
 0x1a8   :  { %2542 = vmatprep.subr.mxu1 %v7695_v27  ;;  %2326 = vmatpush1.msra.mxu0 %v9822_v48  ;;  %v9838_v27 = vld [vmem:[#allocation55_spill] sm:$0xff] }
 0x1a9   :  { %2543 = vmatpush1.msra.mxu1 %v7699_v28  ;;  %2327 = vmatprep.subr.mxu0 %v9823_v6  ;;  %v9841_v28 = vld [vmem:[#allocation58_spill] sm:$0xff] }
 0x1aa   :  { %2544 = vmatprep.subr.mxu1 %v7703_v29  ;;  %2328 = vmatpush1.msra.mxu0 %v9824_v18  ;;  %v9842_v29 = vld [vmem:[#allocation59_spill] sm:$0xff] }
 0x1ab   :  { %2545 = vmatpush1.msra.mxu1 %v7707_v30  ;;  %2329 = vmatprep.subr.mxu0 %v9825_v62  ;;  %v9843_v30 = vld [vmem:[#allocation60_spill] sm:$0xff] }
 0x1ac   :  { %2546 = vmatprep.subr.mxu1 %v7711_v31  ;;  %2330 = vmatpush1.msra.mxu0 %v9826_v15  ;;  %v9844_v31 = vld [vmem:[#allocation61_spill] sm:$0xff] }
 0x1ad   :  { %2547 = vmatpush1.msra.mxu1 %v7715_v32  ;;  %2331 = vmatprep.subr.mxu0 %v9827_v59  ;;  %v9845_v32 = vld [vmem:[#allocation62_spill] sm:$0xff] }
 0x1ae   :  { %2548 = vmatprep.subr.mxu1 %v7719_v33  ;;  %2332 = vmatpush1.msra.mxu0 %v9828_v20  ;;  %v5640_v33 = vld [vmem:[%s9630_s5 + $0xd0] sm:$0xff] }
 0x1af   :  { %2365 = vmatprep.mubr.f32.mxu0 %v9776_v54  ;;  %2549 = vmatpush1.msra.mxu1 %v7723_v34  ;;  %v265_v34 = vld [vmem:[%s9630_s5 + $0x50] sm:$0xff] }
 0x1b0   :  { %2582 = vmatprep.mubr.f32.mxu1 %v9776_v54  ;;  %2366 = vmatmul.mubr.f32.vlgmr.msra.gmra.mxu0 %v7473_v5  ;;  %v9831_v5 = vld [vmem:[#allocation48_spill] sm:$0xff] }
 0x1b1   :  { %2445 = vmatprep.subr.mxu0 %v9829_v21  ;;  %2583 = vmatmul.mubr.f32.vlgmr.msra.gmra.mxu1 %v1868_v22 }
 0x1b2   :  { %2446 = vmatpush1.msra.mxu0 %v7372_v58  ;;  %2509 = vmatprep.mubr.f32.mxu0 %v9776_v54  ;;  %v9834_v58 = vld [vmem:[#allocation51_spill] sm:$0xff] }
 0x1b3   :  { %2447 = vmatprep.subr.mxu0 %v7374_v53  ;;  %6005 = vmatprep.subr.mxu1 %v9776_v54  ;;  %v9835_v53 = vld [vmem:[#allocation52_spill] sm:$0xff] }
 0x1b4   :  { %2448 = vmatpush1.msra.mxu0 %v7376_v0  ;;  %v9837_v0 = vld [vmem:[#allocation54_spill] sm:$0xff]  ;;  %6037 = vmatprep.mubr.msk.f32.mxu1 %vm6621_vm2, %v9776_v54 }
 0x1b5   :  { %2449 = vmatprep.subr.mxu0 %v7379_v52  ;;  %v9839_v52 = vld [vmem:[#allocation56_spill] sm:$0xff] }
 0x1b6   :  { %2450 = vmatpush1.msra.mxu0 %v7383_v55  ;;  %v9840_v55 = vld [vmem:[#allocation57_spill] sm:$0xff] }
 0x1b7   :  { %2451 = vmatprep.subr.mxu0 %v9830_v23 }
 0x1b8   :  { %2452 = vmatpush1.msra.mxu0 %v9831_v5 }
 0x1b9   :  { %2453 = vmatprep.subr.mxu0 %v9832_v24 }
 0x1ba   :  { %2454 = vmatpush1.msra.mxu0 %v9833_v25 }
 0x1bb   :  { %2455 = vmatprep.subr.mxu0 %v9834_v58 }
 0x1bc   :  { %2456 = vmatpush1.msra.mxu0 %v9835_v53 }
 0x1bd   :  { %2457 = vmatprep.subr.mxu0 %v9836_v26 }
 0x1be   :  { %2458 = vmatpush1.msra.mxu0 %v9837_v0 }
 0x1bf   :  { %2459 = vmatprep.subr.mxu0 %v9838_v27 }
 0x1c0   :  { %2460 = vmatpush1.msra.mxu0 %v9839_v52 }
 0x1c1   :  { %2461 = vmatprep.subr.mxu0 %v9840_v55 }
 0x1c2   :  { %2462 = vmatpush1.msra.mxu0 %v9841_v28 }
 0x1c3   :  { %2463 = vmatprep.subr.mxu0 %v9842_v29 }
 0x1c4   :  { %2464 = vmatpush1.msra.mxu0 %v9843_v30 }
 0x1c5   :  { %2465 = vmatprep.subr.mxu0 %v7430_v51  ;;  %v5643_v51 = vld [vmem:[%s9630_s5 + $0xe8] sm:$0xff] }
 0x1c6   :  { %2466 = vmatpush1.msra.mxu0 %v7433_v16  ;;  %v270_v16 = vld [vmem:[%s9630_s5 + $0x78] sm:$0xff] }
 0x1c7   :  { %2467 = vmatprep.subr.mxu0 %v9844_v31  ;;  %6006 = vmatpush3.msra.mxu1 %v270_v16 }
 0x1c8   :  { %2468 = vmatpush1.msra.mxu0 %v9845_v32  ;;  %6007 = vmatprep.subr.mxu1 %v9776_v54 }
 0x1c9   :  { %2469 = vmatprep.subr.mxu0 %v7442_v2  ;;  %v5645_v2 = vld [vmem:[%s9630_s5 + $0xf8] sm:$0xff] }
 0x1ca   :  { %2470 = vmatpush1.msra.mxu0 %v7445_v57  ;;  %v269_v57 = vld [vmem:[%s9630_s5 + $0x70] sm:$0xff] }
 0x1cb   :  { %2471 = vmatprep.subr.mxu0 %v7448_v56  ;;  %v268_v56 = vld [vmem:[%s9630_s5 + $0x68] sm:$0xff]  ;;  %6008 = vmatpush3.msra.mxu1 %v269_v57 }
 0x1cc   :  { %2472 = vmatpush1.msra.mxu0 %v7451_v17  ;;  %6009 = vmatprep.subr.mxu1 %v9776_v54  ;;  %v5642_v17 = vld [vmem:[%s9630_s5 + $0xe0] sm:$0xff] }
 0x1cd   :  { %2473 = vmatprep.subr.mxu0 %v7454_v11  ;;  %v267_v11 = vld [vmem:[%s9630_s5 + $0x60] sm:$0xff]  ;;  %6010 = vmatpush3.msra.mxu1 %v268_v56 }
 0x1ce   :  { %2474 = vmatpush1.msra.mxu0 %v7457_v14  ;;  %v5644_v14 = vld [vmem:[%s9630_s5 + $0xf0] sm:$0xff]  ;;  %6011 = vmatprep.subr.mxu1 %v9776_v54 }
 0x1cf   :  { %2475 = vmatprep.subr.mxu0 %v7460_v60  ;;  %v5641_v60 = vld [vmem:[%s9630_s5 + $0xd8] sm:$0xff]  ;;  %6012 = vmatpush3.msra.mxu1 %v267_v11  ;;  %v5745_v11 = vld [vmem:[%s9629_s4] ss:$0 sm:$0xff] }
 0x1d0   :  { %2476 = vmatpush1.msra.mxu0 %v7463_v9  ;;  %v266_v9 = vld [vmem:[%s9630_s5 + $0x58] sm:$0xff]  ;;  %6013 = vmatprep.subr.mxu1 %v9776_v54 }
 0x1d1   :  { %2510 = vmatmul.mubr.f32.vlgmr.msra.gmra.mxu0 %v7733_v35  ;;  %5970 = vmatprep.subr.mxu0 %v9776_v54  ;;  %v5639_v35 = vld [vmem:[%s9630_s5 + $0xc8] sm:$0xff] }
 0x1d2   :  { %5971 = vmatpush3.msra.mxu0 %v5645_v2  ;;  %6014 = vmatpush3.msra.mxu1 %v266_v9 }
 0x1d3   :  { %5972 = vmatprep.subr.mxu0 %v9776_v54  ;;  %6015 = vmatprep.subr.mxu1 %v9776_v54 }
 0x1d4   :  { %5973 = vmatpush3.msra.mxu0 %v5644_v14  ;;  %6016 = vmatpush3.msra.mxu1 %v265_v34  ;;  %v5661_v34 = vld [vmem:[%s9630_s5 + $0x178] sm:$0xff] }
 0x1d5   :  { %5974 = vmatprep.subr.mxu0 %v9776_v54  ;;  %6017 = vmatprep.subr.mxu1 %v9776_v54 }
 0x1d6   :  { %5975 = vmatpush3.msra.mxu0 %v5643_v51  ;;  %6018 = vmatpush3.msra.mxu1 %v264_v36 }
 0x1d7   :  { %5976 = vmatprep.subr.mxu0 %v9776_v54  ;;  %6019 = vmatprep.subr.mxu1 %v9776_v54 }
 0x1d8   :  { %5977 = vmatpush3.msra.mxu0 %v5642_v17  ;;  %6020 = vmatpush3.msra.mxu1 %v263_v38  ;;  %v5660_v38 = vld [vmem:[%s9630_s5 + $0x170] sm:$0xff] }
 0x1d9   :  { %5978 = vmatprep.subr.mxu0 %v9776_v54  ;;  %6021 = vmatprep.subr.mxu1 %v9776_v54 }
 0x1da   :  { %5979 = vmatpush3.msra.mxu0 %v5641_v60  ;;  %6022 = vmatpush3.msra.mxu1 %v262_v40  ;;  %v2006_v63 = vpop.f32.mrf.mxu1  ;;  %v5659_v40 = vld [vmem:[%s9630_s5 + $0x168] sm:$0xff] }
 0x1db   :  { %5980 = vmatprep.subr.mxu0 %v9776_v54  ;;  %6023 = vmatprep.subr.mxu1 %v9776_v54 }
 0x1dc   :  { %5981 = vmatpush3.msra.mxu0 %v5640_v33  ;;  %6024 = vmatpush3.msra.mxu1 %v261_v10  ;;  %v2008_v49 = vpop.f32.mrf.mxu1  ;;  %v5658_v10 = vld [vmem:[%s9630_s5 + $0x160] sm:$0xff] }
 0x1dd   :  { %5982 = vmatprep.subr.mxu0 %v9776_v54  ;;  %6025 = vmatprep.subr.mxu1 %v9776_v54 }
 0x1de   :  { %5983 = vmatpush3.msra.mxu0 %v5639_v35  ;;  %6026 = vmatpush3.msra.mxu1 %v260_v43  ;;  %v5677_v35 = vld [vmem:[%s9630_s5 + $0x1f8] sm:$0xff] }
 0x1df   :  { %5984 = vmatprep.subr.mxu0 %v9776_v54  ;;  %6027 = vmatprep.subr.mxu1 %v9776_v54  ;;  %v5657_v43 = vld [vmem:[%s9630_s5 + $0x158] sm:$0xff] }
 0x1e0   :  { %5985 = vmatpush3.msra.mxu0 %v5638_v37  ;;  %6028 = vmatpush3.msra.mxu1 %v259_v45  ;;  %v5656_v45 = vld [vmem:[%s9630_s5 + $0x150] sm:$0xff] }
 0x1e1   :  { %5986 = vmatprep.subr.mxu0 %v9776_v54  ;;  %6029 = vmatprep.subr.mxu1 %v9776_v54 }
 0x1e2   :  { %5987 = vmatpush3.msra.mxu0 %v5637_v39  ;;  %6030 = vmatpush3.msra.mxu1 %v258_v46  ;;  %v5676_v39 = vld [vmem:[%s9630_s5 + $0x1f0] sm:$0xff]  ;;  %v5655_v46 = vld [vmem:[%s9630_s5 + $0x148] sm:$0xff] }
 0x1e3   :  { %5988 = vmatprep.subr.mxu0 %v9776_v54  ;;  %6031 = vmatprep.subr.mxu1 %v9776_v54 }
 0x1e4   :  { %5989 = vmatpush3.msra.mxu0 %v5636_v41  ;;  %6032 = vmatpush3.msra.mxu1 %v257_v8  ;;  %v5675_v41 = vld [vmem:[%s9630_s5 + $0x1e8] sm:$0xff]  ;;  %v5654_v8 = vld [vmem:[%s9630_s5 + $0x140] sm:$0xff] }
 0x1e5   :  { %5990 = vmatprep.subr.mxu0 %v9776_v54  ;;  %6033 = vmatprep.subr.mxu1 %v9776_v54 }
 0x1e6   :  { %5991 = vmatpush3.msra.mxu0 %v5635_v42  ;;  %6034 = vmatpush3.msra.mxu1 %v256_v61  ;;  %v5674_v42 = vld [vmem:[%s9630_s5 + $0x1e0] sm:$0xff]  ;;  %v5653_v61 = vld [vmem:[%s9630_s5 + $0x138] sm:$0xff] }
 0x1e7   :  { %5992 = vmatprep.subr.mxu0 %v9776_v54  ;;  %6035 = vmatprep.subr.mxu1 %v9776_v54 }
 0x1e8   :  { %5993 = vmatpush3.msra.mxu0 %v5634_v44  ;;  %6036 = vmatpush3.msra.mxu1 %v255_v4  ;;  %v5673_v44 = vld [vmem:[%s9630_s5 + $0x1d8] sm:$0xff]  ;;  %v5652_v4 = vld [vmem:[%s9630_s5 + $0x130] sm:$0xff] }
 0x1e9   :  { %5994 = vmatprep.subr.mxu0 %v9776_v54  ;;  %6002 = vmatprep.mubr.msk.f32.mxu0 %vm6621_vm2, %v9776_v54 }
 0x1ea   :  { %5995 = vmatpush3.msra.mxu0 %v5633_v7  ;;  %6075 = vmatprep.subr.mxu1 %v9776_v54  ;;  %v5672_v7 = vld [vmem:[%s9630_s5 + $0x1d0] sm:$0xff] }
 0x1eb   :  { %5996 = vmatprep.subr.mxu0 %v9776_v54 }
 0x1ec   :  { %5997 = vmatpush3.msra.mxu0 %v5632_v47  ;;  %v5671_v47 = vld [vmem:[%s9630_s5 + $0x1c8] sm:$0xff] }
 0x1ed   :  { %5998 = vmatprep.subr.mxu0 %v9776_v54 }
 0x1ee   :  { %5999 = vmatpush3.msra.mxu0 %v5631_v13  ;;  %v5670_v13 = vld [vmem:[%s9630_s5 + $0x1c0] sm:$0xff] }
 0x1ef   :  { %6000 = vmatprep.subr.mxu0 %v9776_v54 }
 0x1f0   :  { %6001 = vmatpush3.msra.mxu0 %v5630_v3  ;;  %v5669_v3 = vld [vmem:[%s9630_s5 + $0x1b8] sm:$0xff] }
 0x1f1   :  { %6040 = vmatprep.subr.mxu0 %v9776_v54 }
 0x20b   :  { %v1935_v12 = vpop.f32.mrf.mxu0 }
 0x20c   :  { %v2150_v1 = vpop.f32.mrf.mxu1  ;;  %v2007_v5 = vadd.f32 %v2006_v63, %v1935_v12  ;;  %v5668_v12 = vld [vmem:[%s9630_s5 + $0x1b0] sm:$0xff]  ;;  %v5651_v63 = vld [vmem:[%s9630_s5 + $0x128] sm:$0xff] }
 0x20d   :  { %v1937_v19 = vpop.f32.mrf.mxu0 }
 0x20e   :  { %v2152_v18 = vpop.f32.mrf.mxu1  ;;  %v2009_v24 = vadd.f32 %v2008_v49, %v1937_v19  ;;  %v5667_v19 = vld [vmem:[%s9630_s5 + $0x1a8] sm:$0xff]  ;;  %v5666_v49 = vld [vmem:[%s9630_s5 + $0x1a0] sm:$0xff] }
 0x22c   :  { %v2077_v50 = vpop.f32.mrf.mxu0 }
 0x22d   :  { %v2296_v62 = vpop.f32.mrf.mxu1  ;;  %v2082_v53 = vadd.f32 %v2077_v50, %v2007_v5  ;;  %v5650_v50 = vld [vmem:[%s9630_s5 + $0x120] sm:$0xff]  ;;  %v8116_v5 = vld [vmem:[%s9626_s1 + $0x70] sm:$0xf] }
 0x22e   :  { %v2079_v48 = vpop.f32.mrf.mxu0 }
 0x22f   :  { %v2298_v20 = vpop.f32.mrf.mxu1  ;;  %v2083_v26 = vadd.f32 %v2079_v48, %v2009_v24  ;;  %v2155_v30 = vadd.f32 %v2150_v1, %v2082_v53  ;;  %v5649_v1 = vld [vmem:[%s9630_s5 + $0x118] sm:$0xff]  ;;  %v8124_v24 = vld [vmem:[%s9626_s1 + $0x68] sm:$0xff]  ;;  %v8144_v53 = vld [vmem:[%s9626_s1 + $0x50] sm:$0xff] }
 0x230   :  { %v5665_v48 = vld [vmem:[%s9630_s5 + $0x198] sm:$0xff] }
 0x231   :  { %v2156_v31 = vadd.f32 %v2152_v18, %v2083_v26  ;;  %v5664_v18 = vld [vmem:[%s9630_s5 + $0x190] sm:$0xff]  ;;  %v8150_v26 = vld [vmem:[%s9626_s1 + $0x48] sm:$0xff] }
 0x24e   :  { %v2223_v6 = vpop.f32.mrf.mxu0 }
 0x24f   :  { %v2438_v21 = vpop.f32.mrf.mxu1  ;;  %v2228_v14 = vadd.f32 %v2223_v6, %v2155_v30  ;;  %v5648_v6 = vld [vmem:[%s9630_s5 + $0x110] sm:$0xff]  ;;  %v329_v30 = vld [vmem:[%s9632_s7 + $0x20] sm:$0xff] }
 0x250   :  { %v2225_v15 = vpop.f32.mrf.mxu0 }
 0x251   :  { %v2440_v58 = vpop.f32.mrf.mxu1  ;;  %v2229_v57 = vadd.f32 %v2225_v15, %v2156_v31  ;;  %v5663_v15 = vld [vmem:[%s9630_s5 + $0x188] sm:$0xff] }
 0x252   :  { %v8194_v31 = vld [vmem:[%s9626_s1 + $0x28] sm:$0xff] }
 0x270   :  { %v2367_v59 = vpop.f32.mrf.mxu0 }
 0x271   :  { %v2368_v23 = vadd.f32 %v2367_v59, %v2296_v62  ;;  %v2584_v27 = vpop.f32.mrf.mxu1  ;;  %v5647_v62 = vld [vmem:[%s9630_s5 + $0x108] sm:$0xff]  ;;  %v5646_v59 = vld [vmem:[%s9630_s5 + $0x100] sm:$0xff] }
 0x272   :  { %v2369_v22 = vpop.f32.mrf.mxu0 }
 0x273   :  { %v2370_v25 = vadd.f32 %v2369_v22, %v2298_v20  ;;  %v2443_v0 = vadd.f32 %v2438_v21, %v2368_v23  ;;  %v2586_v16 = vpop.f32.mrf.mxu1  ;;  %v5662_v20 = vld [vmem:[%s9630_s5 + $0x180] sm:$0xff]  ;;  %v8108_v23 = vld [vmem:[%s9626_s1 + $0x78] sm:$0xf] }
 0x275   :  { %v2444_v28 = vadd.f32 %v2440_v58, %v2370_v25  ;;  %v8132_v25 = vld [vmem:[%s9626_s1 + $0x60] sm:$0xff]  ;;  %v8138_v58 = vld [vmem:[%s9626_s1 + $0x58] sm:$0xff] }
 0x291   :  { %v2511_v52 = vpop.f32.mrf.mxu0 }
 0x292   :  { %v2516_v55 = vadd.f32 %v2511_v52, %v2443_v0  ;;  %v8156_v0 = vld [vmem:[%s9626_s1 + $0x40] sm:$0xff]  ;;  %v8169_v52 = vld [vmem:[%s9625_s0 + $0x28] sm:$0x3f] }
 0x293   :  { %v2513_v29 = vpop.f32.mrf.mxu0 }
 0x294   :  { %v2589_v32 = vadd.f32 %v2584_v27, %v2516_v55  ;;  %v2517_v2 = vadd.f32 %v2513_v29, %v2444_v28  ;;  %v8162_v27 = vld [vmem:[%s9626_s1 + $0x38] sm:$0xf]  ;;  %v331_v55 = vld [vmem:[%s9632_s7 + $0x30] sm:$0x3]  ;;  %v330_v28 = vld [vmem:[%s9632_s7 + $0x28] sm:$0xff] }
 0x295   :  { %v8183_v29 = vld [vmem:[%s9626_s1 + $0x30] sm:$0xf] }
 0x296   :  { %v2590_v51 = vadd.f32 %v2586_v16, %v2517_v2  ;;  %v2591_v56 = vmax.f32 %v2228_v14, %v2589_v32  ;;  %v8200_v32 = vld [vmem:[%s9626_s1 + $0x20] sm:$0xff]  ;;  %v8207_v2 = vld [vmem:[%s9626_s1 + $0x18] sm:$0xff]  ;;  %v8213_v16 = vld [vmem:[%s9626_s1 + $0x10] sm:$0xff] }
 0x297   :  { %v8220_v14 = vld [vmem:[%s9626_s1 + $0x8] sm:$0xff] }
 0x298   :  { %v2592_v17 = vmax.f32 %v2229_v57, %v2590_v51  ;;  %v8227_v57 = vld [vmem:[%s9626_s1] sm:$0xff]  ;;  %v8233_v51 = vld [vmem:[%s9626_s1 + $0xf8] sm:$0xf] }
 0x29a   :  { %v2593_v60 = vmax.f32 %v2591_v56, %v2592_v17  ;;  %v328_v56 = vld [vmem:[%s9632_s7 + $0x18] sm:$0xff]  ;;  %v5748_v17 = vld [vmem:[%s9625_s0 + $0x20] sm:$0x3f] }
 0x29c   :  { %v2600_v9 = vadd.f32 %v5745_v11, %v2593_v60  ;;  %v327_v11 = vld [vmem:[%s9632_s7 + $0x10] sm:$0xff] }
 0x29d   :  { %v8251_v60 = vld [vmem:[%s9626_s1 + $0xf0] sm:$0xf] }
 0x29e   :  { %v2601_v33 = vmax.f32 %v2600_v9, 0.0  ;;  %v8258_v9 = vld [vmem:[%s9626_s1 + $0xe8] sm:$0xff] }
 0x2a0   :  { %2602 = vst [vmem:[#allocation3] sm:$0xf] %v2601_v33  ;;  %v326_v33 = vld [vmem:[%s9632_s7 + $0x8] sm:$0xff] }
 0x2a7   :  { %v2604_v36 = vld [vmem:[#allocation3 + $0x1] sm:$0x1]  ;;  %v2603_v37 = vld [vmem:[#allocation3] sm:$0x1]  ;;  %v2745_v21 = vld [vmem:[#allocation3 + $0x2] sm:$0x1] }
 0x2a8   :  { %6003 = vmatmul.mubr.f32.vlgmr.msra.gmra.mxu0 %v2604_v36  ;;  %6038 = vmatmul.mubr.f32.vlgmr.msra.gmra.mxu1 %v2603_v37  ;;  %v2817_v22 = vld [vmem:[#allocation3 + $0x3] sm:$0x1]  ;;  %v325_v36 = vld [vmem:[%s9632_s7] sm:$0xff] }
 0x2a9   :  { %6041 = vmatpush3.msra.mxu0 %v5661_v34  ;;  %6076 = vmatpush3.msra.mxu1 %v5677_v35  ;;  %v8268_v34 = vld [vmem:[%s9626_s1 + $0xe0] sm:$0xff]  ;;  %v8274_v35 = vld [vmem:[%s9626_s1 + $0xd8] sm:$0xff]  ;;  %v8284_v37 = vld [vmem:[%s9626_s1 + $0xd0] sm:$0xff] }
 0x2aa   :  { %6042 = vmatprep.subr.mxu0 %v9776_v54  ;;  %6077 = vmatprep.subr.mxu1 %v9776_v54 }
 0x2ab   :  { %6043 = vmatpush3.msra.mxu0 %v5660_v38  ;;  %6078 = vmatpush3.msra.mxu1 %v5676_v39  ;;  %v8290_v38 = vld [vmem:[%s9626_s1 + $0xc8] sm:$0xff]  ;;  %v8296_v39 = vld [vmem:[%s9626_s1 + $0xb8] sm:$0xf] }
 0x2ac   :  { %6044 = vmatprep.subr.mxu0 %v9776_v54  ;;  %6079 = vmatprep.subr.mxu1 %v9776_v54 }
 0x2ad   :  { %6045 = vmatpush3.msra.mxu0 %v5659_v40  ;;  %6080 = vmatpush3.msra.mxu1 %v5675_v41  ;;  %v8303_v40 = vld [vmem:[%s9626_s1 + $0xc0] sm:$0xff]  ;;  %v8312_v41 = vld [vmem:[%s9625_s0 + $0x38] sm:$0x3f] }
 0x2ae   :  { %6046 = vmatprep.subr.mxu0 %v9776_v54  ;;  %6081 = vmatprep.subr.mxu1 %v9776_v54 }
 0x2af   :  { %6047 = vmatpush3.msra.mxu0 %v5658_v10  ;;  %6082 = vmatpush3.msra.mxu1 %v5674_v42  ;;  %v8327_v10 = vld [vmem:[%s9625_s0 + $0x30] sm:$0x3f] }
 0x2b0   :  { %6048 = vmatprep.subr.mxu0 %v9776_v54  ;;  %6083 = vmatprep.subr.mxu1 %v9776_v54  ;;  %v8337_v42 = vld [vmem:[%s9626_s1 + $0xb0] sm:$0xf] }
 0x2b1   :  { %6049 = vmatpush3.msra.mxu0 %v5657_v43  ;;  %6084 = vmatpush3.msra.mxu1 %v5673_v44  ;;  %v8345_v43 = vld [vmem:[%s9626_s1 + $0xa8] sm:$0xff]  ;;  %v8351_v44 = vld [vmem:[%s9626_s1 + $0xa0] sm:$0xff] }
 0x2b2   :  { %6050 = vmatprep.subr.mxu0 %v9776_v54  ;;  %6085 = vmatprep.subr.mxu1 %v9776_v54 }
 0x2b3   :  { %6051 = vmatpush3.msra.mxu0 %v5656_v45  ;;  %6086 = vmatpush3.msra.mxu1 %v5672_v7  ;;  %v8357_v45 = vld [vmem:[%s9626_s1 + $0x98] sm:$0xff]  ;;  %v8363_v7 = vld [vmem:[%s9626_s1 + $0x90] sm:$0xff] }
 0x2b4   :  { %6052 = vmatprep.subr.mxu0 %v9776_v54  ;;  %6087 = vmatprep.subr.mxu1 %v9776_v54 }
 0x2b5   :  { %6053 = vmatpush3.msra.mxu0 %v5655_v46  ;;  %6088 = vmatpush3.msra.mxu1 %v5671_v47  ;;  %v8369_v46 = vld [vmem:[%s9626_s1 + $0x88] sm:$0xff]  ;;  %v8375_v47 = vld [vmem:[%s9626_s1 + $0x80] sm:$0xff] }
 0x2b6   :  { %6054 = vmatprep.subr.mxu0 %v9776_v54  ;;  %6089 = vmatprep.subr.mxu1 %v9776_v54 }
 0x2b7   :  { %6055 = vmatpush3.msra.mxu0 %v5654_v8  ;;  %6090 = vmatpush3.msra.mxu1 %v5670_v13  ;;  %v8381_v8 = vld [vmem:[%s9626_s1 + $0x138] sm:$0xf]  ;;  %v8390_v13 = vld [vmem:[%s9626_s1 + $0x130] sm:$0xf] }
 0x2b8   :  { %6056 = vmatprep.subr.mxu0 %v9776_v54  ;;  %6091 = vmatprep.subr.mxu1 %v9776_v54 }
 0x2b9   :  { %6057 = vmatpush3.msra.mxu0 %v5653_v61  ;;  %6092 = vmatpush3.msra.mxu1 %v5669_v3  ;;  %v8398_v61 = vld [vmem:[%s9626_s1 + $0x128] sm:$0xff]  ;;  %v8404_v3 = vld [vmem:[%s9626_s1 + $0x120] sm:$0xff] }
 0x2ba   :  { %6058 = vmatprep.subr.mxu0 %v9776_v54  ;;  %6093 = vmatprep.subr.mxu1 %v9776_v54 }
 0x2bb   :  { %6059 = vmatpush3.msra.mxu0 %v5652_v4  ;;  %6094 = vmatpush3.msra.mxu1 %v5668_v12  ;;  %v8410_v4 = vld [vmem:[%s9626_s1 + $0x118] sm:$0xff]  ;;  %v8416_v12 = vld [vmem:[%s9626_s1 + $0x110] sm:$0xff] }
 0x2bc   :  { %6060 = vmatprep.subr.mxu0 %v9776_v54  ;;  %6095 = vmatprep.subr.mxu1 %v9776_v54 }
 0x2bd   :  { %6061 = vmatpush3.msra.mxu0 %v5651_v63  ;;  %6096 = vmatpush3.msra.mxu1 %v5667_v19  ;;  %v8422_v63 = vld [vmem:[%s9626_s1 + $0x108] sm:$0xff]  ;;  %v8428_v19 = vld [vmem:[%s9626_s1 + $0x100] sm:$0xff] }
 0x2be   :  { %6062 = vmatprep.subr.mxu0 %v9776_v54  ;;  %6097 = vmatprep.subr.mxu1 %v9776_v54 }
 0x2bf   :  { %6063 = vmatpush3.msra.mxu0 %v5650_v50  ;;  %6098 = vmatpush3.msra.mxu1 %v5666_v49  ;;  %v5753_v50 = vld [vmem:[%s9625_s0 + $0x29] sm:$0x3f]  ;;  %v8473_v49 = vld [vmem:[%s9625_s0 + $0x21] sm:$0x3f] }
 0x2c0   :  { %6064 = vmatprep.subr.mxu0 %v9776_v54  ;;  %6099 = vmatprep.subr.mxu1 %v9776_v54 }
 0x2c1   :  { %6065 = vmatpush3.msra.mxu0 %v5649_v1  ;;  %6100 = vmatpush3.msra.mxu1 %v5665_v48  ;;  %v5755_v1 = vld [vmem:[%s9625_s0 + $0x39] sm:$0x3f]  ;;  %v8505_v48 = vld [vmem:[#allocation4 + $0xf8] sm:$0xff] }
 0x2c2   :  { %6066 = vmatprep.subr.mxu0 %v9776_v54  ;;  %6101 = vmatprep.subr.mxu1 %v9776_v54  ;;  %9846 = vst [vmem:[#allocation43_spill] sm:$0xff] %v8505_v48 }
 0x2c3   :  { %6067 = vmatpush3.msra.mxu0 %v5648_v6  ;;  %6102 = vmatpush3.msra.mxu1 %v5664_v18  ;;  %v8508_v6 = vld [vmem:[#allocation4 + $0xf0] sm:$0xff]  ;;  %v8512_v18 = vld [vmem:[#allocation4 + $0xe8] sm:$0xff] }
 0x2c4   :  { %6068 = vmatprep.subr.mxu0 %v9776_v54  ;;  %6103 = vmatprep.subr.mxu1 %v9776_v54  ;;  %9847 = vst [vmem:[#allocation44_spill] sm:$0xff] %v8508_v6  ;;  %9848 = vst [vmem:[#allocation45_spill] sm:$0xff] %v8512_v18 }
 0x2c5   :  { %6069 = vmatpush3.msra.mxu0 %v5647_v62  ;;  %6104 = vmatpush3.msra.mxu1 %v5663_v15  ;;  %v8515_v62 = vld [vmem:[#allocation4 + $0xe0] sm:$0xff]  ;;  %v8518_v15 = vld [vmem:[#allocation4 + $0xd8] sm:$0xff] }
 0x2c6   :  { %6070 = vmatprep.subr.mxu0 %v9776_v54  ;;  %6105 = vmatprep.subr.mxu1 %v9776_v54  ;;  %9849 = vst [vmem:[#allocation46_spill] sm:$0xff] %v8515_v62  ;;  %9850 = vst [vmem:[#allocation10_spill] sm:$0xff] %v8518_v15 }
 0x2c7   :  { %6071 = vmatpush3.msra.mxu0 %v5646_v59  ;;  %6072 = vmatprep.mubr.msk.f32.mxu0 %vm6621_vm2, %v9776_v54  ;;  %v8521_v59 = vld [vmem:[#allocation4 + $0xd0] sm:$0xff] }
 0x2c8   :  { %6106 = vmatpush3.msra.mxu1 %v5662_v20  ;;  %6107 = vmatprep.mubr.msk.f32.mxu1 %vm6621_vm2, %v9776_v54  ;;  %9851 = vst [vmem:[#allocation11_spill] sm:$0xff] %v8521_v59  ;;  %v8524_v20 = vld [vmem:[#allocation4 + $0xc8] sm:$0xff] }
 0x2c9   :  { %6073 = vmatmul.mubr.f32.vlgmr.msra.gmra.mxu0 %v2745_v21  ;;  %6108 = vmatmul.mubr.f32.vlgmr.msra.gmra.mxu1 %v2817_v22  ;;  %9852 = vst [vmem:[#allocation12_spill] sm:$0xff] %v8524_v20  ;;  %v8527_v21 = vld [vmem:[#allocation4 + $0xc0] sm:$0xff]  ;;  %v8530_v22 = vld [vmem:[#allocation4 + $0xb8] sm:$0xff] }
 0x2ca   :  { %5756 = vmatprep.subr.msk.mxu1 %vm348_vm0, %v8108_v23  ;;  %3062 = vmatprep.mubr.f32.mxu1 %v9776_v54  ;;  %9853 = vst [vmem:[#allocation13_spill] sm:$0xff] %v8527_v21  ;;  %9854 = vst [vmem:[#allocation14_spill] sm:$0xff] %v8530_v22 }
 0x2cb   :  { %5757 = vmatpush1.msk.msra.mxu1 %vm348_vm0, %v8116_v5  ;;  %6110 = vmatprep.subr.mxu0 %v9776_v54 }
 0x2cc   :  { %3024 = vmatprep.subr.mxu1 %v8124_v24  ;;  %6124 = vmatprep.mubr.msk.f32.mxu0 %vm6621_vm2, %v9776_v54 }
 0x2cd   :  { %3025 = vmatpush1.msra.mxu1 %v8132_v25  ;;  %6111 = vmatpush3.msk.msra.mxu0 %vm2895_vm3, %v331_v55  ;;  %v8533_v55 = vld [vmem:[#allocation4 + $0xb0] sm:$0xff] }
 0x2ce   :  { %3026 = vmatprep.subr.mxu1 %v8138_v58  ;;  %6112 = vmatprep.subr.mxu0 %v9776_v54  ;;  %9855 = vst [vmem:[#allocation15_spill] sm:$0xff] %v8533_v55 }
 0x2cf   :  { %3027 = vmatpush1.msra.mxu1 %v8144_v53  ;;  %6113 = vmatpush3.msra.mxu0 %v330_v28  ;;  %v8536_v28 = vld [vmem:[#allocation4 + $0xa8] sm:$0xff] }
 0x2d0   :  { %3028 = vmatprep.subr.mxu1 %v8150_v26  ;;  %6114 = vmatprep.subr.mxu0 %v9776_v54  ;;  %9856 = vst [vmem:[#allocation16_spill] sm:$0xff] %v8536_v28 }
 0x2d1   :  { %3029 = vmatpush1.msra.mxu1 %v8156_v0  ;;  %6115 = vmatpush3.msra.mxu0 %v329_v30  ;;  %v8539_v30 = vld [vmem:[#allocation4 + $0xa0] sm:$0xff] }
 0x2d2   :  { %5759 = vmatprep.subr.msk.mxu1 %vm348_vm0, %v8162_v27  ;;  %5758 = vmatmul.mubr.msk.f32.vlgmr.msra.gmra.mxu1 %vm344_vm1, %v8169_v52  ;;  %9857 = vst [vmem:[#allocation17_spill] sm:$0xff] %v8539_v30 }
 0x2d3   :  { %5760 = vmatpush1.msk.msra.mxu1 %vm348_vm0, %v8183_v29  ;;  %6116 = vmatprep.subr.mxu0 %v9776_v54 }
 0x2d4   :  { %3098 = vmatprep.subr.mxu1 %v8194_v31  ;;  %3136 = vmatprep.mubr.f32.mxu1 %v9776_v54 }
 0x2d5   :  { %3099 = vmatpush1.msra.mxu1 %v8200_v32  ;;  %6117 = vmatpush3.msra.mxu0 %v328_v56  ;;  %v8542_v56 = vld [vmem:[#allocation4 + $0x98] sm:$0xff] }
 0x2d6   :  { %3100 = vmatprep.subr.mxu1 %v8207_v2  ;;  %6118 = vmatprep.subr.mxu0 %v9776_v54  ;;  %9858 = vst [vmem:[#allocation18_spill] sm:$0xff] %v8542_v56 }
 0x2d7   :  { %3101 = vmatpush1.msra.mxu1 %v8213_v16  ;;  %6119 = vmatpush3.msra.mxu0 %v327_v11 }
 0x2d8   :  { %3102 = vmatprep.subr.mxu1 %v8220_v14  ;;  %6120 = vmatprep.subr.mxu0 %v9776_v54 }
 0x2d9   :  { %3103 = vmatpush1.msra.mxu1 %v8227_v57  ;;  %6121 = vmatpush3.msra.mxu0 %v326_v33  ;;  %v8545_v33 = vld [vmem:[#allocation4 + $0x90] sm:$0xff] }
 0x2da   :  { %5765 = vmatprep.subr.msk.mxu1 %vm348_vm0, %v8233_v51  ;;  %5761 = vmatmul.mubr.msk.f32.vlgmr.msra.gmra.mxu1 %vm344_vm1, %v5748_v17  ;;  %9859 = vst [vmem:[#allocation19_spill] sm:$0xff] %v8545_v33 }
 0x2db   :  { %5766 = vmatpush1.msk.msra.mxu1 %vm348_vm0, %v8251_v60  ;;  %6122 = vmatprep.subr.mxu0 %v9776_v54 }
 0x2dc   :  { %3248 = vmatprep.subr.mxu1 %v8258_v9  ;;  %6123 = vmatpush3.msra.mxu0 %v325_v36  ;;  %v8548_v36 = vld [vmem:[#allocation4 + $0x88] sm:$0xff] }
 0x2dd   :  { %3249 = vmatpush1.msra.mxu1 %v8268_v34  ;;  %5762 = vmatprep.subr.msk.mxu0 %vm348_vm0, %v8296_v39  ;;  %9860 = vst [vmem:[#allocation20_spill] sm:$0xff] %v8548_v36 }
 0x2de   :  { %3250 = vmatprep.subr.mxu1 %v8274_v35  ;;  %3286 = vmatprep.mubr.f32.mxu1 %v9776_v54 }
 0x2df   :  { %3251 = vmatpush1.msra.mxu1 %v8284_v37 }
 0x2e0   :  { %3252 = vmatprep.subr.mxu1 %v8290_v38 }
 0x2e1   :  { %3253 = vmatpush1.msra.mxu1 %v8303_v40 }
 0x2e2   :  { %5771 = vmatprep.subr.msk.mxu1 %vm348_vm0, %v8108_v23  ;;  %5767 = vmatmul.mubr.msk.f32.vlgmr.msra.gmra.mxu1 %vm344_vm1, %v8312_v41 }
 0x2e3   :  { %5772 = vmatpush1.msk.msra.mxu1 %vm348_vm0, %v8116_v5  ;;  %3435 = vmatprep.mubr.f32.mxu1 %v9776_v54 }
 0x2e4   :  { %3397 = vmatprep.subr.mxu1 %v8124_v24 }
 0x2e5   :  { %3398 = vmatpush1.msra.mxu1 %v8132_v25 }
 0x2e6   :  { %3399 = vmatprep.subr.mxu1 %v8138_v58 }
 0x2e7   :  { %3400 = vmatpush1.msra.mxu1 %v8144_v53 }
 0x2e8   :  { %3401 = vmatprep.subr.mxu1 %v8150_v26 }
 0x2e9   :  { %3402 = vmatpush1.msra.mxu1 %v8156_v0 }
 0x2ea   :  { %5777 = vmatprep.subr.msk.mxu1 %vm348_vm0, %v8296_v39  ;;  %5773 = vmatmul.mubr.msk.f32.vlgmr.msra.gmra.mxu1 %vm344_vm1, %v8327_v10 }
 0x2eb   :  { %5778 = vmatpush1.msk.msra.mxu1 %vm348_vm0, %v8337_v42  ;;  %3577 = vmatprep.mubr.f32.mxu1 %v9776_v54 }
 0x2ec   :  { %3539 = vmatprep.subr.mxu1 %v8345_v43 }
 0x2ed   :  { %3540 = vmatpush1.msra.mxu1 %v8351_v44 }
 0x2ee   :  { %3541 = vmatprep.subr.mxu1 %v8357_v45 }
 0x2ef   :  { %3542 = vmatpush1.msra.mxu1 %v8363_v7 }
 0x2f0   :  { %3543 = vmatprep.subr.mxu1 %v8369_v46 }
 0x2f1   :  { %3544 = vmatpush1.msra.mxu1 %v8375_v47 }
 0x2f2   :  { %5783 = vmatprep.subr.msk.mxu1 %vm348_vm0, %v8381_v8  ;;  %5779 = vmatmul.mubr.msk.f32.vlgmr.msra.gmra.mxu1 %vm344_vm1, %v8312_v41 }
 0x2f3   :  { %5784 = vmatpush1.msk.msra.mxu1 %vm348_vm0, %v8390_v13  ;;  %3726 = vmatprep.mubr.f32.mxu1 %v9776_v54 }
 0x2f4   :  { %3688 = vmatprep.subr.mxu1 %v8398_v61 }
 0x2f5   :  { %3689 = vmatpush1.msra.mxu1 %v8404_v3 }
 0x2f6   :  { %3690 = vmatprep.subr.mxu1 %v8410_v4 }
 0x2f7   :  { %3691 = vmatpush1.msra.mxu1 %v8416_v12 }
 0x2f8   :  { %3692 = vmatprep.subr.mxu1 %v8422_v63 }
 0x2f9   :  { %3693 = vmatpush1.msra.mxu1 %v8428_v19 }
 0x2fa   :  { %5789 = vmatprep.subr.msk.mxu1 %vm348_vm0, %v8162_v27  ;;  %5785 = vmatmul.mubr.msk.f32.vlgmr.msra.gmra.mxu1 %vm344_vm1, %v5753_v50 }
 0x2fb   :  { %5790 = vmatpush1.msk.msra.mxu1 %vm348_vm0, %v8183_v29  ;;  %3876 = vmatprep.mubr.f32.mxu1 %v9776_v54 }
 0x2fc   :  { %3838 = vmatprep.subr.mxu1 %v8194_v31 }
 0x2fd   :  { %3839 = vmatpush1.msra.mxu1 %v8200_v32 }
 0x2fe   :  { %3840 = vmatprep.subr.mxu1 %v8207_v2 }
 0x2ff   :  { %3841 = vmatpush1.msra.mxu1 %v8213_v16 }
 0x300   :  { %3842 = vmatprep.subr.mxu1 %v8220_v14 }
 0x301   :  { %3843 = vmatpush1.msra.mxu1 %v8227_v57 }
 0x302   :  { %5791 = vmatmul.mubr.msk.f32.vlgmr.msra.gmra.mxu1 %vm344_vm1, %v8327_v10  ;;  %5795 = vmatprep.subr.msk.mxu1 %vm348_vm0, %v8233_v51 }
 0x303   :  { %5796 = vmatpush1.msk.msra.mxu1 %vm348_vm0, %v8251_v60  ;;  %4020 = vmatprep.mubr.f32.mxu1 %v9776_v54 }
 0x304   :  { %3982 = vmatprep.subr.mxu1 %v8258_v9 }
 0x305   :  { %3983 = vmatpush1.msra.mxu1 %v8268_v34 }
 0x306   :  { %3984 = vmatprep.subr.mxu1 %v8274_v35 }
 0x307   :  { %3985 = vmatpush1.msra.mxu1 %v8284_v37 }
 0x308   :  { %3986 = vmatprep.subr.mxu1 %v8290_v38 }
 0x309   :  { %3987 = vmatpush1.msra.mxu1 %v8303_v40 }
 0x30a   :  { %5801 = vmatprep.subr.msk.mxu1 %vm348_vm0, %v8108_v23  ;;  %5797 = vmatmul.mubr.msk.f32.vlgmr.msra.gmra.mxu1 %vm344_vm1, %v5753_v50 }
 0x30b   :  { %5802 = vmatpush1.msk.msra.mxu1 %vm348_vm0, %v8116_v5  ;;  %4169 = vmatprep.mubr.f32.mxu1 %v9776_v54 }
 0x30c   :  { %4131 = vmatprep.subr.mxu1 %v8124_v24 }
 0x30d   :  { %4132 = vmatpush1.msra.mxu1 %v8132_v25 }
 0x30e   :  { %4133 = vmatprep.subr.mxu1 %v8138_v58 }
 0x30f   :  { %4134 = vmatpush1.msra.mxu1 %v8144_v53 }
 0x310   :  { %4135 = vmatprep.subr.mxu1 %v8150_v26 }
 0x311   :  { %4136 = vmatpush1.msra.mxu1 %v8156_v0 }
 0x312   :  { %5807 = vmatprep.subr.msk.mxu1 %vm348_vm0, %v8296_v39  ;;  %5803 = vmatmul.mubr.msk.f32.vlgmr.msra.gmra.mxu1 %vm344_vm1, %v8473_v49 }
 0x313   :  { %5808 = vmatpush1.msk.msra.mxu1 %vm348_vm0, %v8337_v42  ;;  %4311 = vmatprep.mubr.f32.mxu1 %v9776_v54 }
 0x314   :  { %4273 = vmatprep.subr.mxu1 %v8345_v43 }
 0x315   :  { %4274 = vmatpush1.msra.mxu1 %v8351_v44 }
 0x316   :  { %4275 = vmatprep.subr.mxu1 %v8357_v45 }
 0x317   :  { %4276 = vmatpush1.msra.mxu1 %v8363_v7 }
 0x318   :  { %4277 = vmatprep.subr.mxu1 %v8369_v46 }
 0x319   :  { %4278 = vmatpush1.msra.mxu1 %v8375_v47 }
 0x31a   :  { %5813 = vmatprep.subr.msk.mxu1 %vm348_vm0, %v8381_v8  ;;  %5809 = vmatmul.mubr.msk.f32.vlgmr.msra.gmra.mxu1 %vm344_vm1, %v5753_v50 }
 0x31b   :  { %5814 = vmatpush1.msk.msra.mxu1 %vm348_vm0, %v8390_v13  ;;  %4460 = vmatprep.mubr.f32.mxu1 %v9776_v54 }
 0x31c   :  { %4422 = vmatprep.subr.mxu1 %v8398_v61 }
 0x31d   :  { %4423 = vmatpush1.msra.mxu1 %v8404_v3 }
 0x31e   :  { %4424 = vmatprep.subr.mxu1 %v8410_v4 }
 0x31f   :  { %4425 = vmatpush1.msra.mxu1 %v8416_v12 }
 0x320   :  { %4426 = vmatprep.subr.mxu1 %v8422_v63 }
 0x321   :  { %4427 = vmatpush1.msra.mxu1 %v8428_v19 }
 0x322   :  { %5815 = vmatmul.mubr.msk.f32.vlgmr.msra.gmra.mxu1 %vm344_vm1, %v5755_v1  ;;  %4552 = vmatprep.subr.mxu1 %v8505_v48 }
 0x323   :  { %4553 = vmatpush1.msra.mxu1 %v8508_v6  ;;  %4616 = vmatprep.mubr.f32.mxu1 %v9776_v54 }
 0x324   :  { %4554 = vmatprep.subr.mxu1 %v8512_v18 }
 0x325   :  { %4555 = vmatpush1.msra.mxu1 %v8515_v62 }
 0x326   :  { %4556 = vmatprep.subr.mxu1 %v8518_v15 }
 0x327   :  { %4557 = vmatpush1.msra.mxu1 %v8521_v59 }
 0x328   :  { %4558 = vmatprep.subr.mxu1 %v8524_v20 }
 0x329   :  { %4559 = vmatpush1.msra.mxu1 %v8527_v21 }
 0x32a   :  { %4560 = vmatprep.subr.mxu1 %v8530_v22 }
 0x32b   :  { %4561 = vmatpush1.msra.mxu1 %v8533_v55  ;;  %v8560_v55 = vld [vmem:[#allocation4 + $0x68] sm:$0xff] }
 0x32c   :  { %4562 = vmatprep.subr.mxu1 %v8536_v28  ;;  %v8551_v28 = vld [vmem:[#allocation4 + $0x80] sm:$0xff]  ;;  %9864 = vst [vmem:[#allocation24_spill] sm:$0xff] %v8560_v55 }
 0x32d   :  { %4563 = vmatpush1.msra.mxu1 %v8539_v30  ;;  %9861 = vst [vmem:[#allocation21_spill] sm:$0xff] %v8551_v28  ;;  %v8554_v30 = vld [vmem:[#allocation4 + $0x78] sm:$0xff] }
 0x32e   :  { %4564 = vmatprep.subr.mxu1 %v8542_v56  ;;  %9862 = vst [vmem:[#allocation22_spill] sm:$0xff] %v8554_v30  ;;  %v8557_v56 = vld [vmem:[#allocation4 + $0x70] sm:$0xff] }
 0x32f   :  { %4565 = vmatpush1.msra.mxu1 %v8545_v33  ;;  %9863 = vst [vmem:[#allocation23_spill] sm:$0xff] %v8557_v56  ;;  %v8563_v33 = vld [vmem:[#allocation4 + $0x60] sm:$0xff] }
 0x330   :  { %4566 = vmatprep.subr.mxu1 %v8548_v36  ;;  %9865 = vst [vmem:[#allocation25_spill] sm:$0xff] %v8563_v33 }
 0x331   :  { %4567 = vmatpush1.msra.mxu1 %v8551_v28 }
 0x332   :  { %4568 = vmatprep.subr.mxu1 %v8554_v30  ;;  %v8572_v30 = vld [vmem:[#allocation4 + $0x48] sm:$0xff] }
 0x333   :  { %4569 = vmatpush1.msra.mxu1 %v8557_v56  ;;  %9868 = vst [vmem:[#allocation28_spill] sm:$0xff] %v8572_v30  ;;  %v8575_v56 = vld [vmem:[#allocation4 + $0x40] sm:$0xff] }
 0x334   :  { %4570 = vmatprep.subr.mxu1 %v8560_v55  ;;  %9869 = vst [vmem:[#allocation29_spill] sm:$0xff] %v8575_v56  ;;  %v8578_v55 = vld [vmem:[#allocation4 + $0x38] sm:$0xff] }
 0x335   :  { %4571 = vmatpush1.msra.mxu1 %v8563_v33  ;;  %9870 = vst [vmem:[#allocation30_spill] sm:$0xff] %v8578_v55  ;;  %v8581_v33 = vld [vmem:[#allocation4 + $0x30] sm:$0xff] }
 0x336   :  { %9871 = vst [vmem:[#allocation31_spill] sm:$0xff] %v8581_v33 }
 0x368   :  { %v2671_v17 = vpop.f32.mrf.mxu0  ;;  %v2741_v11 = vpop.f32.mrf.mxu1 }
 0x36a   :  { %v6004_v50 = vpop.f32.mrf.mxu0  ;;  %v6039_v1 = vpop.f32.mrf.mxu1 }
 0x36b   :  { %v8566_v50 = vld [vmem:[#allocation4 + $0x58] sm:$0xff]  ;;  %v8569_v1 = vld [vmem:[#allocation4 + $0x50] sm:$0xff] }
 0x36c   :  { %9866 = vst [vmem:[#allocation26_spill] sm:$0xff] %v8566_v50  ;;  %4572 = vmatprep.subr.mxu1 %v8566_v50  ;;  %9867 = vst [vmem:[#allocation27_spill] sm:$0xff] %v8569_v1  ;;  %v8584_v50 = vld [vmem:[#allocation4 + $0x28] sm:$0xff] }
 0x36d   :  { %4573 = vmatpush1.msra.mxu1 %v8569_v1  ;;  %9872 = vst [vmem:[#allocation32_spill] sm:$0xff] %v8584_v50  ;;  %v8587_v1 = vld [vmem:[#allocation4 + $0x20] sm:$0xff] }
 0x36e   :  { %4574 = vmatprep.subr.mxu1 %v8572_v30  ;;  %9873 = vst [vmem:[#allocation33_spill] sm:$0xff] %v8587_v1  ;;  %v8590_v30 = vld [vmem:[#allocation4 + $0x18] sm:$0xff] }
 0x36f   :  { %4575 = vmatpush1.msra.mxu1 %v8575_v56  ;;  %9874 = vst [vmem:[#allocation34_spill] sm:$0xff] %v8590_v30  ;;  %v8593_v56 = vld [vmem:[#allocation4 + $0x10] sm:$0xff] }
 0x370   :  { %4576 = vmatprep.subr.mxu1 %v8578_v55  ;;  %9875 = vst [vmem:[#allocation35_spill] sm:$0xff] %v8593_v56  ;;  %v8596_v55 = vld [vmem:[#allocation4 + $0x8] sm:$0xff] }
 0x371   :  { %4577 = vmatpush1.msra.mxu1 %v8581_v33  ;;  %9876 = vst [vmem:[#allocation36_spill] sm:$0xff] %v8596_v55  ;;  %v8599_v33 = vld [vmem:[#allocation4] sm:$0xff] }
 0x372   :  { %4578 = vmatprep.subr.mxu1 %v8584_v50  ;;  %9877 = vst [vmem:[#allocation37_spill] sm:$0xff] %v8599_v33  ;;  %v8602_v50 = vld [vmem:[#allocation4 + $0x3f8] sm:$0xff] }
 0x373   :  { %4579 = vmatpush1.msra.mxu1 %v8587_v1  ;;  %9878 = vst [vmem:[#allocation38_spill] sm:$0xff] %v8602_v50  ;;  %v2742_v1 = vadd.f32 %v2741_v11, %v2671_v17 }
 0x374   :  { %4580 = vmatprep.subr.mxu1 %v8590_v30 }
 0x375   :  { %4581 = vmatpush1.msra.mxu1 %v8593_v56  ;;  %v324_v56 = vld [vmem:[%s9631_s6] sm:$0x1] }
 0x376   :  { %4582 = vmatprep.subr.mxu1 %v8596_v55 }
 0x377   :  { %4583 = vmatpush1.msra.mxu1 %v8599_v33 }
 0x378   :  { %4696 = vmatprep.subr.mxu1 %v8602_v50 }
 0x389   :  { %v2812_v28 = vpop.f32.mrf.mxu0  ;;  %v2884_v36 = vpop.f32.mrf.mxu1 }
 0x38a   :  { %v2816_v30 = vadd.f32 %v2812_v28, %v2742_v1 }
 0x38b   :  { %v6074_v22 = vpop.f32.mrf.mxu0  ;;  %v6109_v21 = vpop.f32.mrf.mxu1 }
 0x38c   :  { %v2888_v20 = vadd.f32 %v2884_v36, %v2816_v30 }
 0x38e   :  { %v2889_v55 = vadd.f32 %v2888_v20, %v324_v56 }
 0x390   :  { %v2890_v59 = vmax.f32 %v2889_v55, 0.0 }
 0x392   :  { %6125 = vmatmul.mubr.msk.f32.vlgmr.msra.gmra.mxu0 %vm2891_vm4, %v2890_v59 }
 0x393   :  { %5763 = vmatpush1.msk.msra.mxu0 %vm348_vm0, %v8337_v42  ;;  %3210 = vmatprep.mubr.f32.mxu0 %v9776_v54 }
 0x394   :  { %3172 = vmatprep.subr.mxu0 %v8345_v43 }
 0x395   :  { %3173 = vmatpush1.msra.mxu0 %v8351_v44 }
 0x396   :  { %3174 = vmatprep.subr.mxu0 %v8357_v45 }
 0x397   :  { %3175 = vmatpush1.msra.mxu0 %v8363_v7 }
 0x398   :  { %3176 = vmatprep.subr.mxu0 %v8369_v46 }
 0x399   :  { %3177 = vmatpush1.msra.mxu0 %v8375_v47 }
 0x39a   :  { %5764 = vmatmul.mubr.msk.f32.vlgmr.msra.gmra.mxu0 %vm344_vm1, %v8327_v10  ;;  %5768 = vmatprep.subr.msk.mxu0 %vm348_vm0, %v8381_v8  ;;  %v8804_v10 = vld [vmem:[#allocation4 + $0x128] sm:$0xff] }
 0x39b   :  { %5769 = vmatpush1.msk.msra.mxu0 %vm348_vm0, %v8390_v13  ;;  %3362 = vmatprep.mubr.f32.mxu0 %v9776_v54 }
 0x39c   :  { %3324 = vmatprep.subr.mxu0 %v8398_v61 }
 0x39d   :  { %3325 = vmatpush1.msra.mxu0 %v8404_v3 }
 0x39e   :  { %3326 = vmatprep.subr.mxu0 %v8410_v4 }
 0x39f   :  { %3327 = vmatpush1.msra.mxu0 %v8416_v12 }
 0x3a0   :  { %3328 = vmatprep.subr.mxu0 %v8422_v63 }
 0x3a1   :  { %3329 = vmatpush1.msra.mxu0 %v8428_v19 }
 0x3a2   :  { %5770 = vmatmul.mubr.msk.f32.vlgmr.msra.gmra.mxu0 %vm344_vm1, %v8473_v49  ;;  %5774 = vmatprep.subr.msk.mxu0 %vm348_vm0, %v8162_v27 }
 0x3a3   :  { %5775 = vmatpush1.msk.msra.mxu0 %vm348_vm0, %v8183_v29  ;;  %3506 = vmatprep.mubr.f32.mxu0 %v9776_v54 }
 0x3a4   :  { %3468 = vmatprep.subr.mxu0 %v8194_v31 }
 0x3a5   :  { %3469 = vmatpush1.msra.mxu0 %v8200_v32 }
 0x3a6   :  { %3470 = vmatprep.subr.mxu0 %v8207_v2 }
 0x3a7   :  { %3471 = vmatpush1.msra.mxu0 %v8213_v16 }
 0x3a8   :  { %3472 = vmatprep.subr.mxu0 %v8220_v14 }
 0x3a9   :  { %3473 = vmatpush1.msra.mxu0 %v8227_v57 }
 0x3aa   :  { %5776 = vmatmul.mubr.msk.f32.vlgmr.msra.gmra.mxu0 %vm344_vm1, %v8169_v52  ;;  %5780 = vmatprep.subr.msk.mxu0 %vm348_vm0, %v8233_v51  ;;  %v8750_v52 = vld [vmem:[#allocation4 + $0x1b8] sm:$0xff] }
 0x3ab   :  { %5781 = vmatpush1.msk.msra.mxu0 %vm348_vm0, %v8251_v60  ;;  %3650 = vmatprep.mubr.f32.mxu0 %v9776_v54 }
 0x3ac   :  { %3612 = vmatprep.subr.mxu0 %v8258_v9 }
 0x3ad   :  { %3613 = vmatpush1.msra.mxu0 %v8268_v34 }
 0x3ae   :  { %3614 = vmatprep.subr.mxu0 %v8274_v35 }
 0x3af   :  { %3615 = vmatpush1.msra.mxu0 %v8284_v37 }
 0x3b0   :  { %3616 = vmatprep.subr.mxu0 %v8290_v38 }
 0x3b1   :  { %3617 = vmatpush1.msra.mxu0 %v8303_v40 }
 0x3b2   :  { %5782 = vmatmul.mubr.msk.f32.vlgmr.msra.gmra.mxu0 %vm344_vm1, %v8473_v49  ;;  %5786 = vmatprep.subr.msk.mxu0 %vm348_vm0, %v8108_v23  ;;  %v5754_v23 = vld [vmem:[%s9625_s0 + $0x31] sm:$0x3f] }
 0x3b3   :  { %5787 = vmatpush1.msk.msra.mxu0 %vm348_vm0, %v8116_v5  ;;  %3805 = vmatprep.mubr.f32.mxu0 %v9776_v54  ;;  %v8725_v5 = vld [vmem:[#allocation4 + $0x1f8] sm:$0xff] }
 0x3b4   :  { %3767 = vmatprep.subr.mxu0 %v8124_v24  ;;  %v8728_v24 = vld [vmem:[#allocation4 + $0x1f0] sm:$0xff] }
 0x3b5   :  { %3768 = vmatpush1.msra.mxu0 %v8132_v25  ;;  %v8732_v25 = vld [vmem:[#allocation4 + $0x1e8] sm:$0xff] }
 0x3b6   :  { %3769 = vmatprep.subr.mxu0 %v8138_v58  ;;  %v8735_v58 = vld [vmem:[#allocation4 + $0x1e0] sm:$0xff] }
 0x3b7   :  { %3770 = vmatpush1.msra.mxu0 %v8144_v53  ;;  %v8738_v53 = vld [vmem:[#allocation4 + $0x1d8] sm:$0xff] }
 0x3b8   :  { %3771 = vmatprep.subr.mxu0 %v8150_v26  ;;  %v8741_v26 = vld [vmem:[#allocation4 + $0x1d0] sm:$0xff] }
 0x3b9   :  { %3772 = vmatpush1.msra.mxu0 %v8156_v0  ;;  %v8744_v0 = vld [vmem:[#allocation4 + $0x1c8] sm:$0xff] }
 0x3ba   :  { %5788 = vmatmul.mubr.msk.f32.vlgmr.msra.gmra.mxu0 %vm344_vm1, %v8312_v41  ;;  %5792 = vmatprep.subr.msk.mxu0 %vm348_vm0, %v8296_v39  ;;  %v8795_v39 = vld [vmem:[#allocation4 + $0x140] sm:$0xff] }
 0x3bb   :  { %5793 = vmatpush1.msk.msra.mxu0 %vm348_vm0, %v8337_v42  ;;  %3947 = vmatprep.mubr.f32.mxu0 %v9776_v54  ;;  %v8807_v42 = vld [vmem:[#allocation4 + $0x120] sm:$0xff] }
 0x3bc   :  { %3909 = vmatprep.subr.mxu0 %v8345_v43  ;;  %v8810_v43 = vld [vmem:[#allocation4 + $0x118] sm:$0xff] }
 0x3bd   :  { %3910 = vmatpush1.msra.mxu0 %v8351_v44  ;;  %9879 = vst [vmem:[#allocation39_spill] sm:$0xff] %v8810_v43  ;;  %v8813_v44 = vld [vmem:[#allocation4 + $0x110] sm:$0xff] }
 0x3be   :  { %3911 = vmatprep.subr.mxu0 %v8357_v45  ;;  %9880 = vst [vmem:[#allocation40_spill] sm:$0xff] %v8813_v44  ;;  %v8816_v45 = vld [vmem:[#allocation4 + $0x108] sm:$0xff] }
 0x3bf   :  { %3912 = vmatpush1.msra.mxu0 %v8363_v7  ;;  %9881 = vst [vmem:[#allocation41_spill] sm:$0xff] %v8816_v45  ;;  %v8819_v7 = vld [vmem:[#allocation4 + $0x100] sm:$0xff] }
 0x3c0   :  { %3913 = vmatprep.subr.mxu0 %v8369_v46  ;;  %9882 = vst [vmem:[#allocation42_spill] sm:$0xff] %v8819_v7  ;;  %v8822_v46 = vld [vmem:[#allocation4 + $0x2f8] sm:$0xff] }
 0x3c1   :  { %3914 = vmatpush1.msra.mxu0 %v8375_v47  ;;  %9883 = vst [vmem:[#allocation47_spill] sm:$0xff] %v8822_v46  ;;  %v3064_v47 = vpop.f32.mrf.mxu1 }
 0x3c2   :  { %5794 = vmatmul.mubr.msk.f32.vlgmr.msra.gmra.mxu0 %vm344_vm1, %v8473_v49  ;;  %5798 = vmatprep.subr.msk.mxu0 %vm348_vm0, %v8381_v8  ;;  %v332_v8 = vld [vmem:[%s9633_s8] sm:$0x1] }
 0x3c3   :  { %5799 = vmatpush1.msk.msra.mxu0 %vm348_vm0, %v8390_v13  ;;  %4096 = vmatprep.mubr.f32.mxu0 %v9776_v54 }
 0x3c4   :  { %4058 = vmatprep.subr.mxu0 %v8398_v61 }
 0x3c5   :  { %4059 = vmatpush1.msra.mxu0 %v8404_v3  ;;  %v3066_v3 = vpop.f32.mrf.mxu1 }
 0x3c6   :  { %4060 = vmatprep.subr.mxu0 %v8410_v4 }
 0x3c7   :  { %4061 = vmatpush1.msra.mxu0 %v8416_v12 }
 0x3c8   :  { %4062 = vmatprep.subr.mxu0 %v8422_v63  ;;  %v3138_v63 = vpop.f32.mrf.mxu1 }
 0x3c9   :  { %4063 = vmatpush1.msra.mxu0 %v8428_v19 }
 0x3ca   :  { %5800 = vmatmul.mubr.msk.f32.vlgmr.msra.gmra.mxu0 %vm344_vm1, %v5754_v23  ;;  %5804 = vmatprep.subr.msk.mxu0 %vm348_vm0, %v8162_v27  ;;  %v8747_v27 = vld [vmem:[#allocation4 + $0x1c0] sm:$0xff]  ;;  %v3140_v19 = vpop.f32.mrf.mxu1 }
 0x3cb   :  { %5805 = vmatpush1.msk.msra.mxu0 %vm348_vm0, %v8183_v29  ;;  %4240 = vmatprep.mubr.f32.mxu0 %v9776_v54  ;;  %v8753_v29 = vld [vmem:[#allocation4 + $0x1b0] sm:$0xff] }
 0x3cc   :  { %4202 = vmatprep.subr.mxu0 %v8194_v31  ;;  %v8756_v31 = vld [vmem:[#allocation4 + $0x1a8] sm:$0xff]  ;;  %v3288_v59 = vpop.f32.mrf.mxu1 }
 0x3cd   :  { %4203 = vmatpush1.msra.mxu0 %v8200_v32  ;;  %v8759_v32 = vld [vmem:[#allocation4 + $0x1a0] sm:$0xff] }
 0x3ce   :  { %4204 = vmatprep.subr.mxu0 %v8207_v2  ;;  %v8762_v2 = vld [vmem:[#allocation4 + $0x198] sm:$0xff]  ;;  %v3290_v21 = vpop.f32.mrf.mxu1 }
 0x3cf   :  { %4205 = vmatpush1.msra.mxu0 %v8213_v16  ;;  %v8765_v16 = vld [vmem:[#allocation4 + $0x190] sm:$0xff] }
 0x3d0   :  { %4206 = vmatprep.subr.mxu0 %v8220_v14  ;;  %v8768_v14 = vld [vmem:[#allocation4 + $0x188] sm:$0xff]  ;;  %v3437_v55 = vpop.f32.mrf.mxu1 }
 0x3d1   :  { %4207 = vmatpush1.msra.mxu0 %v8227_v57  ;;  %v8771_v57 = vld [vmem:[#allocation4 + $0x180] sm:$0xff] }
 0x3d2   :  { %5806 = vmatmul.mubr.msk.f32.vlgmr.msra.gmra.mxu0 %vm344_vm1, %v8312_v41  ;;  %5810 = vmatprep.subr.msk.mxu0 %vm348_vm0, %v8233_v51  ;;  %v8774_v51 = vld [vmem:[#allocation4 + $0x178] sm:$0xff]  ;;  %v8801_v41 = vld [vmem:[#allocation4 + $0x130] sm:$0xff]  ;;  %v3439_v30 = vpop.f32.mrf.mxu1 }
 0x3d3   :  { %5811 = vmatpush1.msk.msra.mxu0 %vm348_vm0, %v8251_v60  ;;  %4384 = vmatprep.mubr.f32.mxu0 %v9776_v54  ;;  %v8777_v60 = vld [vmem:[#allocation4 + $0x170] sm:$0xff] }
 0x3d4   :  { %4346 = vmatprep.subr.mxu0 %v8258_v9  ;;  %v8780_v9 = vld [vmem:[#allocation4 + $0x168] sm:$0xff]  ;;  %v3579_v17 = vpop.f32.mrf.mxu1 }
 0x3d5   :  { %4347 = vmatpush1.msra.mxu0 %v8268_v34  ;;  %v8783_v34 = vld [vmem:[#allocation4 + $0x160] sm:$0xff] }
 0x3d6   :  { %4348 = vmatprep.subr.mxu0 %v8274_v35  ;;  %v8786_v35 = vld [vmem:[#allocation4 + $0x158] sm:$0xff]  ;;  %v3581_v1 = vpop.f32.mrf.mxu1 }
 0x3d7   :  { %4349 = vmatpush1.msra.mxu0 %v8284_v37  ;;  %v8789_v37 = vld [vmem:[#allocation4 + $0x150] sm:$0xff] }
 0x3d8   :  { %4350 = vmatprep.subr.mxu0 %v8290_v38  ;;  %v8792_v38 = vld [vmem:[#allocation4 + $0x148] sm:$0xff] }
 0x3d9   :  { %4351 = vmatpush1.msra.mxu0 %v8303_v40  ;;  %v8798_v40 = vld [vmem:[#allocation4 + $0x138] sm:$0xff] }
 0x3da   :  { %5812 = vmatmul.mubr.msk.f32.vlgmr.msra.gmra.mxu0 %vm344_vm1, %v5754_v23  ;;  %4481 = vmatprep.subr.mxu0 %v8725_v5  ;;  %v3139_v23 = vadd.f32 %v3138_v63, %v3064_v47  ;;  %v8835_v63 = vld [vmem:[%s9627_s2] ss:$0 sm:$0xff] }
 0x3db   :  { %4482 = vmatpush1.msra.mxu0 %v8728_v24  ;;  %4545 = vmatprep.mubr.f32.mxu0 %v9776_v54 }
 0x3dc   :  { %4483 = vmatprep.subr.mxu0 %v8732_v25 }
 0x3dd   :  { %4484 = vmatpush1.msra.mxu0 %v8735_v58 }
 0x3de   :  { %4485 = vmatprep.subr.mxu0 %v8738_v53 }
 0x3df   :  { %4486 = vmatpush1.msra.mxu0 %v8741_v26 }
 0x3e0   :  { %4487 = vmatprep.subr.mxu0 %v8744_v0 }
 0x3e1   :  { %4488 = vmatpush1.msra.mxu0 %v8747_v27 }
 0x3e2   :  { %4489 = vmatprep.subr.mxu0 %v8750_v52 }
 0x3e3   :  { %4490 = vmatpush1.msra.mxu0 %v8753_v29 }
 0x3e4   :  { %4491 = vmatprep.subr.mxu0 %v8756_v31 }
 0x3e5   :  { %4492 = vmatpush1.msra.mxu0 %v8759_v32 }
 0x3e6   :  { %4493 = vmatprep.subr.mxu0 %v8762_v2 }
 0x3e7   :  { %4494 = vmatpush1.msra.mxu0 %v8765_v16 }
 0x3e8   :  { %4495 = vmatprep.subr.mxu0 %v8768_v14 }
 0x3e9   :  { %4496 = vmatpush1.msra.mxu0 %v8771_v57 }
 0x3ea   :  { %4497 = vmatprep.subr.mxu0 %v8774_v51 }
 0x3eb   :  { %4498 = vmatpush1.msra.mxu0 %v8777_v60 }
 0x3ec   :  { %4499 = vmatprep.subr.mxu0 %v8780_v9 }
 0x3ed   :  { %4500 = vmatpush1.msra.mxu0 %v8783_v34 }
 0x3ee   :  { %4501 = vmatprep.subr.mxu0 %v8786_v35 }
 0x3ef   :  { %4502 = vmatpush1.msra.mxu0 %v8789_v37 }
 0x3f0   :  { %4503 = vmatprep.subr.mxu0 %v8792_v38 }
 0x3f1   :  { %4504 = vmatpush1.msra.mxu0 %v8795_v39 }
 0x3f2   :  { %4505 = vmatprep.subr.mxu0 %v8798_v40 }
 0x3f3   :  { %4506 = vmatpush1.msra.mxu0 %v8801_v41 }
 0x3f4   :  { %4507 = vmatprep.subr.mxu0 %v8804_v10 }
 0x3f5   :  { %4508 = vmatpush1.msra.mxu0 %v8807_v42 }
 0x3f6   :  { %4509 = vmatprep.subr.mxu0 %v8810_v43 }
 0x3f7   :  { %4510 = vmatpush1.msra.mxu0 %v8813_v44 }
 0x3f8   :  { %4511 = vmatprep.subr.mxu0 %v8816_v45 }
 0x3f9   :  { %4512 = vmatpush1.msra.mxu0 %v8819_v7 }
 0x3fa   :  { %4623 = vmatprep.subr.mxu0 %v8822_v46 }
 0x452   :  { %v2965_v13 = vpop.f32.mrf.mxu0 }
 0x453   :  { %v8828_v61 = vadd.f32 %v2965_v13, %v332_v8  ;;  %v3141_v8 = vadd.f32 %v3140_v19, %v3066_v3 }
 0x454   :  { %v6126_v4 = vpop.f32.mrf.mxu0 }
 0x455   :  { %9884 = vst [vmem:[#allocation48_spill] sm:$0xff] %v8828_v61  ;;  %v2970_v12 = vsel %vm2969_vm5, %v8828_v61, -inf  ;;  %v3728_v4 = vpop.f32.mrf.mxu1 }
 0x456   :  { %2971 = vmax.xlane.f32.xlu0 %v2970_v12 }
 0x457   :  { %v3730_v48 = vpop.f32.mrf.mxu1 }
 0x45a   :  { %v3212_v49 = vpop.f32.mrf.mxu0 }
 0x45b   :  { %v3217_v12 = vadd.f32 %v3212_v49, %v3139_v23  ;;  %v3878_v49 = vpop.f32.mrf.mxu1  ;;  %v8870_v23 = vld [vmem:[#allocation4 + $0x3a8] sm:$0xff] }
 0x45c   :  { %v3214_v20 = vpop.f32.mrf.mxu0  ;;  %9885 = vst [vmem:[#allocation49_spill] sm:$0xff] %v8870_v23 }
 0x45d   :  { %v3218_v50 = vadd.f32 %v3214_v20, %v3141_v8  ;;  %v3293_v61 = vadd.f32 %v3288_v59, %v3217_v12  ;;  %v8852_v59 = vld [vmem:[#allocation4 + $0x3d8] sm:$0xff] }
 0x45f   :  { %v3294_v46 = vadd.f32 %v3290_v21, %v3218_v50  ;;  %v8855_v21 = vld [vmem:[#allocation4 + $0x3d0] sm:$0xff] }
 0x462   :  { %v3364_v22 = vpop.f32.mrf.mxu0 }
 0x463   :  { %v3369_v44 = vadd.f32 %v3364_v22, %v3293_v61  ;;  %v8849_v61 = vld [vmem:[#allocation4 + $0x3e0] sm:$0xff]  ;;  %v8858_v22 = vld [vmem:[#allocation4 + $0x3c8] sm:$0xff] }
 0x464   :  { %v3366_v28 = vpop.f32.mrf.mxu0 }
 0x465   :  { %v3370_v43 = vadd.f32 %v3366_v28, %v3294_v46 }
 0x46a   :  { %v3508_v56 = vpop.f32.mrf.mxu0 }
 0x46b   :  { %v3509_v36 = vadd.f32 %v3508_v56, %v3437_v55 }
 0x46c   :  { %v3510_v11 = vpop.f32.mrf.mxu0 }
 0x46d   :  { %v3511_v13 = vadd.f32 %v3510_v11, %v3439_v30  ;;  %v3584_v33 = vadd.f32 %v3579_v17, %v3509_v36  ;;  %v8861_v30 = vld [vmem:[#allocation4 + $0x3c0] sm:$0xff]  ;;  %v8864_v17 = vld [vmem:[#allocation4 + $0x3b8] sm:$0xff] }
 0x46f   :  { %v3585_v62 = vadd.f32 %v3581_v1, %v3511_v13  ;;  %v8867_v1 = vld [vmem:[#allocation4 + $0x3b0] sm:$0xff] }
 0x472   :  { %v3652_v15 = vpop.f32.mrf.mxu0 }
 0x473   :  { %v3657_v18 = vadd.f32 %v3652_v15, %v3584_v33 }
 0x474   :  { %v3654_v6 = vpop.f32.mrf.mxu0 }
 0x475   :  { %v3733_v7 = vadd.f32 %v3728_v4, %v3657_v18  ;;  %v3658_v45 = vadd.f32 %v3654_v6, %v3585_v62  ;;  %v3880_v18 = vpop.f32.mrf.mxu1  ;;  %v8873_v4 = vld [vmem:[#allocation4 + $0x3a0] sm:$0xff] }
 0x476   :  { %9886 = vst [vmem:[#allocation50_spill] sm:$0xff] %v8873_v4 }
 0x477   :  { %v3734_v55 = vadd.f32 %v3730_v48, %v3658_v45  ;;  %v3735_v56 = vmax.f32 %v3369_v44, %v3733_v7  ;;  %v8838_v62 = vpop.f32.mrf.mxu1  ;;  %v8840_v44 = vld [vmem:[#allocation4 + $0x3f0] sm:$0xff]  ;;  %v8844_v45 = vld [vmem:[#allocation4 + $0x3e8] sm:$0xff] }
 0x479   :  { %v3736_v47 = vmax.f32 %v3370_v43, %v3734_v55  ;;  %v4024_v7 = vpop.f32.mrf.mxu1  ;;  %v8876_v55 = vld [vmem:[#allocation4 + $0x398] sm:$0xff] }
 0x47a   :  { %v3807_v33 = vpop.f32.mrf.mxu0  ;;  %9887 = vst [vmem:[#allocation51_spill] sm:$0xff] %v8876_v55 }
 0x47b   :  { %v3737_v3 = vmax.f32 %v3735_v56, %v3736_v47  ;;  %v4171_v20 = vpop.f32.mrf.mxu1  ;;  %v8879_v56 = vld [vmem:[#allocation4 + $0x390] sm:$0xff]  ;;  %v3879_v47 = vadd.f32 %v3878_v49, %v3807_v33 }
 0x47c   :  { %v3809_v50 = vpop.f32.mrf.mxu0  ;;  %9888 = vst [vmem:[#allocation52_spill] sm:$0xff] %v8879_v56  ;;  %v8891_v49 = vld [vmem:[#allocation4 + $0x370] sm:$0xff] }
 0x47d   :  { %v3738_v19 = vadd.f32 %v8835_v63, %v3737_v3  ;;  %v4173_v11 = vpop.f32.mrf.mxu1  ;;  %v3881_v3 = vadd.f32 %v3880_v18, %v3809_v50  ;;  %9889 = vst [vmem:[#allocation53_spill] sm:$0xff] %v8891_v49 }
 0x47f   :  { %v3739_v15 = vmax.f32 %v3738_v19, 0.0  ;;  %v4313_v8 = vpop.f32.mrf.mxu1 }
 0x481   :  { %3740 = vst [vmem:[#allocation2] sm:$0x3f] %v3739_v15  ;;  %v8882_v15 = vld [vmem:[#allocation4 + $0x388] sm:$0xff] }
 0x482   :  { %v3949_v6 = vpop.f32.mrf.mxu0 }
 0x484   :  { %v3951_v43 = vpop.f32.mrf.mxu0 }
 0x488   :  { %v4475_v48 = vld [vmem:[#allocation2] sm:$0xf] }
 0x489   :  { %4617 = vmatmul.mubr.f32.vlgmr.msra.gmra.mxu1 %v4475_v48  ;;  %v4315_v48 = vpop.f32.mrf.mxu1 }
 0x48a   :  { %4697 = vmatpush1.msra.mxu1 %v8840_v44  ;;  %4760 = vmatprep.mubr.f32.mxu1 %v9776_v54  ;;  %v8847_v46 = vpop.f32.mrf.mxu0 }
 0x48b   :  { %4698 = vmatprep.subr.mxu1 %v8844_v45  ;;  %v4462_v33 = vpop.f32.mrf.mxu1 }
 0x48c   :  { %4699 = vmatpush1.msra.mxu1 %v8849_v61  ;;  %v4100_v28 = vpop.f32.mrf.mxu0 }
 0x48d   :  { %4700 = vmatprep.subr.mxu1 %v8852_v59 }
 0x48e   :  { %4701 = vmatpush1.msra.mxu1 %v8855_v21 }
 0x48f   :  { %4702 = vmatprep.subr.mxu1 %v8858_v22 }
 0x490   :  { %4703 = vmatpush1.msra.mxu1 %v8861_v30 }
 0x491   :  { %4704 = vmatprep.subr.mxu1 %v8864_v17 }
 0x492   :  { %v4242_v36 = vpop.f32.mrf.mxu0  ;;  %4705 = vmatpush1.msra.mxu1 %v8867_v1 }
 0x493   :  { %4706 = vmatprep.subr.mxu1 %v8870_v23  ;;  %v4243_v12 = vadd.f32 %v4242_v36, %v4171_v20  ;;  %v8885_v23 = vld [vmem:[#allocation4 + $0x380] sm:$0xff]  ;;  %v3954_v20 = vadd.f32 %v3949_v6, %v3879_v47  ;;  %v3955_v36 = vadd.f32 %v3951_v43, %v3881_v3  ;;  %v8901_v3 = vld [vmem:[#allocation4 + $0x358] sm:$0xff] }
 0x494   :  { %v4244_v13 = vpop.f32.mrf.mxu0  ;;  %4707 = vmatpush1.msra.mxu1 %v8873_v4  ;;  %v8897_v6 = vld [vmem:[#allocation4 + $0x360] sm:$0xff] }
 0x495   :  { %4708 = vmatprep.subr.mxu1 %v8876_v55  ;;  %v4245_v19 = vadd.f32 %v4244_v13, %v4173_v11  ;;  %v4318_v4 = vadd.f32 %v4313_v8, %v4243_v12  ;;  %v8888_v55 = vld [vmem:[#allocation4 + $0x378] sm:$0xff]  ;;  %v8894_v11 = vld [vmem:[#allocation4 + $0x368] sm:$0xff]  ;;  %v4027_v43 = vadd.f32 %v8838_v62, %v3954_v20  ;;  %v4028_v8 = vadd.f32 %v4024_v7, %v3955_v36  ;;  %v8911_v62 = vld [vmem:[#allocation4 + $0x340] sm:$0xff] }
 0x496   :  { %4709 = vmatpush1.msra.mxu1 %v8879_v56  ;;  %9890 = vst [vmem:[#allocation54_spill] sm:$0xff] %v8894_v11  ;;  %v8914_v36 = vld [vmem:[#allocation4 + $0x338] sm:$0xff] }
 0x497   :  { %4710 = vmatprep.subr.mxu1 %v8882_v15  ;;  %v4319_v50 = vadd.f32 %v4315_v48, %v4245_v19  ;;  %v4464_v19 = vpop.f32.mrf.mxu1  ;;  %v4104_v48 = vadd.f32 %v4100_v28, %v4028_v8  ;;  %v8920_v28 = vld [vmem:[#allocation4 + $0x328] sm:$0xff] }
 0x498   :  { %4711 = vmatpush1.msra.mxu1 %v8885_v23  ;;  %v8933_v8 = vld [vmem:[#allocation4 + $0x308] sm:$0xff] }
 0x499   :  { %4712 = vmatprep.subr.mxu1 %v8888_v55  ;;  %9893 = vst [vmem:[#allocation57_spill] sm:$0xff] %v8933_v8 }
 0x49a   :  { %v4386_v56 = vpop.f32.mrf.mxu0  ;;  %4713 = vmatpush1.msra.mxu1 %v8891_v49  ;;  %v8908_v49 = vld [vmem:[#allocation4 + $0x348] sm:$0xff] }
 0x49b   :  { %v4391_v18 = vadd.f32 %v4386_v56, %v4318_v4  ;;  %4714 = vmatprep.subr.mxu1 %v8894_v11  ;;  %v8904_v4 = vld [vmem:[#allocation4 + $0x350] sm:$0xff]  ;;  %v4103_v56 = vadd.f32 %v8847_v46, %v4027_v43 }
 0x49c   :  { %v4388_v13 = vpop.f32.mrf.mxu0  ;;  %4715 = vmatpush1.msra.mxu1 %v8897_v6 }
 0x49d   :  { %v4467_v12 = vadd.f32 %v4462_v33, %v4391_v18  ;;  %v4392_v47 = vadd.f32 %v4388_v13, %v4319_v50  ;;  %4716 = vmatprep.subr.mxu1 %v8901_v3  ;;  %v8917_v33 = vld [vmem:[#allocation4 + $0x330] sm:$0xff]  ;;  %v8923_v50 = vld [vmem:[#allocation4 + $0x320] sm:$0xff] }
 0x49e   :  { %4717 = vmatpush1.msra.mxu1 %v8904_v4  ;;  %v8930_v13 = vld [vmem:[#allocation4 + $0x310] sm:$0xff] }
 0x49f   :  { %v4468_v11 = vadd.f32 %v4464_v19, %v4392_v47  ;;  %4718 = vmatprep.subr.mxu1 %v8908_v49  ;;  %v4469_v7 = vmax.f32 %v4103_v56, %v4467_v12  ;;  %9892 = vst [vmem:[#allocation56_spill] sm:$0xff] %v8930_v13  ;;  %v8936_v12 = vld [vmem:[#allocation4 + $0x300] sm:$0xff]  ;;  %v8946_v19 = vld [vmem:[#allocation4 + $0x2f0] sm:$0xff]  ;;  %v8950_v56 = vld [vmem:[#allocation4 + $0x2e8] sm:$0xff] }
 0x4a0   :  { %4719 = vmatpush1.msra.mxu1 %v8911_v62  ;;  %9894 = vst [vmem:[#allocation58_spill] sm:$0xff] %v8936_v12 }
 0x4a1   :  { %v4470_v20 = vmax.f32 %v4104_v48, %v4468_v11  ;;  %4720 = vmatprep.subr.mxu1 %v8914_v36  ;;  %v8927_v11 = vld [vmem:[#allocation4 + $0x318] sm:$0xff] }
 0x4a2   :  { %4721 = vmatpush1.msra.mxu1 %v8917_v33  ;;  %9891 = vst [vmem:[#allocation55_spill] sm:$0xff] %v8927_v11  ;;  %v8958_v48 = vld [vmem:[#allocation4 + $0x2d8] sm:$0xff] }
 0x4a3   :  { %v4471_v46 = vmax.f32 %v4469_v7, %v4470_v20  ;;  %4722 = vmatprep.subr.mxu1 %v8920_v28  ;;  %v8962_v7 = vld [vmem:[#allocation4 + $0x2d0] sm:$0xff] }
 0x4a4   :  { %4723 = vmatpush1.msra.mxu1 %v8923_v50  ;;  %v9058_v20 = vld [vmem:[#allocation4 + $0x210] sm:$0xff] }
 0x4a5   :  { %v4472_v18 = vadd.f32 %v8835_v63, %v4471_v46  ;;  %4724 = vmatprep.subr.mxu1 %v8927_v11  ;;  %v9062_v46 = vld [vmem:[#allocation4 + $0x208] sm:$0xff]  ;;  %v9140_v11 = vld [vmem:[#allocation4 + $0x478] sm:$0xff] }
 0x4a6   :  { %4725 = vmatpush1.msra.mxu1 %v8930_v13  ;;  %v9131_v13 = vld [vmem:[#allocation4 + $0x488] sm:$0xff] }
 0x4a7   :  { %v4473_v43 = vmax.f32 %v4472_v18, 0.0  ;;  %4726 = vmatprep.subr.mxu1 %v8933_v8  ;;  %v9066_v18 = vld [vmem:[#allocation4 + $0x200] sm:$0xff] }
 0x4a8   :  { %4727 = vmatpush1.msra.mxu1 %v8936_v12  ;;  %v9080_v12 = vld [vmem:[#allocation4 + $0x4e8] sm:$0xff] }
 0x4a9   :  { %4474 = vst [vmem:[#allocation2 + $0x8] sm:$0x3f] %v4473_v43  ;;  %4842 = vmatprep.subr.mxu1 %v8725_v5  ;;  %v8954_v5 = vld [vmem:[#allocation4 + $0x2e0] sm:$0xff]  ;;  %v4477_v43 = vld [vmem:[#allocation2 + $0x1] sm:$0xf] }
 0x4b0   :  { %v8940_v63 = vld [vmem:[#allocation2 + $0x8] sm:$0xf] }
 0x4b1   :  { %v8942_v47 = vld [vmem:[#allocation2 + $0x9] sm:$0xf]  ;;  %4546 = vmatmul.mubr.f32.vlgmr.msra.gmra.mxu0 %v8940_v63 }
 0x4b2   :  { %4761 = vmatmul.mubr.f32.vlgmr.msra.gmra.mxu1 %v8942_v47  ;;  %4624 = vmatpush1.msra.mxu0 %v8946_v19 }
 0x4b3   :  { %4843 = vmatpush1.msra.mxu1 %v8728_v24  ;;  %4625 = vmatprep.subr.mxu0 %v8950_v56  ;;  %v8966_v24 = vld [vmem:[#allocation4 + $0x2c8] sm:$0xff] }
 0x4b4   :  { %4844 = vmatprep.subr.mxu1 %v8732_v25  ;;  %4626 = vmatpush1.msra.mxu0 %v8954_v5  ;;  %v8970_v25 = vld [vmem:[#allocation4 + $0x2c0] sm:$0xff] }
 0x4b5   :  { %4845 = vmatpush1.msra.mxu1 %v8735_v58  ;;  %4627 = vmatprep.subr.mxu0 %v8958_v48  ;;  %v8974_v58 = vld [vmem:[#allocation4 + $0x2b8] sm:$0xff] }
 0x4b6   :  { %4846 = vmatprep.subr.mxu1 %v8738_v53  ;;  %4628 = vmatpush1.msra.mxu0 %v8962_v7  ;;  %v8978_v53 = vld [vmem:[#allocation4 + $0x2b0] sm:$0xff] }
 0x4b7   :  { %4847 = vmatpush1.msra.mxu1 %v8741_v26  ;;  %4629 = vmatprep.subr.mxu0 %v8966_v24  ;;  %v8982_v26 = vld [vmem:[#allocation4 + $0x2a8] sm:$0xff] }
 0x4b8   :  { %4848 = vmatprep.subr.mxu1 %v8744_v0  ;;  %4630 = vmatpush1.msra.mxu0 %v8970_v25  ;;  %v8986_v0 = vld [vmem:[#allocation4 + $0x2a0] sm:$0xff] }
 0x4b9   :  { %4849 = vmatpush1.msra.mxu1 %v8747_v27  ;;  %4631 = vmatprep.subr.mxu0 %v8974_v58  ;;  %v8990_v27 = vld [vmem:[#allocation4 + $0x298] sm:$0xff] }
 0x4ba   :  { %4850 = vmatprep.subr.mxu1 %v8750_v52  ;;  %4632 = vmatpush1.msra.mxu0 %v8978_v53  ;;  %v8994_v52 = vld [vmem:[#allocation4 + $0x290] sm:$0xff] }
 0x4bb   :  { %4851 = vmatpush1.msra.mxu1 %v8753_v29  ;;  %4633 = vmatprep.subr.mxu0 %v8982_v26  ;;  %v8998_v29 = vld [vmem:[#allocation4 + $0x288] sm:$0xff] }
 0x4bc   :  { %4852 = vmatprep.subr.mxu1 %v8756_v31  ;;  %4634 = vmatpush1.msra.mxu0 %v8986_v0  ;;  %v9002_v31 = vld [vmem:[#allocation4 + $0x280] sm:$0xff] }
 0x4bd   :  { %4853 = vmatpush1.msra.mxu1 %v8759_v32  ;;  %4635 = vmatprep.subr.mxu0 %v8990_v27  ;;  %v9006_v32 = vld [vmem:[#allocation4 + $0x278] sm:$0xff] }
 0x4be   :  { %4854 = vmatprep.subr.mxu1 %v8762_v2  ;;  %4636 = vmatpush1.msra.mxu0 %v8994_v52  ;;  %v9010_v2 = vld [vmem:[#allocation4 + $0x270] sm:$0xff] }
 0x4bf   :  { %4855 = vmatpush1.msra.mxu1 %v8765_v16  ;;  %4637 = vmatprep.subr.mxu0 %v8998_v29  ;;  %v9014_v16 = vld [vmem:[#allocation4 + $0x268] sm:$0xff] }
 0x4c0   :  { %4856 = vmatprep.subr.mxu1 %v8768_v14  ;;  %4638 = vmatpush1.msra.mxu0 %v9002_v31  ;;  %v9018_v14 = vld [vmem:[#allocation4 + $0x260] sm:$0xff] }
 0x4c1   :  { %4857 = vmatpush1.msra.mxu1 %v8771_v57  ;;  %4639 = vmatprep.subr.mxu0 %v9006_v32  ;;  %v9022_v57 = vld [vmem:[#allocation4 + $0x258] sm:$0xff] }
 0x4c2   :  { %4858 = vmatprep.subr.mxu1 %v8774_v51  ;;  %4640 = vmatpush1.msra.mxu0 %v9010_v2  ;;  %v9026_v51 = vld [vmem:[#allocation4 + $0x250] sm:$0xff] }
 0x4c3   :  { %4859 = vmatpush1.msra.mxu1 %v8777_v60  ;;  %4641 = vmatprep.subr.mxu0 %v9014_v16  ;;  %v9030_v60 = vld [vmem:[#allocation4 + $0x248] sm:$0xff] }
 0x4c4   :  { %4860 = vmatprep.subr.mxu1 %v8780_v9  ;;  %4642 = vmatpush1.msra.mxu0 %v9018_v14  ;;  %v9034_v9 = vld [vmem:[#allocation4 + $0x240] sm:$0xff] }
 0x4c5   :  { %4861 = vmatpush1.msra.mxu1 %v8783_v34  ;;  %4643 = vmatprep.subr.mxu0 %v9022_v57  ;;  %v9038_v34 = vld [vmem:[#allocation4 + $0x238] sm:$0xff] }
 0x4c6   :  { %4862 = vmatprep.subr.mxu1 %v8786_v35  ;;  %4644 = vmatpush1.msra.mxu0 %v9026_v51  ;;  %v9042_v35 = vld [vmem:[#allocation4 + $0x230] sm:$0xff] }
 0x4c7   :  { %4863 = vmatpush1.msra.mxu1 %v8789_v37  ;;  %4645 = vmatprep.subr.mxu0 %v9030_v60  ;;  %v9046_v37 = vld [vmem:[#allocation4 + $0x228] sm:$0xff] }
 0x4c8   :  { %4864 = vmatprep.subr.mxu1 %v8792_v38  ;;  %4646 = vmatpush1.msra.mxu0 %v9034_v9  ;;  %v9050_v38 = vld [vmem:[#allocation4 + $0x220] sm:$0xff] }
 0x4c9   :  { %4865 = vmatpush1.msra.mxu1 %v8795_v39  ;;  %4647 = vmatprep.subr.mxu0 %v9038_v34  ;;  %v9054_v39 = vld [vmem:[#allocation4 + $0x218] sm:$0xff] }
 0x4ca   :  { %4866 = vmatprep.subr.mxu1 %v8798_v40  ;;  %4648 = vmatpush1.msra.mxu0 %v9042_v35  ;;  %v9895_v40 = vld [vmem:[#allocation39_spill] sm:$0xff] }
 0x4cb   :  { %4867 = vmatpush1.msra.mxu1 %v8801_v41  ;;  %4649 = vmatprep.subr.mxu0 %v9046_v37  ;;  %v9896_v41 = vld [vmem:[#allocation40_spill] sm:$0xff] }
 0x4cc   :  { %4868 = vmatprep.subr.mxu1 %v8804_v10  ;;  %4650 = vmatpush1.msra.mxu0 %v9050_v38  ;;  %v9897_v10 = vld [vmem:[#allocation41_spill] sm:$0xff] }
 0x4cd   :  { %4869 = vmatpush1.msra.mxu1 %v8807_v42  ;;  %4651 = vmatprep.subr.mxu0 %v9054_v39  ;;  %v9898_v42 = vld [vmem:[#allocation42_spill] sm:$0xff] }
 0x4ce   :  { %4870 = vmatprep.subr.mxu1 %v9895_v40  ;;  %4652 = vmatpush1.msra.mxu0 %v9058_v20  ;;  %v9072_v40 = vld [vmem:[#allocation4 + $0x4f8] sm:$0xff] }
 0x4cf   :  { %4871 = vmatpush1.msra.mxu1 %v9896_v41  ;;  %4653 = vmatprep.subr.mxu0 %v9062_v46  ;;  %v9899_v41 = vld [vmem:[#allocation47_spill] sm:$0xff] }
 0x4d0   :  { %4872 = vmatprep.subr.mxu1 %v9897_v10  ;;  %4654 = vmatpush1.msra.mxu0 %v9066_v18  ;;  %v9076_v10 = vld [vmem:[#allocation4 + $0x4f0] sm:$0xff] }
 0x4d1   :  { %4687 = vmatprep.mubr.f32.mxu0 %v9776_v54  ;;  %4873 = vmatpush1.msra.mxu1 %v9898_v42  ;;  %v9084_v42 = vld [vmem:[#allocation4 + $0x4e0] sm:$0xff] }
 0x4d2   :  { %4906 = vmatprep.mubr.f32.mxu1 %v9776_v54  ;;  %4688 = vmatmul.mubr.f32.vlgmr.msra.gmra.mxu0 %v4477_v43 }
 0x4d3   :  { %4769 = vmatprep.subr.mxu0 %v9072_v40  ;;  %4907 = vmatmul.mubr.f32.vlgmr.msra.gmra.mxu1 %v4477_v43  ;;  %v9088_v43 = vld [vmem:[#allocation4 + $0x4d8] sm:$0xff] }
 0x4d4   :  { %4984 = vmatprep.subr.mxu1 %v9899_v41  ;;  %4770 = vmatpush1.msra.mxu0 %v9076_v10  ;;  %v9092_v41 = vld [vmem:[#allocation4 + $0x4d0] sm:$0xff] }
 0x4d5   :  { %4985 = vmatpush1.msra.mxu1 %v8946_v19  ;;  %4771 = vmatprep.subr.mxu0 %v9080_v12  ;;  %v9096_v19 = vld [vmem:[#allocation4 + $0x4c8] sm:$0xff] }
 0x4d6   :  { %4986 = vmatprep.subr.mxu1 %v8950_v56  ;;  %4772 = vmatpush1.msra.mxu0 %v9084_v42  ;;  %v9100_v56 = vld [vmem:[#allocation4 + $0x4c0] sm:$0xff] }
 0x4d7   :  { %4987 = vmatpush1.msra.mxu1 %v8954_v5  ;;  %4773 = vmatprep.subr.mxu0 %v9088_v43  ;;  %v9104_v5 = vld [vmem:[#allocation4 + $0x4b8] sm:$0xff] }
 0x4d8   :  { %4988 = vmatprep.subr.mxu1 %v8958_v48  ;;  %4774 = vmatpush1.msra.mxu0 %v9092_v41  ;;  %v9108_v48 = vld [vmem:[#allocation4 + $0x4b0] sm:$0xff] }
 0x4d9   :  { %4989 = vmatpush1.msra.mxu1 %v8962_v7  ;;  %4775 = vmatprep.subr.mxu0 %v9096_v19  ;;  %v9112_v7 = vld [vmem:[#allocation4 + $0x4a8] sm:$0xff] }
 0x4da   :  { %4990 = vmatprep.subr.mxu1 %v8966_v24  ;;  %4776 = vmatpush1.msra.mxu0 %v9100_v56  ;;  %v9116_v24 = vld [vmem:[#allocation4 + $0x4a0] sm:$0xff] }
 0x4db   :  { %4991 = vmatpush1.msra.mxu1 %v8970_v25  ;;  %4777 = vmatprep.subr.mxu0 %v9104_v5  ;;  %v9120_v25 = vld [vmem:[#allocation4 + $0x498] sm:$0xff] }
 0x4dc   :  { %4992 = vmatprep.subr.mxu1 %v8974_v58  ;;  %4778 = vmatpush1.msra.mxu0 %v9108_v48 }
 0x4dd   :  { %4993 = vmatpush1.msra.mxu1 %v8978_v53  ;;  %4779 = vmatprep.subr.mxu0 %v9112_v7  ;;  %v9124_v53 = vld [vmem:[#allocation4 + $0x490] sm:$0xff] }
 0x4de   :  { %4994 = vmatprep.subr.mxu1 %v8982_v26  ;;  %4780 = vmatpush1.msra.mxu0 %v9116_v24  ;;  %v9900_v26 = vld [vmem:[#allocation48_spill] sm:$0xff] }
 0x4df   :  { %4995 = vmatpush1.msra.mxu1 %v8986_v0  ;;  %4781 = vmatprep.subr.mxu0 %v9120_v25  ;;  %v2972_v58 = vpop.xlane.xlu0 %2971  ;;  %v9135_v0 = vld [vmem:[#allocation4 + $0x480] sm:$0xff] }
 0x4e0   :  { %4996 = vmatprep.subr.mxu1 %v8990_v27  ;;  %4782 = vmatpush1.msra.mxu0 %v9124_v53  ;;  %v9129_v8 = vsub.f32 %v9900_v26, %v2972_v58  ;;  %v9168_v58 = vld [vmem:[#allocation4 + $0x440] sm:$0xff] }
 0x4e1   :  { %4997 = vmatpush1.msra.mxu1 %v8994_v52  ;;  %4783 = vmatprep.subr.mxu0 %v9131_v13  ;;  %v9144_v52 = vld [vmem:[#allocation4 + $0x470] sm:$0xff] }
 0x4e2   :  { %4998 = vmatprep.subr.mxu1 %v8998_v29  ;;  %4784 = vmatpush1.msra.mxu0 %v9135_v0  ;;  %v2974_v27 = vmul.f32 1.442695, %v9129_v8  ;;  %v9148_v29 = vld [vmem:[#allocation4 + $0x468] sm:$0xff] }
 0x4e3   :  { %4999 = vmatpush1.msra.mxu1 %v9002_v31  ;;  %4785 = vmatprep.subr.mxu0 %v9140_v11  ;;  %v9152_v31 = vld [vmem:[#allocation4 + $0x460] sm:$0xff] }
 0x4e4   :  { %5000 = vmatprep.subr.mxu1 %v9006_v32  ;;  %4786 = vmatpush1.msra.mxu0 %v9144_v52  ;;  %6290 = vpow2.f32 %v2974_v27  ;;  %v9156_v32 = vld [vmem:[#allocation4 + $0x458] sm:$0xff] }
 0x4e5   :  { %5001 = vmatpush1.msra.mxu1 %v9010_v2  ;;  %4787 = vmatprep.subr.mxu0 %v9148_v29  ;;  %v9160_v2 = vld [vmem:[#allocation4 + $0x450] sm:$0xff]  ;;  %v9903_v27 = vld [vmem:[#allocation45_spill] sm:$0xff] }
 0x4e6   :  { %5002 = vmatprep.subr.mxu1 %v9014_v16  ;;  %4788 = vmatpush1.msra.mxu0 %v9152_v31  ;;  %v9164_v16 = vld [vmem:[#allocation4 + $0x448] sm:$0xff] }
 0x4e7   :  { %5003 = vmatpush1.msra.mxu1 %v9018_v14  ;;  %4789 = vmatprep.subr.mxu0 %v9156_v32  ;;  %v9172_v14 = vld [vmem:[#allocation4 + $0x438] sm:$0xff] }
 0x4e8   :  { %5004 = vmatprep.subr.mxu1 %v9022_v57  ;;  %4790 = vmatpush1.msra.mxu0 %v9160_v2  ;;  %v9176_v57 = vld [vmem:[#allocation4 + $0x430] sm:$0xff] }
 0x4e9   :  { %5005 = vmatpush1.msra.mxu1 %v9026_v51  ;;  %4791 = vmatprep.subr.mxu0 %v9164_v16  ;;  %v9180_v51 = vld [vmem:[#allocation4 + $0x428] sm:$0xff] }
 0x4ea   :  { %5006 = vmatprep.subr.mxu1 %v9030_v60  ;;  %4792 = vmatpush1.msra.mxu0 %v9168_v58  ;;  %v9184_v60 = vld [vmem:[#allocation4 + $0x420] sm:$0xff] }
 0x4eb   :  { %5007 = vmatpush1.msra.mxu1 %v9034_v9  ;;  %4793 = vmatprep.subr.mxu0 %v9172_v14  ;;  %v9188_v9 = vld [vmem:[#allocation4 + $0x418] sm:$0xff] }
 0x4ec   :  { %5008 = vmatprep.subr.mxu1 %v9038_v34  ;;  %4794 = vmatpush1.msra.mxu0 %v9176_v57  ;;  %v9192_v34 = vld [vmem:[#allocation4 + $0x410] sm:$0xff] }
 0x4ed   :  { %5009 = vmatpush1.msra.mxu1 %v9042_v35  ;;  %4795 = vmatprep.subr.mxu0 %v9180_v51  ;;  %v9196_v35 = vld [vmem:[#allocation4 + $0x408] sm:$0xff] }
 0x4ee   :  { %5010 = vmatprep.subr.mxu1 %v9046_v37  ;;  %4796 = vmatpush1.msra.mxu0 %v9184_v60  ;;  %v9200_v37 = vld [vmem:[#allocation4 + $0x400] sm:$0xff] }
 0x4ef   :  { %5011 = vmatpush1.msra.mxu1 %v9050_v38  ;;  %4797 = vmatprep.subr.mxu0 %v9188_v9 }
 0x4f0   :  { %5012 = vmatprep.subr.mxu1 %v9054_v39  ;;  %4798 = vmatpush1.msra.mxu0 %v9192_v34  ;;  %v9206_v39 = vld [vmem:[#allocation2 + $0x2] sm:$0xf] }
 0x4f1   :  { %5013 = vmatpush1.msra.mxu1 %v9058_v20  ;;  %4799 = vmatprep.subr.mxu0 %v9196_v35  ;;  %v6291_v38 = vpop.eup %6290  ;;  %v9901_v20 = vld [vmem:[#allocation43_spill] sm:$0xff] }
 0x4f2   :  { %5014 = vmatprep.subr.mxu1 %v9062_v46  ;;  %4800 = vmatpush1.msra.mxu0 %v9200_v37  ;;  %v9902_v46 = vld [vmem:[#allocation44_spill] sm:$0xff]  ;;  %v2976_v26 = vsel %vm2969_vm5, %v6291_v38, 0.0 }
 0x4f3   :  { %4833 = vmatprep.mubr.f32.mxu0 %v9776_v54  ;;  %5015 = vmatpush1.msra.mxu1 %v9066_v18  ;;  %v9904_v18 = vld [vmem:[#allocation46_spill] sm:$0xff]  ;;  %v6515_v38 = vld [vmem:[%s9630_s5] sm:$0xff] }
 0x4f4   :  { %5048 = vmatprep.mubr.f32.mxu1 %v9776_v54  ;;  %4834 = vmatmul.mubr.f32.vlgmr.msra.gmra.mxu0 %v9206_v39 }
 0x4f5   :  { %4913 = vmatprep.subr.mxu0 %v9901_v20  ;;  %5049 = vmatmul.mubr.f32.vlgmr.msra.gmra.mxu1 %v8942_v47  ;;  %v9905_v20 = vld [vmem:[#allocation10_spill] sm:$0xff]  ;;  %v9906_v47 = vld [vmem:[#allocation11_spill] sm:$0xff] }
 0x4f6   :  { %5130 = vmatprep.subr.mxu1 %v9072_v40  ;;  %4914 = vmatpush1.msra.mxu0 %v9902_v46  ;;  %v9907_v40 = vld [vmem:[#allocation12_spill] sm:$0xff] }
 0x4f7   :  { %5131 = vmatpush1.msra.mxu1 %v9076_v10  ;;  %4915 = vmatprep.subr.mxu0 %v9903_v27  ;;  %v9908_v10 = vld [vmem:[#allocation13_spill] sm:$0xff]  ;;  %v6519_v27 = vld [vmem:[%s9630_s5 + $0xd8] sm:$0xff] }
 0x4f8   :  { %5132 = vmatprep.subr.mxu1 %v9080_v12  ;;  %4916 = vmatpush1.msra.mxu0 %v9904_v18  ;;  %v9909_v12 = vld [vmem:[#allocation14_spill] sm:$0xff]  ;;  %v6517_v46 = vld [vmem:[%s9630_s5 + $0xe8] sm:$0xff] }
 0x4f9   :  { %5133 = vmatpush1.msra.mxu1 %v9084_v42  ;;  %2977 = vadd.xlane.f32.xlu1 %v2976_v26  ;;  %v9910_v42 = vld [vmem:[#allocation15_spill] sm:$0xff]  ;;  %v6520_v18 = vld [vmem:[%s9630_s5 + $0xd0] sm:$0xff] }
 0x4fa   :  { %4917 = vmatprep.subr.mxu0 %v9905_v20  ;;  %5134 = vmatprep.subr.mxu1 %v9088_v43  ;;  %v9911_v43 = vld [vmem:[#allocation16_spill] sm:$0xff] }
 0x4fb   :  { %4918 = vmatpush1.msra.mxu0 %v9906_v47  ;;  %5135 = vmatpush1.msra.mxu1 %v9092_v41  ;;  %v9912_v41 = vld [vmem:[#allocation17_spill] sm:$0xff]  ;;  %v6518_v26 = vld [vmem:[%s9630_s5 + $0xe0] sm:$0xff] }
 0x4fc   :  { %4919 = vmatprep.subr.mxu0 %v9907_v40  ;;  %5136 = vmatprep.subr.mxu1 %v9096_v19  ;;  %v9913_v19 = vld [vmem:[#allocation18_spill] sm:$0xff]  ;;  %v6521_v20 = vld [vmem:[%s9630_s5 + $0xc8] sm:$0xff]  ;;  %v6522_v47 = vld [vmem:[%s9630_s5 + $0xc0] sm:$0xff] }
 0x4fd   :  { %4920 = vmatpush1.msra.mxu0 %v9908_v10  ;;  %5137 = vmatpush1.msra.mxu1 %v9100_v56  ;;  %v9914_v56 = vld [vmem:[#allocation19_spill] sm:$0xff]  ;;  %v6524_v10 = vld [vmem:[%s9630_s5 + $0xb0] sm:$0xff] }
 0x4fe   :  { %4921 = vmatprep.subr.mxu0 %v9909_v12  ;;  %5138 = vmatprep.subr.mxu1 %v9104_v5  ;;  %v9915_v5 = vld [vmem:[#allocation20_spill] sm:$0xff]  ;;  %v6523_v40 = vld [vmem:[%s9630_s5 + $0xb8] sm:$0xff] }
 0x4ff   :  { %4922 = vmatpush1.msra.mxu0 %v9910_v42  ;;  %5139 = vmatpush1.msra.mxu1 %v9108_v48  ;;  %v9916_v48 = vld [vmem:[#allocation21_spill] sm:$0xff]  ;;  %v6526_v42 = vld [vmem:[%s9630_s5 + $0xa0] sm:$0xff] }
 0x500   :  { %4923 = vmatprep.subr.mxu0 %v9911_v43  ;;  %5140 = vmatprep.subr.mxu1 %v9112_v7  ;;  %v9917_v7 = vld [vmem:[#allocation22_spill] sm:$0xff]  ;;  %v6525_v12 = vld [vmem:[%s9630_s5 + $0xa8] sm:$0xff] }
 0x501   :  { %4924 = vmatpush1.msra.mxu0 %v9912_v41  ;;  %5141 = vmatpush1.msra.mxu1 %v9116_v24  ;;  %v9918_v24 = vld [vmem:[#allocation23_spill] sm:$0xff]  ;;  %v6528_v41 = vld [vmem:[%s9630_s5 + $0x90] sm:$0xff] }
 0x502   :  { %4925 = vmatprep.subr.mxu0 %v9913_v19  ;;  %5142 = vmatprep.subr.mxu1 %v9120_v25  ;;  %v9919_v25 = vld [vmem:[#allocation24_spill] sm:$0xff]  ;;  %v6527_v43 = vld [vmem:[%s9630_s5 + $0x98] sm:$0xff] }
 0x503   :  { %4926 = vmatpush1.msra.mxu0 %v9914_v56  ;;  %5143 = vmatpush1.msra.mxu1 %v9124_v53  ;;  %v9920_v53 = vld [vmem:[#allocation25_spill] sm:$0xff]  ;;  %v6530_v56 = vld [vmem:[%s9630_s5 + $0x80] sm:$0xff] }
 0x504   :  { %4927 = vmatprep.subr.mxu0 %v9915_v5  ;;  %5144 = vmatprep.subr.mxu1 %v9131_v13  ;;  %v9921_v13 = vld [vmem:[#allocation26_spill] sm:$0xff]  ;;  %v6529_v19 = vld [vmem:[%s9630_s5 + $0x88] sm:$0xff] }
 0x505   :  { %4928 = vmatpush1.msra.mxu0 %v9916_v48  ;;  %5145 = vmatpush1.msra.mxu1 %v9135_v0  ;;  %v9922_v0 = vld [vmem:[#allocation27_spill] sm:$0xff] }
 0x506   :  { %4929 = vmatprep.subr.mxu0 %v9917_v7  ;;  %5146 = vmatprep.subr.mxu1 %v9140_v11  ;;  %v9923_v11 = vld [vmem:[#allocation28_spill] sm:$0xff] }
 0x507   :  { %4930 = vmatpush1.msra.mxu0 %v9918_v24  ;;  %5147 = vmatpush1.msra.mxu1 %v9144_v52  ;;  %v9924_v52 = vld [vmem:[#allocation29_spill] sm:$0xff] }
 0x508   :  { %4931 = vmatprep.subr.mxu0 %v9919_v25  ;;  %5148 = vmatprep.subr.mxu1 %v9148_v29  ;;  %v9925_v29 = vld [vmem:[#allocation30_spill] sm:$0xff] }
 0x509   :  { %4932 = vmatpush1.msra.mxu0 %v9920_v53  ;;  %5149 = vmatpush1.msra.mxu1 %v9152_v31  ;;  %v9926_v31 = vld [vmem:[#allocation31_spill] sm:$0xff] }
 0x50a   :  { %4933 = vmatprep.subr.mxu0 %v9921_v13  ;;  %5150 = vmatprep.subr.mxu1 %v9156_v32  ;;  %v9927_v32 = vld [vmem:[#allocation32_spill] sm:$0xff] }
 0x50b   :  { %4934 = vmatpush1.msra.mxu0 %v9922_v0  ;;  %5151 = vmatpush1.msra.mxu1 %v9160_v2  ;;  %v9928_v2 = vld [vmem:[#allocation33_spill] sm:$0xff] }
 0x50c   :  { %4935 = vmatprep.subr.mxu0 %v9923_v11  ;;  %5152 = vmatprep.subr.mxu1 %v9164_v16  ;;  %v9929_v16 = vld [vmem:[#allocation34_spill] sm:$0xff] }
 0x50d   :  { %4936 = vmatpush1.msra.mxu0 %v9924_v52  ;;  %5153 = vmatpush1.msra.mxu1 %v9168_v58  ;;  %v9930_v58 = vld [vmem:[#allocation35_spill] sm:$0xff] }
 0x50e   :  { %4937 = vmatprep.subr.mxu0 %v9925_v29  ;;  %5154 = vmatprep.subr.mxu1 %v9172_v14  ;;  %v9931_v14 = vld [vmem:[#allocation36_spill] sm:$0xff] }
 0x50f   :  { %4938 = vmatpush1.msra.mxu0 %v9926_v31  ;;  %5155 = vmatpush1.msra.mxu1 %v9176_v57  ;;  %v9932_v57 = vld [vmem:[#allocation37_spill] sm:$0xff] }
 0x510   :  { %4939 = vmatprep.subr.mxu0 %v9927_v32  ;;  %5156 = vmatprep.subr.mxu1 %v9180_v51  ;;  %v4480_v51 = vld [vmem:[#allocation2 + $0xa] sm:$0xf] }
 0x511   :  { %4940 = vmatpush1.msra.mxu0 %v9928_v2  ;;  %5157 = vmatpush1.msra.mxu1 %v9184_v60  ;;  %v9933_v60 = vld [vmem:[#allocation38_spill] sm:$0xff] }
 0x512   :  { %4941 = vmatprep.subr.mxu0 %v9929_v16  ;;  %5158 = vmatprep.subr.mxu1 %v9188_v9  ;;  %v6499_v9 = vld [vmem:[%s9630_s5 + $0x78] sm:$0xff] }
 0x513   :  { %4942 = vmatpush1.msra.mxu0 %v9930_v58  ;;  %5159 = vmatpush1.msra.mxu1 %v9192_v34  ;;  %v9938_v34 = vld [vmem:[#allocation53_spill] sm:$0xff] }
 0x514   :  { %4943 = vmatprep.subr.mxu0 %v9931_v14  ;;  %5160 = vmatprep.subr.mxu1 %v9196_v35  ;;  %v6506_v35 = vld [vmem:[%s9630_s5 + $0x40] sm:$0xff] }
 0x515   :  { %4944 = vmatpush1.msra.mxu0 %v9932_v57  ;;  %4977 = vmatprep.mubr.f32.mxu0 %v9776_v54 }
 0x516   :  { %5161 = vmatpush1.msra.mxu1 %v9200_v37  ;;  %5194 = vmatprep.mubr.f32.mxu1 %v9776_v54  ;;  %v6514_v37 = vld [vmem:[%s9630_s5 + $0xf8] sm:$0xff] }
 0x517   :  { %4978 = vmatmul.mubr.f32.vlgmr.msra.gmra.mxu0 %v8940_v63  ;;  %5057 = vmatprep.subr.mxu0 %v9933_v60  ;;  %v6505_v63 = vld [vmem:[%s9630_s5 + $0x48] sm:$0xff] }
 0x518   :  { %5195 = vmatmul.mubr.f32.vlgmr.msra.gmra.mxu1 %v4480_v51  ;;  %5058 = vmatpush1.msra.mxu0 %v8840_v44  ;;  %v6500_v44 = vld [vmem:[%s9630_s5 + $0x70] sm:$0xff] }
 0x519   :  { %5121 = vmatprep.mubr.f32.mxu0 %v9776_v54  ;;  %5059 = vmatprep.subr.mxu0 %v8844_v45  ;;  %v6501_v45 = vld [vmem:[%s9630_s5 + $0x68] sm:$0xff] }
 0x51a   :  { %6162 = vmatprep.subr.mxu1 %v9776_v54  ;;  %5060 = vmatpush1.msra.mxu0 %v8849_v61  ;;  %v6502_v61 = vld [vmem:[%s9630_s5 + $0x60] sm:$0xff] }
 0x51b   :  { %6163 = vmatpush3.msra.mxu1 %v6499_v9  ;;  %5061 = vmatprep.subr.mxu0 %v8852_v59  ;;  %v9934_v59 = vld [vmem:[#allocation49_spill] sm:$0xff] }
 0x51c   :  { %6164 = vmatprep.subr.mxu1 %v9776_v54  ;;  %5062 = vmatpush1.msra.mxu0 %v8855_v21  ;;  %v9935_v21 = vld [vmem:[#allocation50_spill] sm:$0xff] }
 0x51d   :  { %6165 = vmatpush3.msra.mxu1 %v6500_v44  ;;  %5063 = vmatprep.subr.mxu0 %v8858_v22  ;;  %v6503_v22 = vld [vmem:[%s9630_s5 + $0x58] sm:$0xff] }
 0x51e   :  { %6166 = vmatprep.subr.mxu1 %v9776_v54  ;;  %5064 = vmatpush1.msra.mxu0 %v8861_v30  ;;  %v9936_v30 = vld [vmem:[#allocation51_spill] sm:$0xff] }
 0x51f   :  { %6167 = vmatpush3.msra.mxu1 %v6501_v45  ;;  %5065 = vmatprep.subr.mxu0 %v8864_v17  ;;  %v9937_v17 = vld [vmem:[#allocation52_spill] sm:$0xff] }
 0x520   :  { %6168 = vmatprep.subr.mxu1 %v9776_v54  ;;  %5066 = vmatpush1.msra.mxu0 %v8867_v1  ;;  %v6504_v1 = vld [vmem:[%s9630_s5 + $0x50] sm:$0xff] }
 0x521   :  { %6169 = vmatpush3.msra.mxu1 %v6502_v61  ;;  %5067 = vmatprep.subr.mxu0 %v9934_v59 }
 0x522   :  { %6170 = vmatprep.subr.mxu1 %v9776_v54  ;;  %5068 = vmatpush1.msra.mxu0 %v9935_v21 }
 0x523   :  { %6171 = vmatpush3.msra.mxu1 %v6503_v22  ;;  %5069 = vmatprep.subr.mxu0 %v9936_v30 }
 0x524   :  { %6172 = vmatprep.subr.mxu1 %v9776_v54  ;;  %5070 = vmatpush1.msra.mxu0 %v9937_v17 }
 0x525   :  { %6173 = vmatpush3.msra.mxu1 %v6504_v1  ;;  %5071 = vmatprep.subr.mxu0 %v8882_v15  ;;  %v9939_v15 = vld [vmem:[#allocation54_spill] sm:$0xff] }
 0x526   :  { %6174 = vmatprep.subr.mxu1 %v9776_v54  ;;  %5072 = vmatpush1.msra.mxu0 %v8885_v23  ;;  %v6507_v23 = vld [vmem:[%s9630_s5 + $0x38] sm:$0xff] }
 0x527   :  { %6175 = vmatpush3.msra.mxu1 %v6505_v63  ;;  %5073 = vmatprep.subr.mxu0 %v8888_v55  ;;  %v6508_v55 = vld [vmem:[%s9630_s5 + $0x30] sm:$0xff] }
 0x528   :  { %6176 = vmatprep.subr.mxu1 %v9776_v54  ;;  %5074 = vmatpush1.msra.mxu0 %v9938_v34 }
 0x529   :  { %6177 = vmatpush3.msra.mxu1 %v6506_v35  ;;  %5075 = vmatprep.subr.mxu0 %v9939_v15 }
 0x52a   :  { %6178 = vmatprep.subr.mxu1 %v9776_v54  ;;  %5076 = vmatpush1.msra.mxu0 %v8897_v6  ;;  %v6509_v6 = vld [vmem:[%s9630_s5 + $0x28] sm:$0xff] }
 0x52b   :  { %6179 = vmatpush3.msra.mxu1 %v6507_v23  ;;  %5077 = vmatprep.subr.mxu0 %v8901_v3  ;;  %v6510_v3 = vld [vmem:[%s9630_s5 + $0x20] sm:$0xff] }
 0x52c   :  { %6180 = vmatprep.subr.mxu1 %v9776_v54  ;;  %5078 = vmatpush1.msra.mxu0 %v8904_v4  ;;  %v9940_v4 = vld [vmem:[#allocation55_spill] sm:$0xff] }
 0x52d   :  { %6181 = vmatpush3.msra.mxu1 %v6508_v55  ;;  %5079 = vmatprep.subr.mxu0 %v8908_v49  ;;  %v6511_v49 = vld [vmem:[%s9630_s5 + $0x18] sm:$0xff] }
 0x52e   :  { %6182 = vmatprep.subr.mxu1 %v9776_v54  ;;  %5080 = vmatpush1.msra.mxu0 %v8911_v62  ;;  %v9941_v62 = vld [vmem:[#allocation56_spill] sm:$0xff] }
 0x52f   :  { %6183 = vmatpush3.msra.mxu1 %v6509_v6  ;;  %5081 = vmatprep.subr.mxu0 %v8914_v36  ;;  %v6512_v36 = vld [vmem:[%s9630_s5 + $0x10] sm:$0xff] }
 0x530   :  { %6184 = vmatprep.subr.mxu1 %v9776_v54  ;;  %5082 = vmatpush1.msra.mxu0 %v8917_v33  ;;  %v9942_v33 = vld [vmem:[#allocation57_spill] sm:$0xff] }
 0x531   :  { %6185 = vmatpush3.msra.mxu1 %v6510_v3  ;;  %5083 = vmatprep.subr.mxu0 %v8920_v28  ;;  %v9943_v28 = vld [vmem:[#allocation58_spill] sm:$0xff] }
 0x532   :  { %6186 = vmatprep.subr.mxu1 %v9776_v54  ;;  %5084 = vmatpush1.msra.mxu0 %v8923_v50  ;;  %v6513_v50 = vld [vmem:[%s9630_s5 + $0x8] sm:$0xff] }
 0x533   :  { %6187 = vmatpush3.msra.mxu1 %v6511_v49  ;;  %5085 = vmatprep.subr.mxu0 %v9940_v4 }
 0x534   :  { %6188 = vmatprep.subr.mxu1 %v9776_v54  ;;  %5086 = vmatpush1.msra.mxu0 %v9941_v62 }
 0x535   :  { %6189 = vmatpush3.msra.mxu1 %v6512_v36  ;;  %5087 = vmatprep.subr.mxu0 %v9942_v33  ;;  %v6531_v33 = vld [vmem:[%s9629_s4] ss:$0 sm:$0xff] }
 0x536   :  { %6190 = vmatprep.subr.mxu1 %v9776_v54  ;;  %5088 = vmatpush1.msra.mxu0 %v9943_v28 }
 0x537   :  { %6191 = vmatpush3.msra.mxu1 %v6513_v50  ;;  %5122 = vmatmul.mubr.f32.vlgmr.msra.gmra.mxu0 %v9206_v39  ;;  %v6516_v39 = vld [vmem:[%s9630_s5 + $0xf0] sm:$0xff] }
 0x538   :  { %6127 = vmatprep.subr.mxu0 %v9776_v54  ;;  %6192 = vmatprep.subr.mxu1 %v9776_v54 }
 0x539   :  { %6128 = vmatpush3.msra.mxu0 %v6514_v37  ;;  %6193 = vmatpush3.msra.mxu1 %v6515_v38 }
 0x53a   :  { %6129 = vmatprep.subr.mxu0 %v9776_v54  ;;  %6159 = vmatprep.mubr.msk.f32.mxu0 %vm6621_vm2, %v9776_v54 }
 0x53b   :  { %6130 = vmatpush3.msra.mxu0 %v6516_v39  ;;  %6194 = vmatprep.mubr.msk.f32.mxu1 %vm6621_vm2, %v9776_v54  ;;  %v6532_v39 = vld [vmem:[%s9630_s5 + $0x178] sm:$0xff] }
 0x53c   :  { %6131 = vmatprep.subr.mxu0 %v9776_v54  ;;  %6232 = vmatprep.subr.mxu1 %v9776_v54 }
 0x53d   :  { %6132 = vmatpush3.msra.mxu0 %v6517_v46  ;;  %v6533_v46 = vld [vmem:[%s9630_s5 + $0x1f8] sm:$0xff] }
 0x53e   :  { %6133 = vmatprep.subr.mxu0 %v9776_v54 }
 0x53f   :  { %6134 = vmatpush3.msra.mxu0 %v6518_v26  ;;  %v6534_v26 = vld [vmem:[%s9630_s5 + $0x170] sm:$0xff] }
 0x540   :  { %6135 = vmatprep.subr.mxu0 %v9776_v54 }
 0x541   :  { %6136 = vmatpush3.msra.mxu0 %v6519_v27  ;;  %v6535_v27 = vld [vmem:[%s9630_s5 + $0x1f0] sm:$0xff] }
 0x542   :  { %6137 = vmatprep.subr.mxu0 %v9776_v54 }
 0x543   :  { %6138 = vmatpush3.msra.mxu0 %v6520_v18  ;;  %v6536_v18 = vld [vmem:[%s9630_s5 + $0x168] sm:$0xff] }
 0x544   :  { %6139 = vmatprep.subr.mxu0 %v9776_v54 }
 0x545   :  { %6140 = vmatpush3.msra.mxu0 %v6521_v20  ;;  %v6537_v20 = vld [vmem:[%s9630_s5 + $0x1e8] sm:$0xff] }
 0x546   :  { %6141 = vmatprep.subr.mxu0 %v9776_v54 }
 0x547   :  { %6142 = vmatpush3.msra.mxu0 %v6522_v47  ;;  %v6538_v47 = vld [vmem:[%s9630_s5 + $0x160] sm:$0xff] }
 0x548   :  { %6143 = vmatprep.subr.mxu0 %v9776_v54 }
 0x549   :  { %6144 = vmatpush3.msra.mxu0 %v6523_v40  ;;  %v4618_v53 = vpop.f32.mrf.mxu1  ;;  %v6539_v40 = vld [vmem:[%s9630_s5 + $0x1e0] sm:$0xff] }
 0x54a   :  { %6145 = vmatprep.subr.mxu0 %v9776_v54 }
 0x54b   :  { %6146 = vmatpush3.msra.mxu0 %v6524_v10  ;;  %v4620_v11 = vpop.f32.mrf.mxu1  ;;  %v6540_v10 = vld [vmem:[%s9630_s5 + $0x158] sm:$0xff] }
 0x54c   :  { %6147 = vmatprep.subr.mxu0 %v9776_v54 }
 0x54d   :  { %6148 = vmatpush3.msra.mxu0 %v6525_v12  ;;  %v6541_v12 = vld [vmem:[%s9630_s5 + $0x1d8] sm:$0xff] }
 0x54e   :  { %6149 = vmatprep.subr.mxu0 %v9776_v54 }
 0x54f   :  { %6150 = vmatpush3.msra.mxu0 %v6526_v42  ;;  %v6542_v42 = vld [vmem:[%s9630_s5 + $0x150] sm:$0xff] }
 0x550   :  { %6151 = vmatprep.subr.mxu0 %v9776_v54 }
 0x551   :  { %6152 = vmatpush3.msra.mxu0 %v6527_v43  ;;  %v6543_v43 = vld [vmem:[%s9630_s5 + $0x1d0] sm:$0xff] }
 0x552   :  { %6153 = vmatprep.subr.mxu0 %v9776_v54 }
 0x553   :  { %6154 = vmatpush3.msra.mxu0 %v6528_v41  ;;  %v6544_v41 = vld [vmem:[%s9630_s5 + $0x148] sm:$0xff] }
 0x554   :  { %6155 = vmatprep.subr.mxu0 %v9776_v54 }
 0x555   :  { %6156 = vmatpush3.msra.mxu0 %v6529_v19  ;;  %v6545_v19 = vld [vmem:[%s9630_s5 + $0x1c8] sm:$0xff] }
 0x556   :  { %6157 = vmatprep.subr.mxu0 %v9776_v54 }
 0x557   :  { %6158 = vmatpush3.msra.mxu0 %v6530_v56  ;;  %v6546_v56 = vld [vmem:[%s9630_s5 + $0x140] sm:$0xff] }
 0x558   :  { %6197 = vmatprep.subr.mxu0 %v9776_v54 }
 0x571   :  { %v4547_v25 = vpop.f32.mrf.mxu0 }
 0x572   :  { %v4762_v52 = vpop.f32.mrf.mxu1  ;;  %v4619_v9 = vadd.f32 %v4618_v53, %v4547_v25  ;;  %v6551_v25 = vld [vmem:[%s9630_s5 + $0x1b0] sm:$0xff]  ;;  %v6552_v53 = vld [vmem:[%s9630_s5 + $0x128] sm:$0xff] }
 0x573   :  { %v4549_v13 = vpop.f32.mrf.mxu0 }
 0x574   :  { %v4764_v32 = vpop.f32.mrf.mxu1 }
 0x582   :  { %v2978_v5 = vpop.xlane.xlu1 %2977 }
 0x583   :  { %6292 = vlog2.f32 %v2978_v5  ;;  %v6547_v5 = vld [vmem:[%s9630_s5 + $0x1c0] sm:$0xff] }
 0x590   :  { %v6293_v48 = vpop.eup %6292 }
 0x591   :  { %v2980_v7 = vmul.f32 0.6931472, %v6293_v48  ;;  %v6548_v48 = vld [vmem:[%s9630_s5 + $0x138] sm:$0xff] }
 0x592   :  { %v4689_v0 = vpop.f32.mrf.mxu0 }
 0x593   :  { %v2981_v24 = vsub.f32 %v9129_v8, %v2980_v7  ;;  %v4908_v2 = vpop.f32.mrf.mxu1  ;;  %v4621_v8 = vadd.f32 %v4620_v11, %v4549_v13  ;;  %v4694_v61 = vadd.f32 %v4689_v0, %v4619_v9  ;;  %v6549_v7 = vld [vmem:[%s9630_s5 + $0x1b8] sm:$0xff]  ;;  %v6553_v13 = vld [vmem:[%s9630_s5 + $0x1a8] sm:$0xff]  ;;  %v6554_v0 = vld [vmem:[%s9630_s5 + $0x120] sm:$0xff] }
 0x594   :  { %v4691_v29 = vpop.f32.mrf.mxu0  ;;  %v6555_v11 = vld [vmem:[%s9630_s5 + $0x1a0] sm:$0xff]  ;;  %v6565_v9 = vld [vmem:[%s9632_s7 + $0x28] sm:$0xff] }
 0x595   :  { %2982 = vst.msk [vmem:[#allocation7] sm:$0x1] %vm2969_vm5, %v2981_v24  ;;  %v4910_v14 = vpop.f32.mrf.mxu1  ;;  %v4695_v59 = vadd.f32 %v4691_v29, %v4621_v8  ;;  %v4767_v34 = vadd.f32 %v4762_v52, %v4694_v61  ;;  %v6550_v24 = vld [vmem:[%s9630_s5 + $0x130] sm:$0xff]  ;;  %v6556_v52 = vld [vmem:[%s9630_s5 + $0x118] sm:$0xff]  ;;  %v6566_v8 = vld [vmem:[%s9632_s7 + $0x20] sm:$0xff] }
 0x596   :  { %v6557_v29 = vld [vmem:[%s9630_s5 + $0x198] sm:$0xff]  ;;  %v6569_v61 = vld [vmem:[%s9632_s7 + $0x8] sm:$0xff] }
 0x597   :  { %v4768_v35 = vadd.f32 %v4764_v32, %v4695_v59  ;;  %v6559_v32 = vld [vmem:[%s9630_s5 + $0x190] sm:$0xff]  ;;  %v6570_v59 = vld [vmem:[%s9632_s7] sm:$0xff] }
 0x5b4   :  { %v4835_v31 = vpop.f32.mrf.mxu0 }
 0x5b5   :  { %v5050_v57 = vpop.f32.mrf.mxu1  ;;  %v4840_v6 = vadd.f32 %v4835_v31, %v4767_v34  ;;  %v6558_v31 = vld [vmem:[%s9630_s5 + $0x110] sm:$0xff] }
 0x5b6   :  { %v4837_v16 = vpop.f32.mrf.mxu0 }
 0x5b7   :  { %v5052_v45 = vpop.f32.mrf.mxu1  ;;  %v4841_v3 = vadd.f32 %v4837_v16, %v4768_v35  ;;  %v6561_v16 = vld [vmem:[%s9630_s5 + $0x188] sm:$0xff] }
 0x5d7   :  { %v4979_v58 = vpop.f32.mrf.mxu0 }
 0x5d8   :  { %v4980_v60 = vadd.f32 %v4979_v58, %v4908_v2  ;;  %v5196_v22 = vpop.f32.mrf.mxu1  ;;  %v6560_v2 = vld [vmem:[%s9630_s5 + $0x108] sm:$0xff]  ;;  %v6562_v58 = vld [vmem:[%s9630_s5 + $0x100] sm:$0xff] }
 0x5d9   :  { %v4981_v51 = vpop.f32.mrf.mxu0 }
 0x5da   :  { %v4982_v44 = vadd.f32 %v4981_v51, %v4910_v14  ;;  %v5055_v21 = vadd.f32 %v5050_v57, %v4980_v60  ;;  %v5198_v55 = vpop.f32.mrf.mxu1  ;;  %v6563_v14 = vld [vmem:[%s9630_s5 + $0x180] sm:$0xff]  ;;  %v6564_v60 = vld [vmem:[%s9632_s7 + $0x30] sm:$0x3] }
 0x5dc   :  { %v5056_v1 = vadd.f32 %v5052_v45, %v4982_v44  ;;  %v6567_v44 = vld [vmem:[%s9632_s7 + $0x18] sm:$0xff]  ;;  %v6568_v45 = vld [vmem:[%s9632_s7 + $0x10] sm:$0xff] }
 0x5f7   :  { %v5123_v30 = vpop.f32.mrf.mxu0 }
 0x5f8   :  { %v5128_v17 = vadd.f32 %v5123_v30, %v5055_v21 }
 0x5f9   :  { %v5125_v63 = vpop.f32.mrf.mxu0 }
 0x5fa   :  { %v5201_v15 = vadd.f32 %v5196_v22, %v5128_v17  ;;  %v5129_v23 = vadd.f32 %v5125_v63, %v5056_v1 }
 0x5fc   :  { %v5202_v49 = vadd.f32 %v5198_v55, %v5129_v23  ;;  %v5203_v4 = vmax.f32 %v4840_v6, %v5201_v15 }
 0x5fe   :  { %v5204_v62 = vmax.f32 %v4841_v3, %v5202_v49 }
 0x600   :  { %v5205_v36 = vmax.f32 %v5203_v4, %v5204_v62  ;;  %v6572_v4 = vld [vmem:[%s9633_s8] sm:$0x1] }
 0x602   :  { %v5206_v28 = vadd.f32 %v6531_v33, %v5205_v36 }
 0x604   :  { %v5207_v50 = vmax.f32 %v5206_v28, 0.0 }
 0x606   :  { %5208 = vst [vmem:[#allocation3] sm:$0xf] %v5207_v50 }
 0x60d   :  { %v5210_v37 = vld [vmem:[#allocation3 + $0x1] sm:$0x1]  ;;  %v5209_v38 = vld [vmem:[#allocation3] sm:$0x1]  ;;  %v5351_v57 = vld [vmem:[#allocation3 + $0x2] sm:$0x1] }
 0x60e   :  { %6160 = vmatmul.mubr.f32.vlgmr.msra.gmra.mxu0 %v5210_v37  ;;  %6195 = vmatmul.mubr.f32.vlgmr.msra.gmra.mxu1 %v5209_v38  ;;  %v5423_v51 = vld [vmem:[#allocation3 + $0x3] sm:$0x1] }
 0x60f   :  { %6198 = vmatpush3.msra.mxu0 %v6532_v39  ;;  %6233 = vmatpush3.msra.mxu1 %v6533_v46 }
 0x610   :  { %6199 = vmatprep.subr.mxu0 %v9776_v54  ;;  %6234 = vmatprep.subr.mxu1 %v9776_v54 }
 0x611   :  { %6200 = vmatpush3.msra.mxu0 %v6534_v26  ;;  %6235 = vmatpush3.msra.mxu1 %v6535_v27 }
 0x612   :  { %6201 = vmatprep.subr.mxu0 %v9776_v54  ;;  %6236 = vmatprep.subr.mxu1 %v9776_v54 }
 0x613   :  { %6202 = vmatpush3.msra.mxu0 %v6536_v18  ;;  %6237 = vmatpush3.msra.mxu1 %v6537_v20 }
 0x614   :  { %6203 = vmatprep.subr.mxu0 %v9776_v54  ;;  %6238 = vmatprep.subr.mxu1 %v9776_v54 }
 0x615   :  { %6204 = vmatpush3.msra.mxu0 %v6538_v47  ;;  %6239 = vmatpush3.msra.mxu1 %v6539_v40 }
 0x616   :  { %6205 = vmatprep.subr.mxu0 %v9776_v54  ;;  %6240 = vmatprep.subr.mxu1 %v9776_v54 }
 0x617   :  { %6206 = vmatpush3.msra.mxu0 %v6540_v10  ;;  %6241 = vmatpush3.msra.mxu1 %v6541_v12 }
 0x618   :  { %6207 = vmatprep.subr.mxu0 %v9776_v54  ;;  %6242 = vmatprep.subr.mxu1 %v9776_v54 }
 0x619   :  { %6208 = vmatpush3.msra.mxu0 %v6542_v42  ;;  %6243 = vmatpush3.msra.mxu1 %v6543_v43 }
 0x61a   :  { %6209 = vmatprep.subr.mxu0 %v9776_v54  ;;  %6244 = vmatprep.subr.mxu1 %v9776_v54 }
 0x61b   :  { %6210 = vmatpush3.msra.mxu0 %v6544_v41  ;;  %6245 = vmatpush3.msra.mxu1 %v6545_v19 }
 0x61c   :  { %6211 = vmatprep.subr.mxu0 %v9776_v54  ;;  %6246 = vmatprep.subr.mxu1 %v9776_v54 }
 0x61d   :  { %6212 = vmatpush3.msra.mxu0 %v6546_v56  ;;  %6247 = vmatpush3.msra.mxu1 %v6547_v5 }
 0x61e   :  { %6213 = vmatprep.subr.mxu0 %v9776_v54  ;;  %6248 = vmatprep.subr.mxu1 %v9776_v54 }
 0x61f   :  { %6214 = vmatpush3.msra.mxu0 %v6548_v48  ;;  %6249 = vmatpush3.msra.mxu1 %v6549_v7 }
 0x620   :  { %6215 = vmatprep.subr.mxu0 %v9776_v54  ;;  %6250 = vmatprep.subr.mxu1 %v9776_v54 }
 0x621   :  { %6216 = vmatpush3.msra.mxu0 %v6550_v24  ;;  %6251 = vmatpush3.msra.mxu1 %v6551_v25 }
 0x622   :  { %6217 = vmatprep.subr.mxu0 %v9776_v54  ;;  %6252 = vmatprep.subr.mxu1 %v9776_v54 }
 0x623   :  { %6218 = vmatpush3.msra.mxu0 %v6552_v53  ;;  %6253 = vmatpush3.msra.mxu1 %v6553_v13 }
 0x624   :  { %6219 = vmatprep.subr.mxu0 %v9776_v54  ;;  %6254 = vmatprep.subr.mxu1 %v9776_v54 }
 0x625   :  { %6220 = vmatpush3.msra.mxu0 %v6554_v0  ;;  %6255 = vmatpush3.msra.mxu1 %v6555_v11 }
 0x626   :  { %6221 = vmatprep.subr.mxu0 %v9776_v54  ;;  %6256 = vmatprep.subr.mxu1 %v9776_v54 }
 0x627   :  { %6222 = vmatpush3.msra.mxu0 %v6556_v52  ;;  %6257 = vmatpush3.msra.mxu1 %v6557_v29 }
 0x628   :  { %6223 = vmatprep.subr.mxu0 %v9776_v54  ;;  %6258 = vmatprep.subr.mxu1 %v9776_v54 }
 0x629   :  { %6224 = vmatpush3.msra.mxu0 %v6558_v31  ;;  %6259 = vmatpush3.msra.mxu1 %v6559_v32 }
 0x62a   :  { %6225 = vmatprep.subr.mxu0 %v9776_v54  ;;  %6260 = vmatprep.subr.mxu1 %v9776_v54 }
 0x62b   :  { %6226 = vmatpush3.msra.mxu0 %v6560_v2  ;;  %6261 = vmatpush3.msra.mxu1 %v6561_v16 }
 0x62c   :  { %6227 = vmatprep.subr.mxu0 %v9776_v54  ;;  %6262 = vmatprep.subr.mxu1 %v9776_v54 }
 0x62d   :  { %6228 = vmatpush3.msra.mxu0 %v6562_v58  ;;  %6229 = vmatprep.mubr.msk.f32.mxu0 %vm6621_vm2, %v9776_v54 }
 0x62e   :  { %6263 = vmatpush3.msra.mxu1 %v6563_v14  ;;  %6264 = vmatprep.mubr.msk.f32.mxu1 %vm6621_vm2, %v9776_v54 }
 0x62f   :  { %6230 = vmatmul.mubr.f32.vlgmr.msra.gmra.mxu0 %v5351_v57  ;;  %6265 = vmatmul.mubr.f32.vlgmr.msra.gmra.mxu1 %v5423_v51 }
 0x630   :  { %6267 = vmatprep.subr.mxu0 %v9776_v54  ;;  %6281 = vmatprep.mubr.msk.f32.mxu0 %vm6621_vm2, %v9776_v54 }
 0x631   :  { %6268 = vmatpush3.msk.msra.mxu0 %vm2895_vm3, %v6564_v60 }
 0x632   :  { %6269 = vmatprep.subr.mxu0 %v9776_v54 }
 0x633   :  { %6270 = vmatpush3.msra.mxu0 %v6565_v9 }
 0x634   :  { %6271 = vmatprep.subr.mxu0 %v9776_v54 }
 0x635   :  { %6272 = vmatpush3.msra.mxu0 %v6566_v8 }
 0x636   :  { %6273 = vmatprep.subr.mxu0 %v9776_v54 }
 0x637   :  { %6274 = vmatpush3.msra.mxu0 %v6567_v44 }
 0x638   :  { %6275 = vmatprep.subr.mxu0 %v9776_v54 }
 0x639   :  { %6276 = vmatpush3.msra.mxu0 %v6568_v45 }
 0x63a   :  { %6277 = vmatprep.subr.mxu0 %v9776_v54 }
 0x63b   :  { %6278 = vmatpush3.msra.mxu0 %v6569_v61 }
 0x63c   :  { %6279 = vmatprep.subr.mxu0 %v9776_v54  ;;  %v6571_v54 = vld [vmem:[%s9631_s6] sm:$0x1]  ;;  %s6622_s6 = smov [#allocation7]  }
 0x63d   :  { %6280 = vmatpush3.msra.mxu0 %v6570_v59  ;;  %s5589_s21 = sshll.u32 %s6622_s6, 4  ;;  %s5590_s21 = int_to_ptr.vmem [resolvable:$true] %s5589_s21 }
 0x63e   :  { %s6593_s8 = scalar_lea.vmem %s5590_s21, 32  ;;  %p6598_p6 = scmp.lt.s32.totalorder %s5590_s21, %s5590_s21 }
 0x63f   :  { %p6594_p5 = scmp.ne.s32.totalorder %s5590_s21, %s6593_s8  ;;  %p6599_p7 = scmp.lt.s32.totalorder %s6593_s8, %s6593_s8 }
 0x641   :  { %p6600_p8 = por %p6599_p7, %p6598_p6 }
 0x643   :  { %p6601_p9 = pnand %p6600_p8, %p6594_p5 }
 0x6ce   :  { %v5277_v21 = vpop.f32.mrf.mxu0  ;;  %v5347_v22 = vpop.f32.mrf.mxu1 }
 0x6cf   :  { %v5348_v1 = vadd.f32 %v5347_v22, %v5277_v21 }
 0x6d0   :  { %v6161_v30 = vpop.f32.mrf.mxu0  ;;  %v6196_v17 = vpop.f32.mrf.mxu1 }
 0x6ef   :  { %v5418_v63 = vpop.f32.mrf.mxu0  ;;  %v5490_v34 = vpop.f32.mrf.mxu1 }
 0x6f0   :  { %v5422_v35 = vadd.f32 %v5418_v63, %v5348_v1 }
 0x6f1   :  { %v6231_v15 = vpop.f32.mrf.mxu0  ;;  %v6266_v23 = vpop.f32.mrf.mxu1 }
 0x6f2   :  { %v5494_v55 = vadd.f32 %v5490_v34, %v5422_v35 }
 0x6f4   :  { %v5495_v6 = vadd.f32 %v6571_v54, %v5494_v55 }
 0x6f6   :  { %v5496_v3 = vmax.f32 %v5495_v6, 0.0 }
 0x6f8   :  { %6282 = vmatmul.mubr.msk.f32.vlgmr.msra.gmra.mxu0 %vm2891_vm4, %v5496_v3 }
 0x7b8   :  { %v5566_v49 = vpop.f32.mrf.mxu0 }
 0x7b9   :  { %v5567_v62 = vadd.f32 %v6572_v4, %v5566_v49 }
 0x7ba   :  { %v6283_v36 = vpop.f32.mrf.mxu0 }
 0x7bb   :  { %v5570_v33 = vsel %vm2969_vm5, %v5567_v62, -inf }
 0x7bc   :  { %5571 = vmax.xlane.f32.xlu0 %v5570_v33 }
 0x845   :  { %v5572_v28 = vpop.xlane.xlu0 %5571 }
 0x846   :  { %v5573_v50 = vsub.f32 %v5567_v62, %v5572_v28 }
 0x848   :  { %v5574_v37 = vmul.f32 1.442695, %v5573_v50 }
 0x84a   :  { %6294 = vpow2.f32 %v5574_v37 }
 0x857   :  { %v6295_v38 = vpop.eup %6294 }
 0x858   :  { %v5576_v39 = vsel %vm2969_vm5, %v6295_v38, 0.0 }
 0x859   :  { %5577 = vadd.xlane.f32.xlu1 %v5576_v39 }
 0x8e2   :  { %v5578_v46 = vpop.xlane.xlu1 %5577 }
 0x8e3   :  { %6296 = vlog2.f32 %v5578_v46 }
 0x8f0   :  { %v6297_v26 = vpop.eup %6296 }
 0x8f1   :  { %v5580_v27 = vmul.f32 0.6931472, %v6297_v26 }
 0x8f3   :  { %v5581_v18 = vsub.f32 %v5573_v50, %v5580_v27 }
 0x8f5   :  { %5582 = vst.msk [vmem:[#allocation7 + $0x1] sm:$0x1] %vm2969_vm5, %v5581_v18 }
 0x8f6   :  { %6604 = shalt.err (!%p6601_p9)
}
 0x8f7   :  { %5592 = dma.vmem_to_hbm [thread:$0]  %s5590_s21, 32, %s9634_s9, [#allocation6]  }
 0x8f8   :  { %6615 = dma.done.wait [#allocation6], 32  }
 0x8f9   :  { %6616 = vsyncadd [#allocation6], 4294967264 }
 0x8fa   :  { %5596 = vsyncpa [#allocation5], 1 }
 0x8fb   :  { %5597 = vsyncpa [#allocation6], 1 }

</bundles_post_ra>
